<compile_context>
chip_gen: v7x
topology: tpu7x:2x2x1
jax: 0.10.0
libtpu: 0.0.40
codegen_flags: <defaults>
</compile_context>

<pallas_src>
import jax
import jax.numpy as jnp
import numpy as np
from jax import lax
from jax.experimental import pallas as pl
from jax.experimental.pallas import tpu as pltpu

EPS = 1e-5
CH = 32    # channel count fixed by the module
NTAP = 7   # shift groups: centre, W-1, W+1, H-1, H+1, H-2, H+2


def _pack_tap_weights(w_res, w_p1, w_p2, w_p3, w_p4):
    """K-packed weights, shape (224, 160).

    Rows are grouped by shift group (32 rows each), columns form the branch slab
    [p1 | p2 | p3 | p4 | res].  Shift-group order must match the operand order
    built inside the kernel:
      0: no shift   1: W-1   2: W+1   3: H-1   4: H+1   5: H-2   6: H+2
    """
    Z = jnp.zeros((CH, CH), jnp.float32)

    def blk(p1=Z, p2=Z, p3=Z, p4=Z, res=Z):
        return jnp.concatenate([p1, p2, p3, p4, res], axis=1)  # (32, 160)

    blocks = [
        blk(p1=w_p1, p2=w_p2[1], p3=w_p3[1], p4=w_p4[2], res=w_res),  # centre taps
        blk(p2=w_p2[0]),                                              # W shift -1
        blk(p2=w_p2[2]),                                              # W shift +1
        blk(p3=w_p3[0], p4=w_p4[1]),                                  # H shift -1
        blk(p3=w_p3[2], p4=w_p4[3]),                                  # H shift +1
        blk(p4=w_p4[0]),                                              # H shift -2
        blk(p4=w_p4[4]),                                              # H shift +2
    ]
    return jnp.concatenate(blocks, axis=0)  # (224, 160)


def msfp_kernel(x_ref, w_ref, wcat_ref, bn5_ref, bncat_ref, o_ref):
    wp, nb, h, c = o_ref.shape
    m = wp * nb * h

    # ---- MaxPool2d((1,3), stride=(1,2)) along W (leading axis: pure indexing).
    x = x_ref[...]                                           # (W, N, H, C) bf16
    xe = x[:2 * wp].reshape(wp, 2, nb, h, c)
    s0 = xe[:, 0]                                            # x[0::2]
    s1 = xe[:, 1]                                            # x[1::2]
    s2 = jnp.concatenate([s0[1:], x[2 * wp:2 * wp + 1]], axis=0)   # x[2::2]
    xp = jnp.maximum(jnp.maximum(s0, s1), s2)                # (wp, N, H, C) bf16

    # ---- Halo-padded buffer: pad once, take 7 static slices (no shift copies).
    zw = jnp.zeros((1, nb, h, c), xp.dtype)
    zh = jnp.zeros((wp + 2, nb, 2, c), xp.dtype)
    xw = jnp.concatenate([zw, xp, zw], axis=0)               # (wp+2, N, H,   C)
    xpad = jnp.concatenate([zh, xw, zh], axis=2)             # (wp+2, N, H+4, C)

    ops = (
        xpad[1:wp + 1, :, 2:h + 2],   # centre
        xpad[0:wp,     :, 2:h + 2],   # W-1
        xpad[2:wp + 2, :, 2:h + 2],   # W+1
        xpad[1:wp + 1, :, 1:h + 1],   # H-1
        xpad[1:wp + 1, :, 3:h + 3],   # H+1
        xpad[1:wp + 1, :, 0:h],       # H-2
        xpad[1:wp + 1, :, 4:h + 4],   # H+2
    )
    # im2col of the 7-tap cross stencil: one lane-dense (M, 224) bf16 LHS.
    lhs = jnp.concatenate(ops, axis=-1).reshape(m, NTAP * c)

    # ---- All five branch convs (every spatial tap) as ONE wide MXU dot,
    #      bf16 operands / f32 accumulation -> (M, 160) slab [p1|p2|p3|p4|res].
    z = jnp.dot(lhs, w_ref[...], preferred_element_type=jnp.float32)

    # ---- Training-mode BatchNorm (biased, centered variance) for all 5 branches,
    #      folded into a single per-channel scale + offset pass.
    mean = jnp.mean(z, axis=0, keepdims=True)                # (1, 160)
    d = z - mean
    var = jnp.mean(d * d, axis=0, keepdims=True)
    zn = d * (bn5_ref[0:1, :] * lax.rsqrt(var + EPS)) + bn5_ref[1:2, :]

    p = jnp.maximum(zn[:, :4 * c], 0.0).astype(jnp.bfloat16)  # relu(p1..p4)
    res = zn[:, 4 * c:]                                       # res branch

    # ---- concat(128ch) -> 1x1 conv(32): single (M,128)x(128,32) dot + BN + add.
    zc = jnp.dot(p, wcat_ref[...], preferred_element_type=jnp.float32)   # (M,32)
    meanc = jnp.mean(zc, axis=0, keepdims=True)
    dc = zc - meanc
    varc = jnp.mean(dc * dc, axis=0, keepdims=True)
    y = dc * (bncat_ref[0:1, :] * lax.rsqrt(varc + EPS)) + bncat_ref[1:2, :] + res

    # TODO(synk): lane-dense (fold H into lanes) or bf16 store if downstream allows.
    o_ref[...] = y.reshape(wp, nb, h, c).astype(o_ref.dtype)


@jax.jit
def msfp_forward(x_nchw, params):
    w_res, w_p1, w_p2, w_p3, w_p4, w_cat, _biases, gammas, betas = params
    n, c, h, wfull = x_nchw.shape
    wp = (wfull - 3) // 2 + 1

    # NCHW -> (W, N, H, C) bf16 (cast fuses with the transpose; half-size DMA).
    x = jnp.transpose(x_nchw, (3, 0, 2, 1)).astype(jnp.bfloat16)

    wbig = _pack_tap_weights(w_res, w_p1, w_p2, w_p3, w_p4).astype(jnp.bfloat16)
    wcat = w_cat.astype(jnp.bfloat16)                                 # (128, 32)

    # BN affine params packed in slab order [p1|p2|p3|p4|res]; concat BN separate.
    g_slab = jnp.concatenate([gammas[1], gammas[2], gammas[3], gammas[4], gammas[0]])
    b_slab = jnp.concatenate([betas[1], betas[2], betas[3], betas[4], betas[0]])
    bn5 = jnp.stack([g_slab, b_slab]).astype(jnp.float32)             # (2, 160)
    bncat = jnp.stack([gammas[5], betas[5]]).astype(jnp.float32)      # (2, 32)

    vmem = pl.BlockSpec(memory_space=pltpu.MemorySpace.VMEM)
    out = pl.pallas_call(
        msfp_kernel,
        out_shape=jax.ShapeDtypeStruct((wp, n, h, c), jnp.float32),
        in_specs=[vmem] * 5,
        out_specs=vmem,
    )(x, wbig, wcat, bn5, bncat)
    return jnp.transpose(out, (1, 3, 2, 0))   # (Wp,N,H,C) -> (N,C,H,Wp)


def msfp_reference(x_nchw, params):
    """Pure-JAX reference (lax.conv / reduce_window).  It mirrors the kernel's
    bf16 matmul operands (bf16 in, f32 accumulate) so a tight tolerance remains
    meaningful; it DOES include the conv biases the kernel drops, which verifies
    the bias/BN cancellation."""
    w_res, w_p1, w_p2, w_p3, w_p4, w_cat, biases, gammas, betas = params
    x = jnp.transpose(x_nchw, (0, 2, 3, 1)).astype(jnp.float32)
    x = lax.reduce_window(x, -jnp.inf, lax.max, (1, 1, 3, 1), (1, 1, 2, 1), 'VALID')
    bf = lambda a: a.astype(jnp.bfloat16).astype(jnp.float32)
    x = bf(x)

    def conv1x1(a, w, b):
        return jnp.einsum('nhwc,cd->nhwd', a, bf(w)) + b

    def conv_taps(a, w_taps, axis, b):
        k = bf(w_taps)[None] if axis == 2 else bf(w_taps)[:, None]   # HWIO
        return lax.conv_general_dilated(
            a, k, (1, 1), 'SAME',
            dimension_numbers=('NHWC', 'HWIO', 'NHWC')) + b

    def bn(z, i):
        mean = jnp.mean(z, axis=(0, 1, 2), keepdims=True)
        var = jnp.mean((z - mean) ** 2, axis=(0, 1, 2), keepdims=True)
        return (z - mean) * lax.rsqrt(var + EPS) * gammas[i] + betas[i]

    relu = lambda v: jnp.maximum(v, 0.0)
    res = bn(conv1x1(x, w_res, biases[0]), 0)
    p1 = relu(bn(conv1x1(x, w_p1, biases[1]), 1))
    p2 = relu(bn(conv_taps(x, w_p2, 2, biases[2]), 2))
    p3 = relu(bn(conv_taps(x, w_p3, 1, biases[3]), 3))
    p4 = relu(bn(conv_taps(x, w_p4, 1, biases[4]), 4))
    cat = bn(conv1x1(bf(jnp.concatenate([p1, p2, p3, p4], -1)), w_cat, biases[5]), 5)
    return jnp.transpose(res + cat, (0, 3, 1, 2))


def init_params(key):
    ks = jax.random.split(key, 9)

    def w(k, shape):
        fan_in = int(np.prod(shape[:-1]))
        return jax.random.normal(k, shape, jnp.float32) / np.sqrt(fan_in)

    w_res = w(ks[0], (CH, CH))            # 1x1
    w_p1 = w(ks[1], (CH, CH))             # 1x1
    w_p2 = w(ks[2], (3, CH, CH))          # (1,3) taps along W
    w_p3 = w(ks[3], (3, CH, CH))          # (3,1) taps along H
    w_p4 = w(ks[4], (5, CH, CH))          # (5,1) taps along H
    w_cat = w(ks[5], (4 * CH, CH))        # 1x1 on concatenated 128 channels
    biases = 0.01 * jax.random.normal(ks[6], (6, CH), jnp.float32)
    # Non-trivial BN affine params so packing/order is actually exercised.
    gammas = 1.0 + 0.1 * jax.random.normal(ks[7], (6, CH), jnp.float32)
    betas = 0.1 * jax.random.normal(ks[8], (6, CH), jnp.float32)
    return (w_res, w_p1, w_p2, w_p3, w_p4, w_cat, biases, gammas, betas)


if __name__ == "__main__":
    key = jax.random.PRNGKey(0)
    k_x, k_p = jax.random.split(key)
    # NCHW input like the PyTorch module; C must be 32.  W=17 -> pooled W=8.
    x = jax.random.normal(k_x, (2, CH, 16, 17), jnp.float32)
    params = init_params(k_p)

    out = msfp_forward(x, params)
    out = jax.block_until_ready(out)
    assert out.shape == (2, CH, 16, 8), out.shape

    ref = jax.block_until_ready(msfp_reference(x, params))
    max_err = float(jnp.max(jnp.abs(out - ref)))
    assert max_err < 1e-2, f"mismatch vs reference: {max_err}"

    print("KERNEL_OK")
</pallas_src>

<mosaic_0001>
module attributes {stable_mosaic.version = 11 : i64} {
  func.func @msfp_kernel(%arg0: memref<17x2x16x32xbf16, #tpu.memory_space<vmem>>, %arg1: memref<224x160xbf16, #tpu.memory_space<vmem>>, %arg2: memref<128x32xbf16, #tpu.memory_space<vmem>>, %arg3: memref<2x160xf32, #tpu.memory_space<vmem>>, %arg4: memref<2x32xf32, #tpu.memory_space<vmem>>, %arg5: memref<8x2x16x32xf32, #tpu.memory_space<vmem>>) attributes {dimension_semantics = [], scalar_prefetch = 0 : i64, scratch_operands = 0 : i64, tpu.core_type = #tpu.core_type<tc>} {
    %c0 = arith.constant 0 : index
    %c0_0 = arith.constant 0 : index
    %c0_1 = arith.constant 0 : index
    %c0_2 = arith.constant 0 : index
    %0 = vector.load %arg0[%c0, %c0_0, %c0_1, %c0_2] : memref<17x2x16x32xbf16, #tpu.memory_space<vmem>>, vector<17x2x16x32xbf16>
    %1 = vector.extract_strided_slice %0 {offsets = [0, 0, 0, 0], sizes = [16, 2, 16, 32], strides = [1, 1, 1, 1]} : vector<17x2x16x32xbf16> to vector<16x2x16x32xbf16>
    %2 = vector.shape_cast %1 : vector<16x2x16x32xbf16> to vector<8x2x2x16x32xbf16>
    %3 = vector.extract_strided_slice %2 {offsets = [0, 0, 0, 0, 0], sizes = [8, 1, 2, 16, 32], strides = [1, 1, 1, 1, 1]} : vector<8x2x2x16x32xbf16> to vector<8x1x2x16x32xbf16>
    %4 = vector.shape_cast %3 : vector<8x1x2x16x32xbf16> to vector<8x2x16x32xbf16>
    %5 = vector.extract_strided_slice %2 {offsets = [0, 1, 0, 0, 0], sizes = [8, 1, 2, 16, 32], strides = [1, 1, 1, 1, 1]} : vector<8x2x2x16x32xbf16> to vector<8x1x2x16x32xbf16>
    %6 = vector.shape_cast %5 : vector<8x1x2x16x32xbf16> to vector<8x2x16x32xbf16>
    %7 = vector.extract_strided_slice %4 {offsets = [1, 0, 0, 0], sizes = [7, 2, 16, 32], strides = [1, 1, 1, 1]} : vector<8x2x16x32xbf16> to vector<7x2x16x32xbf16>
    %8 = vector.extract_strided_slice %0 {offsets = [16, 0, 0, 0], sizes = [1, 2, 16, 32], strides = [1, 1, 1, 1]} : vector<17x2x16x32xbf16> to vector<1x2x16x32xbf16>
    %9 = tpu.concatenate %7, %8 in 0 : vector<7x2x16x32xbf16>, vector<1x2x16x32xbf16> -> vector<8x2x16x32xbf16>
    %10 = arith.maximumf %4, %6 : vector<8x2x16x32xbf16>
    %11 = arith.maximumf %10, %9 : vector<8x2x16x32xbf16>
    %cst = arith.constant 0.000000e+00 : bf16
    %12 = vector.broadcast %cst : bf16 to vector<1x2x16x32xbf16>
    %cst_3 = arith.constant 0.000000e+00 : bf16
    %13 = vector.broadcast %cst_3 : bf16 to vector<10x2x2x32xbf16>
    %14 = tpu.concatenate %12, %11, %12 in 0 : vector<1x2x16x32xbf16>, vector<8x2x16x32xbf16>, vector<1x2x16x32xbf16> -> vector<10x2x16x32xbf16>
    %15 = tpu.concatenate %13, %14, %13 in 2 : vector<10x2x2x32xbf16>, vector<10x2x16x32xbf16>, vector<10x2x2x32xbf16> -> vector<10x2x20x32xbf16>
    %16 = vector.extract_strided_slice %15 {offsets = [1, 0, 2, 0], sizes = [8, 2, 16, 32], strides = [1, 1, 1, 1]} : vector<10x2x20x32xbf16> to vector<8x2x16x32xbf16>
    %17 = vector.extract_strided_slice %15 {offsets = [0, 0, 2, 0], sizes = [8, 2, 16, 32], strides = [1, 1, 1, 1]} : vector<10x2x20x32xbf16> to vector<8x2x16x32xbf16>
    %18 = vector.extract_strided_slice %15 {offsets = [2, 0, 2, 0], sizes = [8, 2, 16, 32], strides = [1, 1, 1, 1]} : vector<10x2x20x32xbf16> to vector<8x2x16x32xbf16>
    %19 = vector.extract_strided_slice %15 {offsets = [1, 0, 1, 0], sizes = [8, 2, 16, 32], strides = [1, 1, 1, 1]} : vector<10x2x20x32xbf16> to vector<8x2x16x32xbf16>
    %20 = vector.extract_strided_slice %15 {offsets = [1, 0, 3, 0], sizes = [8, 2, 16, 32], strides = [1, 1, 1, 1]} : vector<10x2x20x32xbf16> to vector<8x2x16x32xbf16>
    %21 = vector.extract_strided_slice %15 {offsets = [1, 0, 0, 0], sizes = [8, 2, 16, 32], strides = [1, 1, 1, 1]} : vector<10x2x20x32xbf16> to vector<8x2x16x32xbf16>
    %22 = vector.extract_strided_slice %15 {offsets = [1, 0, 4, 0], sizes = [8, 2, 16, 32], strides = [1, 1, 1, 1]} : vector<10x2x20x32xbf16> to vector<8x2x16x32xbf16>
    %23 = tpu.concatenate %16, %17, %18, %19, %20, %21, %22 in 3 : vector<8x2x16x32xbf16>, vector<8x2x16x32xbf16>, vector<8x2x16x32xbf16>, vector<8x2x16x32xbf16>, vector<8x2x16x32xbf16>, vector<8x2x16x32xbf16>, vector<8x2x16x32xbf16> -> vector<8x2x16x224xbf16>
    %24 = vector.shape_cast %23 : vector<8x2x16x224xbf16> to vector<256x224xbf16>
    %c0_4 = arith.constant 0 : index
    %c0_5 = arith.constant 0 : index
    %25 = vector.load %arg1[%c0_4, %c0_5] : memref<224x160xbf16, #tpu.memory_space<vmem>>, vector<224x160xbf16>
    %cst_6 = arith.constant dense<0.000000e+00> : vector<256x160xf32>
    %26 = tpu.matmul %24, %25, %cst_6 {dimension_numbers = #tpu.dot_dimension_numbers<[1], [0], [0], [1], [0, 0, 1, 1], [], []>} : vector<256x224xbf16>, vector<224x160xbf16>, vector<256x160xf32> -> vector<256x160xf32>
    %cst_7 = arith.constant dense<0.000000e+00> : vector<160xf32>
    %27 = vector.multi_reduction <add>, %26, %cst_7 [0] : vector<256x160xf32> to vector<160xf32>
    %28 = vector.shape_cast %27 : vector<160xf32> to vector<1x160xf32>
    %cst_8 = arith.constant 2.560000e+02 : f32
    %29 = vector.broadcast %cst_8 : f32 to vector<1x160xf32>
    %30 = arith.divf %28, %29 : vector<1x160xf32>
    %31 = vector.broadcast %30 : vector<1x160xf32> to vector<256x160xf32>
    %32 = arith.subf %26, %31 : vector<256x160xf32>
    %33 = arith.mulf %32, %32 : vector<256x160xf32>
    %cst_9 = arith.constant dense<0.000000e+00> : vector<160xf32>
    %34 = vector.multi_reduction <add>, %33, %cst_9 [0] : vector<256x160xf32> to vector<160xf32>
    %35 = vector.shape_cast %34 : vector<160xf32> to vector<1x160xf32>
    %cst_10 = arith.constant 2.560000e+02 : f32
    %36 = vector.broadcast %cst_10 : f32 to vector<1x160xf32>
    %37 = arith.divf %35, %36 : vector<1x160xf32>
    %c0_11 = arith.constant 0 : index
    %c0_12 = arith.constant 0 : index
    %38 = vector.load %arg3[%c0_11, %c0_12] : memref<2x160xf32, #tpu.memory_space<vmem>>, vector<1x160xf32>
    %cst_13 = arith.constant 9.99999974E-6 : f32
    %39 = vector.broadcast %cst_13 : f32 to vector<1x160xf32>
    %40 = arith.addf %37, %39 : vector<1x160xf32>
    %41 = math.rsqrt %40 : vector<1x160xf32>
    %42 = arith.mulf %38, %41 : vector<1x160xf32>
    %43 = vector.broadcast %42 : vector<1x160xf32> to vector<256x160xf32>
    %44 = arith.mulf %32, %43 : vector<256x160xf32>
    %c1 = arith.constant 1 : index
    %c0_14 = arith.constant 0 : index
    %45 = vector.load %arg3[%c1, %c0_14] : memref<2x160xf32, #tpu.memory_space<vmem>>, vector<1x160xf32>
    %46 = vector.broadcast %45 : vector<1x160xf32> to vector<256x160xf32>
    %47 = arith.addf %44, %46 : vector<256x160xf32>
    %48 = vector.extract_strided_slice %47 {offsets = [0, 0], sizes = [256, 128], strides = [1, 1]} : vector<256x160xf32> to vector<256x128xf32>
    %cst_15 = arith.constant 0.000000e+00 : f32
    %49 = vector.broadcast %cst_15 : f32 to vector<256x128xf32>
    %50 = arith.maximumf %48, %49 : vector<256x128xf32>
    %51 = arith.truncf %50 : vector<256x128xf32> to vector<256x128xbf16>
    %52 = vector.extract_strided_slice %47 {offsets = [0, 128], sizes = [256, 32], strides = [1, 1]} : vector<256x160xf32> to vector<256x32xf32>
    %c0_16 = arith.constant 0 : index
    %c0_17 = arith.constant 0 : index
    %53 = vector.load %arg2[%c0_16, %c0_17] : memref<128x32xbf16, #tpu.memory_space<vmem>>, vector<128x32xbf16>
    %cst_18 = arith.constant dense<0.000000e+00> : vector<256x32xf32>
    %54 = tpu.matmul %51, %53, %cst_18 {dimension_numbers = #tpu.dot_dimension_numbers<[1], [0], [0], [1], [0, 0, 1, 1], [], []>} : vector<256x128xbf16>, vector<128x32xbf16>, vector<256x32xf32> -> vector<256x32xf32>
    %cst_19 = arith.constant dense<0.000000e+00> : vector<32xf32>
    %55 = vector.multi_reduction <add>, %54, %cst_19 [0] : vector<256x32xf32> to vector<32xf32>
    %56 = vector.shape_cast %55 : vector<32xf32> to vector<1x32xf32>
    %cst_20 = arith.constant 2.560000e+02 : f32
    %57 = vector.broadcast %cst_20 : f32 to vector<1x32xf32>
    %58 = arith.divf %56, %57 : vector<1x32xf32>
    %59 = vector.broadcast %58 : vector<1x32xf32> to vector<256x32xf32>
    %60 = arith.subf %54, %59 : vector<256x32xf32>
    %61 = arith.mulf %60, %60 : vector<256x32xf32>
    %cst_21 = arith.constant dense<0.000000e+00> : vector<32xf32>
    %62 = vector.multi_reduction <add>, %61, %cst_21 [0] : vector<256x32xf32> to vector<32xf32>
    %63 = vector.shape_cast %62 : vector<32xf32> to vector<1x32xf32>
    %cst_22 = arith.constant 2.560000e+02 : f32
    %64 = vector.broadcast %cst_22 : f32 to vector<1x32xf32>
    %65 = arith.divf %63, %64 : vector<1x32xf32>
    %c0_23 = arith.constant 0 : index
    %c0_24 = arith.constant 0 : index
    %66 = vector.load %arg4[%c0_23, %c0_24] : memref<2x32xf32, #tpu.memory_space<vmem>>, vector<1x32xf32>
    %cst_25 = arith.constant 9.99999974E-6 : f32
    %67 = vector.broadcast %cst_25 : f32 to vector<1x32xf32>
    %68 = arith.addf %65, %67 : vector<1x32xf32>
    %69 = math.rsqrt %68 : vector<1x32xf32>
    %70 = arith.mulf %66, %69 : vector<1x32xf32>
    %71 = vector.broadcast %70 : vector<1x32xf32> to vector<256x32xf32>
    %72 = arith.mulf %60, %71 : vector<256x32xf32>
    %c1_26 = arith.constant 1 : index
    %c0_27 = arith.constant 0 : index
    %73 = vector.load %arg4[%c1_26, %c0_27] : memref<2x32xf32, #tpu.memory_space<vmem>>, vector<1x32xf32>
    %74 = vector.broadcast %73 : vector<1x32xf32> to vector<256x32xf32>
    %75 = arith.addf %72, %74 : vector<256x32xf32>
    %76 = arith.addf %75, %52 : vector<256x32xf32>
    %77 = vector.shape_cast %76 : vector<256x32xf32> to vector<8x2x16x32xf32>
    %c0_28 = arith.constant 0 : index
    %c0_29 = arith.constant 0 : index
    %c0_30 = arith.constant 0 : index
    %c0_31 = arith.constant 0 : index
    %78 = vector.load %arg5[%c0_28, %c0_29, %c0_30, %c0_31] : memref<8x2x16x32xf32, #tpu.memory_space<vmem>>, vector<8x2x16x32xf32>
    tpu.vector_store %arg5[%c0_28, %c0_29, %c0_30, %c0_31], %77 {strides = array<i32>} : memref<8x2x16x32xf32, #tpu.memory_space<vmem>>, vector<8x2x16x32xf32>,
    return
  }
}

</mosaic_0001>

<bundles_post_ra>
// kernel: msfp_forward.1
= control target key start
LH: loop header
LB: loop body
LE: loop exit
PB: predicated region body
PF: predicated region fallthrough
CT: control target
= control target key end

     0   :  { %vm251_vm0 = vcmask 1040384   ;;  %v3245_v0 = vmov 0   ;;  %s3246_s19 = smov 32   ;;  %s3247_s9 = smov 64   ;;  %vm828_vm1 = vcmask 1046528   ;;  %vm941_vm4 = vcmask 261120   ;;  %s5969_s0 = inlined_call_operand.vmem [shape: bf16[17,2,16,32], index: 0, kind: input, shape index: {}]   ;;  %s5970_s1 = inlined_call_operand.vmem [shape: bf16[224,160], index: 1, kind: input, shape index: {}]   ;;  %s5971_s2 = inlined_call_operand.vmem [shape: bf16[128,32], index: 2, kind: input, shape index: {}]   ;;  %s5972_s3 = inlined_call_operand.vmem [shape: f32[2,160], index: 3, kind: input, shape index: {}]   ;;  %s5973_s4 = inlined_call_operand.vmem [shape: f32[2,32], index: 4, kind: input, shape index: {}]   ;;  %s5974_s5 = inlined_call_operand.vmem [shape: f32[8,2,16,32], index: 5, kind: output, shape index: {}]  }
   0x1   :  { %v234_v1 = vrot.slane %v3245_v0, 7  ;;  %v29_v2 = vld [vmem:[%s5969_s0 + $0x20] sm:$0xf]  ;;  %v30_v3 = vld [vmem:[%s5969_s0 + $0x24] sm:$0xf]  ;;  %s3248_s11 = smov 96  }
   0x2   :  { %v33_v4 = vld [vmem:[%s5969_s0 + $0x30] sm:$0xf]  ;;  %v34_v5 = vld [vmem:[%s5969_s0 + $0x34] sm:$0xf]  ;;  %v3295_v6 = vld [vmem:[%s5969_s0 + $0x40] sm:$0xf] }
   0x3   :  { %v254_v7 = vsel %vm251_vm0, 0, %v234_v1  ;;  %v287_v8 = vsel %vm251_vm0, %v234_v1, 0  ;;  %v3302_v9 = vld [vmem:[%s5969_s0 + $0x44] sm:$0xf]  ;;  %v93_v10 = vmax.bf16 %v33_v4, %v29_v2  ;;  %v94_v11 = vmax.bf16 %v34_v5, %v30_v3  ;;  %v21_v12 = vld [vmem:[%s5969_s0] sm:$0xf] }
   0x4   :  { %v3307_v13 = vpack.i.bf16 %v287_v8, %v254_v7  ;;  %v22_v14 = vld [vmem:[%s5969_s0 + $0x4] sm:$0xf]  ;;  %v25_v15 = vld [vmem:[%s5969_s0 + $0x10] sm:$0xf]  ;;  %v26_v16 = vld [vmem:[%s5969_s0 + $0x14] sm:$0xf] }
   0x5   :  { %v125_v17 = vmax.bf16 %v93_v10, %v3295_v6  ;;  %v126_v18 = vmax.bf16 %v94_v11, %v3302_v9  ;;  %v89_v19 = vmax.bf16 %v25_v15, %v21_v12  ;;  %v90_v20 = vmax.bf16 %v26_v16, %v22_v14  ;;  %v23_v21 = vld [vmem:[%s5969_s0 + $0x8] sm:$0xf]  ;;  %v24_v22 = vld [vmem:[%s5969_s0 + $0xc] sm:$0xf]  ;;  %v27_v23 = vld [vmem:[%s5969_s0 + $0x18] sm:$0xf] }
   0x6   :  { %3180 = vrot.lane.b32.xlu0 %v3307_v13, %s3246_s19  ;;  %v28_v24 = vld [vmem:[%s5969_s0 + $0x1c] sm:$0xf]  ;;  %v31_v25 = vld [vmem:[%s5969_s0 + $0x28] sm:$0xf]  ;;  %v32_v26 = vld [vmem:[%s5969_s0 + $0x2c] sm:$0xf]  ;;  %v91_v27 = vmax.bf16 %v27_v23, %v23_v21 }
   0x7   :  { %v3006_v28 = vcombine.low %v125_v17, %v126_v18  ;;  %v121_v29 = vmax.bf16 %v89_v19, %v29_v2  ;;  %v122_v30 = vmax.bf16 %v90_v20, %v30_v3  ;;  %v92_v31 = vmax.bf16 %v28_v24, %v24_v22  ;;  %v35_v32 = vld [vmem:[%s5969_s0 + $0x38] sm:$0xf]  ;;  %v36_v33 = vld [vmem:[%s5969_s0 + $0x3c] sm:$0xf]  ;;  %v3349_v34 = vld [vmem:[%s5969_s0 + $0x48] sm:$0xf] }
   0x8   :  { %v123_v35 = vmax.bf16 %v91_v27, %v31_v25  ;;  %v3354_v36 = vld [vmem:[%s5969_s0 + $0x4c] sm:$0xf]  ;;  %v95_v37 = vmax.bf16 %v35_v32, %v31_v25  ;;  %v96_v38 = vmax.bf16 %v36_v33, %v32_v26  ;;  %v41_v48 = vld [vmem:[%s5969_s0 + $0x50] sm:$0xf]  ;;  %v42_v49 = vld [vmem:[%s5969_s0 + $0x54] sm:$0xf] }
   0x9   :  { %v237_v39 = vrot.slane %v3006_v28, 7  ;;  %v3004_v40 = vcombine.low %v121_v29, %v122_v30  ;;  %v124_v41 = vmax.bf16 %v92_v31, %v32_v26  ;;  %v3388_v58 = vld [vmem:[%s5969_s0 + $0x60] sm:$0xf]  ;;  %v3393_v59 = vld [vmem:[%s5969_s0 + $0x64] sm:$0xf]  ;;  %v97_v60 = vmax.bf16 %v41_v48, %v3295_v6 }
   0xa   :  { %v127_v42 = vmax.bf16 %v95_v37, %v3349_v34  ;;  %v128_v43 = vmax.bf16 %v96_v38, %v3354_v36  ;;  %v98_v61 = vmax.bf16 %v42_v49, %v3302_v9  ;;  %v3189_v0 = vld [vmem:[%s5970_s1 + $0x4] ss:$8 sps:$4 sm:$0xff]   ;;  %v3191_v5 = vld [vmem:[%s5970_s1] ss:$8 sps:$4 sm:$0xff]   ;;  %v3192_v7 = vld [vmem:[%s5970_s1 + $0x14] ss:$8 sps:$4 sm:$0xff]  }
   0xb   :  { %v3359_v44 = vsel %vm251_vm0, 0, %v237_v39  ;;  %v235_v45 = vrot.slane %v3004_v40, 7  ;;  %v3005_v46 = vcombine.low %v123_v35, %v124_v41  ;;  %v3373_v51 = vsel %vm251_vm0, %v237_v39, 0  ;;  %1668 = vmatprep.subr.bf16.mxu0 %v3189_v0  ;;  %3146 = vmatprep.subr.bf16.mxu1 %v3189_v0  ;;  %v3194_v11 = vld [vmem:[%s5970_s1 + $0x10] ss:$8 sps:$4 sm:$0xff]  }
   0xc   :  { %398 = vrot.lane.b32.xlu1 %v3359_v44, %s3247_s9  ;;  %v3007_v47 = vcombine.low %v127_v42, %v128_v43  ;;  %v129_v9 = vmax.bf16 %v97_v60, %v3388_v58  ;;  %v130_v10 = vmax.bf16 %v98_v61, %v3393_v59  ;;  %1669 = vmatpush1.bf16.msra.mxu0 %v3191_v5  ;;  %v480_v18 = vshll.u32 %v3359_v44, 16  ;;  %v3195_v19 = vld [vmem:[%s5970_s1 + $0x24] ss:$8 sps:$4 sm:$0xff]   ;;  %v3197_v25 = vld [vmem:[%s5970_s1 + $0x20] ss:$8 sps:$4 sm:$0xff]  }
   0xd   :  { %v3370_v50 = vsel %vm251_vm0, 0, %v235_v45  ;;  %v236_v52 = vrot.slane %v3005_v46, 7  ;;  %v3379_v55 = vsel %vm251_vm0, %v235_v45, 0  ;;  %3160 = vmatpush1.bf16.msra.mxu1 %v3191_v5  ;;  %1670 = vmatprep.subr.bf16.mxu0 %v3192_v7  ;;  %vm458_vm2 = vsmask.f32 256 }
   0xe   :  { %v780_v53 = vrot.slane %v3370_v50, 7  ;;  %v3376_v54 = vrot.slane %v3007_v47, 7  ;;  %v462_v57 = vshll.u32 %v3370_v50, 16  ;;  %v459_v63 = vshrl.u32 %v3370_v50, 16  ;;  %3147 = vmatprep.subr.bf16.mxu1 %v3192_v7  ;;  %v3198_v31 = vld [vmem:[%s5970_s1 + $0x34] ss:$8 sps:$4 sm:$0xff]  }
   0xf   :  { %v3382_v56 = vsel %vm251_vm0, 0, %v236_v52  ;;  %v829_v2 = vrot.slane %v3370_v50, 1  ;;  %v830_v3 = vrot.slane %v3379_v55, 1  ;;  %v465_v17 = vshll.u32 %v3379_v55, 16  ;;  %v3200_v35 = vld [vmem:[%s5970_s1 + $0x30] ss:$8 sps:$4 sm:$0xff]  }
  0x10   :  { %796 = vrot.lane.b32.xlu0 %v780_v53, %s3246_s19  ;;  %400 = vrot.lane.b32.xlu1 %v3373_v51, %s3247_s9  ;;  %v781_v62 = vrot.slane %v3382_v56, 7  ;;  %v3407_v1 = vsel %vm251_vm0, 0, %v3376_v54  ;;  %v668_v4 = vrot.slane %v462_v57, 1  ;;  %v471_v6 = vshll.u32 %v3382_v56, 16  ;;  %v3201_v42 = vld [vmem:[%s5970_s1 + $0x44] ss:$8 sps:$4 sm:$0xff]  }
  0x11   :  { %v461_v12 = vrot.slane %v459_v63, 7  ;;  %v468_v14 = vshrl.u32 %v3382_v56, 16  ;;  %v831_v16 = vsel %vm828_vm1, %v829_v2, %v830_v3  ;;  %v3436_v20 = vsel %vm251_vm0, %v236_v52, 0  ;;  %1671 = vmatpush1.bf16.msra.mxu0 %v3194_v11  ;;  %3161 = vmatpush1.bf16.msra.mxu1 %v3194_v11  ;;  %v3203_v46 = vld [vmem:[%s5970_s1 + $0x40] ss:$8 sps:$4 sm:$0xff]  }
  0x12   :  { %v3418_v8 = vor.u32 %v668_v4, %v459_v63  ;;  %v675_v15 = vrot.slane %v471_v6, 1  ;;  %v3008_v22 = vcombine.low %v129_v9, %v130_v10  ;;  %v477_v23 = vshrl.u32 %v3359_v44, 16  ;;  %1672 = vmatprep.subr.bf16.mxu0 %v3195_v19  ;;  %3148 = vmatprep.subr.bf16.mxu1 %v3195_v19  ;;  %v3204_v52 = vld [vmem:[%s5970_s1 + $0x54] ss:$8 sps:$4 sm:$0xff]   ;;  %v3209_v63 = vld [vmem:[%s5970_s1 + $0x60] ss:$8 sps:$4 sm:$0xff]  }
  0x13   :  { %v682_v24 = vrot.slane %v480_v18, 1  ;;  %v464_v26 = vor.u32 %v462_v57, %v461_v12  ;;  %v467_v27 = vsel %vm458_vm2, %v461_v12, %v465_v17  ;;  %v832_v28 = vrot.slane %v3382_v56, 1  ;;  %v3206_v57 = vld [vmem:[%s5970_s1 + $0x50] ss:$8 sps:$4 sm:$0xff]   ;;  %v3210_v4 = vld [vmem:[%s5970_s1 + $0x74] ss:$8 sps:$4 sm:$0xff]  }
  0x14   :  { %798 = vrot.lane.b32.xlu0 %v781_v62, %s3246_s19  ;;  %402 = vrot.lane.b32.xlu1 %v3407_v1, %s3247_s9  ;;  %v3438_v21 = vor.u32 %v675_v15, %v468_v14  ;;  %v833_v29 = vrot.slane %v3436_v20, 1  ;;  %v3460_v32 = vrot.slane %v3008_v22, 7  ;;  %v489_v33 = vshll.u32 %v3407_v1, 16  ;;  %v3207_v62 = vld [vmem:[%s5970_s1 + $0x64] ss:$8 sps:$4 sm:$0xff]  }
  0x15   :  { %v3455_v30 = vor.u32 %v682_v24, %v477_v23  ;;  %1673 = vmatpush1.bf16.msra.mxu0 %v3197_v25  ;;  %3162 = vmatpush1.bf16.msra.mxu1 %v3197_v25  ;;  %v470_v37 = vrot.slane %v468_v14, 7  ;;  %v3470_v38 = vsel %vm251_vm0, %v3376_v54, 0  ;;  %v486_v40 = vshrl.u32 %v3407_v1, 16  ;;  %v43_v5 = vld [vmem:[%s5969_s0 + $0x58] sm:$0xf] }
  0x16   :  { %v834_v39 = vsel %vm828_vm1, %v832_v28, %v833_v29  ;;  %v689_v41 = vrot.slane %v489_v33, 1  ;;  %1674 = vmatprep.subr.bf16.mxu0 %v3198_v31  ;;  %3149 = vmatprep.subr.bf16.mxu1 %v3198_v31  ;;  %v3481_v43 = vsel %vm251_vm0, 0, %v3460_v32  ;;  %v474_v49 = vshll.u32 %v3436_v20, 16  ;;  %v3212_v7 = vld [vmem:[%s5970_s1 + $0x70] ss:$8 sps:$4 sm:$0xff]  }
  0x17   :  { %v473_v47 = vor.u32 %v471_v6, %v470_v37  ;;  %v498_v48 = vshll.u32 %v3481_v43, 16  ;;  %v495_v53 = vshrl.u32 %v3481_v43, 16  ;;  %v3519_v0 = vrot.slane %v465_v17, 1  ;;  %v44_v6 = vld [vmem:[%s5969_s0 + $0x5c] sm:$0xf] }
  0x18   :  { %877 = vrot.lane.b32.xlu0 %v831_v16, %s3247_s9  ;;  %879 = vrot.lane.b32.xlu1 %v830_v3, %s3247_s9  ;;  %v3485_v45 = vor.u32 %v689_v41, %v486_v40  ;;  %v476_v61 = vsel %vm458_vm2, %v470_v37, %v474_v49  ;;  %v3521_v2 = vrot.slane %v474_v49, 1  ;;  %v782_v3 = vrot.slane %v3359_v44, 7  ;;  %v3561_v15 = vld [vmem:[%s5969_s0 + $0x68] sm:$0xf]  ;;  %v3213_v17 = vld [vmem:[%s5970_s1 + $0x84] ss:$8 sps:$4 sm:$0xff]  }
  0x19   :  { %1675 = vmatpush1.bf16.msra.mxu0 %v3200_v35  ;;  %3163 = vmatpush1.bf16.msra.mxu1 %v3200_v35  ;;  %v696_v54 = vrot.slane %v498_v48, 1  ;;  %vm667_vm3 = vsmask.f32 7424  ;;  %v835_v9 = vrot.slane %v3359_v44, 1  ;;  %v3555_v12 = vsel %vm251_vm0, %v3460_v32, 0 }
  0x1a   :  { %1676 = vmatprep.subr.bf16.mxu0 %v3201_v42  ;;  %3150 = vmatprep.subr.bf16.mxu1 %v3201_v42  ;;  %v3546_v10 = vsel %vm667_vm3, %v3418_v8, %v3519_v0  ;;  %v3551_v11 = vsel %vm667_vm3, %v3438_v21, %v3521_v2  ;;  %v836_v14 = vrot.slane %v3373_v51, 1  ;;  %v99_v16 = vmax.bf16 %v43_v5, %v3349_v34  ;;  %v3571_v19 = vld [vmem:[%s5969_s0 + $0x6c] sm:$0xf]  ;;  %v3215_v34 = vld [vmem:[%s5970_s1 + $0x80] ss:$8 sps:$4 sm:$0xff]  }
  0x1b   :  { %v3508_v60 = vor.u32 %v696_v54, %v495_v53  ;;  %v100_v8 = vmax.bf16 %v44_v6, %v3354_v36  ;;  %v483_v21 = vshll.u32 %v3373_v51, 16  ;;  %v479_v36 = vrot.slane %v477_v23, 7  ;;  %v3218_v28 = vld [vmem:[%s5970_s1 + $0x90] ss:$8 sps:$4 sm:$0xff]   ;;  %v3219_v32 = vld [vmem:[%s5970_s1 + $0xa4] ss:$8 sps:$4 sm:$0xff]  }
  0x1c   :  { %603 = vrot.lane.b32.xlu0 %v464_v26, %s3248_s11  ;;  %605 = vrot.lane.b32.xlu1 %v467_v27, %s3248_s11  ;;  %v837_v22 = vsel %vm828_vm1, %v835_v9, %v836_v14  ;;  %v131_v25 = vmax.bf16 %v99_v16, %v3561_v15  ;;  %v3216_v27 = vld [vmem:[%s5970_s1 + $0x94] ss:$8 sps:$4 sm:$0xff]   ;;  %v492_v37 = vshll.u32 %v3470_v38, 16  ;;  %v3224_v42 = vld [vmem:[%s5970_s1 + $0xb0] ss:$8 sps:$4 sm:$0xff]   ;;  %v501_v54 = vshll.u32 %v3555_v12, 16 }
  0x1d   :  { %1677 = vmatpush1.bf16.msra.mxu0 %v3203_v46  ;;  %3164 = vmatpush1.bf16.msra.mxu1 %v3203_v46  ;;  %v3584_v24 = vrot.slane %v483_v21, 1  ;;  %v132_v26 = vmax.bf16 %v100_v8, %v3571_v19  ;;  %v482_v23 = vor.u32 %v480_v18, %v479_v36  ;;  %v3221_v18 = vld [vmem:[%s5970_s1 + $0xa0] ss:$8 sps:$4 sm:$0xff]   ;;  %v783_v46 = vrot.slane %v3407_v1, 7 }
  0x1e   :  { %1678 = vmatprep.subr.bf16.mxu0 %v3204_v52  ;;  %3151 = vmatprep.subr.bf16.mxu1 %v3204_v52  ;;  %v3613_v41 = vrot.slane %v492_v37, 1  ;;  %v839_v52 = vrot.slane %v3470_v38, 1  ;;  %v3670_v16 = vld [vmem:[%s5969_s0 + $0x80] sm:$0xf]  ;;  %vm1004_vm5 = vcmask 523264   ;;  %vm1067_vm6 = vcmask 785408  }
  0x1f   :  { %v3009_v31 = vcombine.low %v131_v25, %v132_v26  ;;  %v3605_v35 = vsel %vm667_vm3, %v3455_v30, %v3584_v24  ;;  %v3222_v30 = vld [vmem:[%s5970_s1 + $0xb4] ss:$8 sps:$4 sm:$0xff]  }
  0x20   :  { %404 = vrot.lane.b32.xlu0 %v3470_v38, %s3247_s9  ;;  %881 = vrot.lane.b32.xlu1 %v834_v39, %s3247_s9  ;;  %v52_v25 = vld [vmem:[%s5969_s0 + $0x7c] sm:$0xf] }
  0x21   :  { %1679 = vmatpush1.bf16.msra.mxu0 %v3206_v57  ;;  %3165 = vmatpush1.bf16.msra.mxu1 %v3206_v57  ;;  %v240_v39 = vrot.slane %v3009_v31, 7  ;;  %v3225_v57 = vld [vmem:[%s5970_s1 + $0xc4] ss:$8 sps:$4 sm:$0xff]  }
  0x22   :  { %1680 = vmatprep.subr.bf16.mxu0 %v3207_v62  ;;  %3152 = vmatprep.subr.bf16.mxu1 %v3207_v62  ;;  %v49_v62 = vld [vmem:[%s5969_s0 + $0x70] sm:$0xf] }
  0x23   :  { %v3628_v49 = vsel %vm251_vm0, 0, %v240_v39  ;;  %v3659_v5 = vsel %vm251_vm0, %v240_v39, 0  ;;  %v3727_v39 = vld [vmem:[%s5969_s0 + $0x8c] sm:$0xf] }
  0x24   :  { %883 = vrot.lane.b32.xlu0 %v833_v29, %s3247_s9  ;;  %607 = vrot.lane.b32.xlu1 %v473_v47, %s3248_s11  ;;  %v485_v29 = vsel %vm458_vm2, %v479_v36, %v483_v21  ;;  %v838_v47 = vrot.slane %v3407_v1, 1  ;;  %v507_v26 = vshll.u32 %v3628_v49, 16 }
  0x25   :  { %1681 = vmatpush1.bf16.msra.mxu0 %v3209_v63  ;;  %3166 = vmatpush1.bf16.msra.mxu1 %v3209_v63  ;;  %v50_v63 = vld [vmem:[%s5969_s0 + $0x74] sm:$0xf] }
  0x26   :  { %1682 = vmatprep.subr.bf16.mxu0 %v3210_v4  ;;  %3153 = vmatprep.subr.bf16.mxu1 %v3210_v4  ;;  %v3227_v4 = vld [vmem:[%s5970_s1 + $0xc0] ss:$8 sps:$4 sm:$0xff]   ;;  %v840_v6 = vsel %vm828_vm1, %v838_v47, %v839_v52  ;;  %v102_v9 = vmax.bf16 %v50_v63, %v3393_v59 }
  0x28   :  { %609 = vrot.lane.b32.xlu0 %v476_v61, %s3248_s11  ;;  %338 = vrot.lane.b32.xlu1 %v3370_v50, %s3246_s19  ;;  %v3638_v61 = vsel %vm667_vm3, %v3485_v45, %v3613_v41  ;;  %v488_v45 = vrot.slane %v486_v40, 7  ;;  %v3675_v40 = vld [vmem:[%s5969_s0 + $0x84] sm:$0xf] }
  0x29   :  { %1683 = vmatpush1.bf16.msra.mxu0 %v3212_v7  ;;  %3167 = vmatpush1.bf16.msra.mxu1 %v3212_v7  ;;  %v101_v7 = vmax.bf16 %v49_v62, %v3388_v58  ;;  %v3230_v58 = vld [vmem:[%s5970_s1 + $0xd0] ss:$8 sps:$4 sm:$0xff]   ;;  %v134_v21 = vmax.bf16 %v102_v9, %v3675_v40 }
  0x2a   :  { %1684 = vmatprep.subr.bf16.mxu0 %v3213_v17  ;;  %3154 = vmatprep.subr.bf16.mxu1 %v3213_v17  ;;  %v491_v8 = vor.u32 %v489_v33, %v488_v45  ;;  %v784_v33 = vrot.slane %v3481_v43, 7 }
  0x2b   :  { %v133_v17 = vmax.bf16 %v101_v7, %v3670_v16  ;;  %v845_v7 = vrot.slane %v3659_v5, 1 }
  0x2c   :  { %340 = vrot.lane.b32.xlu0 %v3379_v55, %s3246_s19  ;;  %800 = vrot.lane.b32.xlu1 %v782_v3, %s3246_s19  ;;  %v3648_v3 = vrot.slane %v501_v54, 1 }
  0x2d   :  { %1685 = vmatpush1.bf16.msra.mxu0 %v3215_v34  ;;  %3168 = vmatpush1.bf16.msra.mxu1 %v3215_v34  ;;  %v3010_v34 = vcombine.low %v133_v17, %v134_v21 }
  0x2e   :  { %1686 = vmatprep.subr.bf16.mxu0 %v3216_v27  ;;  %3155 = vmatprep.subr.bf16.mxu1 %v3216_v27  ;;  %v3683_v59 = vsel %vm667_vm3, %v3508_v60, %v3648_v3  ;;  %v494_v60 = vsel %vm458_vm2, %v488_v45, %v492_v37  ;;  %v841_v27 = vrot.slane %v3481_v43, 1  ;;  %v104_v37 = vmax.bf16 %v52_v25, %v3571_v19 }
  0x2f   :  { %v241_v36 = vrot.slane %v3010_v34, 7 }
  0x30   :  { %406 = vrot.lane.b32.xlu0 %v3481_v43, %s3247_s9  ;;  %408 = vrot.lane.b32.xlu1 %v3555_v12, %s3247_s9 }
  0x31   :  { %1687 = vmatpush1.bf16.msra.mxu0 %v3218_v28  ;;  %3169 = vmatpush1.bf16.msra.mxu1 %v3218_v28  ;;  %v842_v28 = vrot.slane %v3555_v12, 1  ;;  %v3715_v31 = vsel %vm251_vm0, %v241_v36, 0 }
  0x32   :  { %1688 = vmatprep.subr.bf16.mxu0 %v3219_v32  ;;  %3156 = vmatprep.subr.bf16.mxu1 %v3219_v32  ;;  %v519_v17 = vshll.u32 %v3715_v31, 16 }
  0x33   :  { %v843_v47 = vsel %vm828_vm1, %v841_v27, %v842_v28  ;;  %v3788_v27 = vld [vmem:[%s5969_s0 + $0xa0] sm:$0xf] }
  0x34   :  { %885 = vrot.lane.b32.xlu0 %v837_v22, %s3247_s9  ;;  %887 = vrot.lane.b32.xlu1 %v836_v14, %s3247_s9  ;;  %v3228_v14 = vld [vmem:[%s5970_s1 + $0xd4] ss:$8 sps:$4 sm:$0xff]   ;;  %v51_v22 = vld [vmem:[%s5969_s0 + $0x78] sm:$0xf]  ;;  %v3783_v25 = vrot.slane %v519_v17, 1 }
  0x35   :  { %1689 = vmatpush1.bf16.msra.mxu0 %v3221_v18  ;;  %3170 = vmatpush1.bf16.msra.mxu1 %v3221_v18  ;;  %v103_v32 = vmax.bf16 %v51_v22, %v3561_v15  ;;  %v3722_v18 = vld [vmem:[%s5969_s0 + $0x88] sm:$0xf]  ;;  %v497_v15 = vrot.slane %v495_v53, 7 }
  0x36   :  { %1690 = vmatprep.subr.bf16.mxu0 %v3222_v30  ;;  %3157 = vmatprep.subr.bf16.mxu1 %v3222_v30  ;;  %v504_v30 = vshrl.u32 %v3628_v49, 16 }
  0x37   :  { %v500_v53 = vor.u32 %v498_v48, %v497_v15  ;;  %v503_v63 = vsel %vm458_vm2, %v497_v15, %v501_v54  ;;  %v844_v48 = vrot.slane %v3628_v49, 1 }
  0x38   :  { %611 = vrot.lane.b32.xlu0 %v482_v23, %s3248_s11  ;;  %613 = vrot.lane.b32.xlu1 %v485_v29, %s3248_s11  ;;  %v703_v23 = vrot.slane %v507_v26, 1  ;;  %v3712_v29 = vsel %vm251_vm0, 0, %v241_v36 }
  0x39   :  { %1691 = vmatpush1.bf16.msra.mxu0 %v3224_v42  ;;  %3171 = vmatpush1.bf16.msra.mxu1 %v3224_v42  ;;  %v510_v42 = vshll.u32 %v3659_v5, 16  ;;  %v516_v54 = vshll.u32 %v3712_v29, 16  ;;  %v846_v21 = vsel %vm828_vm1, %v844_v48, %v845_v7  ;;  %v513_v34 = vshrl.u32 %v3712_v29, 16  ;;  %v3838_v48 = vld [vmem:[%s5969_s0 + $0xac] sm:$0xf] }
  0x3a   :  { %1692 = vmatprep.subr.bf16.mxu0 %v3225_v57  ;;  %3158 = vmatprep.subr.bf16.mxu1 %v3225_v57  ;;  %v704_v19 = vor.u32 %v703_v23, %v504_v30  ;;  %v136_v57 = vmax.bf16 %v104_v37, %v3727_v39 }
  0x3c   :  { %342 = vrot.lane.b32.xlu0 %v3382_v56, %s3246_s19  ;;  %344 = vrot.lane.b32.xlu1 %v3436_v20, %s3246_s19 }
  0x3d   :  { %1693 = vmatpush1.bf16.msra.mxu0 %v3227_v4  ;;  %3172 = vmatpush1.bf16.msra.mxu1 %v3227_v4 }
  0x3e   :  { %1694 = vmatprep.subr.bf16.mxu0 %v3228_v14  ;;  %3159 = vmatprep.subr.bf16.mxu1 %v3228_v14  ;;  %v57_v14 = vld [vmem:[%s5969_s0 + $0x90] sm:$0xf] }
  0x3f   :  { %v105_v36 = vmax.bf16 %v57_v14, %v3670_v16 }
  0x40   :  { %802 = vrot.lane.b32.xlu0 %v783_v46, %s3246_s19  ;;  %410 = vrot.lane.b32.xlu1 %v3628_v49, %s3247_s9  ;;  %v3737_v46 = vrot.slane %v510_v42, 1 }
  0x41   :  { %1695 = vmatpush1.bf16.msra.mxu0 %v3230_v58  ;;  %3173 = vmatpush1.bf16.msra.mxu1 %v3230_v58  ;;  %v58_v58 = vld [vmem:[%s5969_s0 + $0x94] sm:$0xf] }
  0x42   :  { %v3744_v62 = vsel %vm667_vm3, %v704_v19, %v3737_v46  ;;  %v106_v22 = vmax.bf16 %v58_v58, %v3675_v40 }
  0x44   :  { %412 = vrot.lane.b32.xlu0 %v3659_v5, %s3247_s9  ;;  %889 = vrot.lane.b32.xlu1 %v840_v6, %s3247_s9  ;;  %v785_v6 = vrot.slane %v3628_v49, 7 }
  0x48   :  { %891 = vrot.lane.b32.xlu0 %v839_v52, %s3247_s9  ;;  %615 = vrot.lane.b32.xlu1 %v491_v8, %s3248_s11  ;;  %v135_v52 = vmax.bf16 %v103_v32, %v3722_v18  ;;  %v710_v8 = vrot.slane %v516_v54, 1  ;;  %v137_v32 = vmax.bf16 %v105_v36, %v3788_v27 }
  0x4a   :  { %v3011_v4 = vcombine.low %v135_v52, %v136_v57  ;;  %v711_v23 = vor.u32 %v710_v8, %v513_v34  ;;  %v60_v52 = vld [vmem:[%s5969_s0 + $0x9c] sm:$0xf]  ;;  %v848_v57 = vrot.slane %v3715_v31, 1 }
  0x4c   :  { %617 = vrot.lane.b32.xlu0 %v494_v60, %s3248_s11  ;;  %346 = vrot.lane.b32.xlu1 %v3359_v44, %s3246_s19  ;;  %v242_v45 = vrot.slane %v3011_v4, 7  ;;  %v506_v60 = vrot.slane %v504_v30, 7  ;;  %v3800_v40 = vsel %vm667_vm3, %v711_v23, %v3783_v25 }
  0x4e   :  { %v3764_v9 = vsel %vm251_vm0, 0, %v242_v45  ;;  %v509_v16 = vor.u32 %v507_v26, %v506_v60  ;;  %v512_v30 = vsel %vm458_vm2, %v506_v60, %v510_v42  ;;  %v786_v26 = vrot.slane %v3712_v29, 7 }
  0x4f   :  { %v847_v42 = vrot.slane %v3712_v29, 1 }
  0x50   :  { %348 = vrot.lane.b32.xlu0 %v3373_v51, %s3246_s19  ;;  %804 = vrot.lane.b32.xlu1 %v784_v33, %s3246_s19  ;;  %v3779_v33 = vsel %vm251_vm0, %v242_v45, 0  ;;  %v108_v45 = vmax.bf16 %v60_v52, %v3727_v39  ;;  %v66_v52 = vld [vmem:[%s5969_s0 + $0xb4] sm:$0xf] }
  0x52   :  { %v140_v14 = vmax.bf16 %v108_v45, %v3838_v48 }
  0x54   :  { %414 = vrot.lane.b32.xlu0 %v3712_v29, %s3247_s9  ;;  %416 = vrot.lane.b32.xlu1 %v3715_v31, %s3247_s9 }
  0x58   :  { %893 = vrot.lane.b32.xlu0 %v843_v47, %s3247_s9  ;;  %895 = vrot.lane.b32.xlu1 %v842_v28, %s3247_s9  ;;  %v3793_v28 = vld [vmem:[%s5969_s0 + $0xa4] sm:$0xf]  ;;  %v59_v47 = vld [vmem:[%s5969_s0 + $0x98] sm:$0xf] }
  0x59   :  { %v138_v37 = vmax.bf16 %v106_v22, %v3793_v28  ;;  %v107_v4 = vmax.bf16 %v59_v47, %v3722_v18  ;;  %v849_v18 = vsel %vm828_vm1, %v847_v42, %v848_v57  ;;  %v672_v22 = vshrl.u32 %v3379_v55, 16  ;;  %v65_v47 = vld [vmem:[%s5969_s0 + $0xb0] sm:$0xf] }
  0x5b   :  { %v3012_v15 = vcombine.low %v137_v32, %v138_v37  ;;  %v850_v37 = vrot.slane %v3764_v9, 1 }
  0x5c   :  { %619 = vrot.lane.b32.xlu0 %v500_v53, %s3248_s11  ;;  %621 = vrot.lane.b32.xlu1 %v503_v63, %s3248_s11 }
  0x5d   :  { %v243_v19 = vrot.slane %v3012_v15, 7  ;;  %v674_v15 = vor.u32 %v672_v22, %v3519_v0  ;;  %v3897_v22 = vld [vmem:[%s5969_s0 + $0xc0] sm:$0xf] }
  0x5f   :  { %v3823_v53 = vsel %vm251_vm0, 0, %v243_v19  ;;  %v3826_v63 = vsel %vm251_vm0, %v243_v19, 0 }
  0x60   :  { %350 = vrot.lane.b32.xlu0 %v3407_v1, %s3246_s19  ;;  %352 = vrot.lane.b32.xlu1 %v3470_v38, %s3246_s19 }
  0x64   :  { %806 = vrot.lane.b32.xlu0 %v785_v6, %s3246_s19  ;;  %418 = vrot.lane.b32.xlu1 %v3764_v9, %s3247_s9  ;;  %v3833_v6 = vld [vmem:[%s5969_s0 + $0xa8] sm:$0xf] }
  0x65   :  { %v139_v39 = vmax.bf16 %v107_v4, %v3833_v6  ;;  %v525_v4 = vshll.u32 %v3764_v9, 16 }
  0x67   :  { %v3013_v60 = vcombine.low %v139_v39, %v140_v14  ;;  %v110_v39 = vmax.bf16 %v66_v52, %v3793_v28 }
  0x68   :  { %420 = vrot.lane.b32.xlu0 %v3779_v33, %s3247_s9  ;;  %897 = vrot.lane.b32.xlu1 %v846_v21, %s3247_s9 }
  0x6c   :  { %899 = vrot.lane.b32.xlu0 %v845_v7, %s3247_s9  ;;  %623 = vrot.lane.b32.xlu1 %v509_v16, %s3248_s11  ;;  %v515_v7 = vrot.slane %v513_v34, 7  ;;  %v244_v34 = vrot.slane %v3013_v60, 7 }
  0x6e   :  { %v518_v8 = vor.u32 %v516_v54, %v515_v7  ;;  %v521_v21 = vsel %vm458_vm2, %v515_v7, %v519_v17  ;;  %v787_v54 = vrot.slane %v3764_v9, 7  ;;  %v5975_v17 = vshrl.u32 %v3764_v9, 16 }
  0x6f   :  { %v3862_v32 = vsel %vm251_vm0, 0, %v244_v34  ;;  %v3886_v45 = vsel %vm251_vm0, %v244_v34, 0  ;;  %v3902_v34 = vld [vmem:[%s5969_s0 + $0xc4] sm:$0xf] }
  0x70   :  { %625 = vrot.lane.b32.xlu0 %v512_v30, %s3248_s11  ;;  %354 = vrot.lane.b32.xlu1 %v3481_v43, %s3246_s19  ;;  %v851_v30 = vrot.slane %v3779_v33, 1  ;;  %v524_v0 = vrot.slane %v5975_v17, 7 }
  0x72   :  { %v852_v7 = vsel %vm828_vm1, %v850_v37, %v851_v30 }
  0x74   :  { %356 = vrot.lane.b32.xlu0 %v3555_v12, %s3246_s19  ;;  %808 = vrot.lane.b32.xlu1 %v786_v26, %s3246_s19 }
  0x78   :  { %422 = vrot.lane.b32.xlu0 %v3823_v53, %s3247_s9  ;;  %424 = vrot.lane.b32.xlu1 %v3826_v63, %s3247_s9  ;;  %v3848_v58 = vpop.permute.xlu0 %3180 }
  0x79   :  { %v3183_v42 = vunpack.i.h.bf16 %v3848_v58 }
  0x7c   :  { %901 = vrot.lane.b32.xlu0 %v849_v18, %s3247_s9  ;;  %903 = vrot.lane.b32.xlu1 %v848_v57, %s3247_s9  ;;  %v3182_v57 = vunpack.i.l.bf16 %v3848_v58  ;;  %v109_v18 = vmax.bf16 %v65_v47, %v3788_v27 }
  0x7e   :  { %v399_v36 = vpop.permute.xlu1 %398  ;;  %v943_v27 = vsel %vm941_vm4, %v3370_v50, %v3182_v57  ;;  %v527_v50 = vor.u32 %v525_v4, %v524_v0  ;;  %v141_v47 = vmax.bf16 %v109_v18, %v3897_v22 }
  0x7f   :  { %v1006_v52 = vsel %vm1004_vm5, %v943_v27, %v399_v36 }
  0x80   :  { %627 = vrot.lane.b32.xlu0 %v518_v8, %s3248_s11  ;;  %629 = vrot.lane.b32.xlu1 %v521_v21, %s3248_s11 }
  0x82   :  { %v797_v23 = vpop.permute.xlu0 %796  ;;  %v401_v16 = vpop.permute.xlu1 %400 }
  0x83   :  { %v1134_v14 = vsel %vm941_vm4, %v3546_v10, %v797_v23  ;;  %v1136_v8 = vsel %vm941_vm4, %v674_v15, %v797_v23  ;;  %v945_v10 = vsel %vm941_vm4, %v3379_v55, %v3183_v42  ;;  %v528_v15 = vshll.u32 %v3779_v33, 16 }
  0x84   :  { %358 = vrot.lane.b32.xlu0 %v3628_v49, %s3246_s19  ;;  %360 = vrot.lane.b32.xlu1 %v3659_v5, %s3246_s19  ;;  %v142_v55 = vmax.bf16 %v110_v39, %v3902_v34 }
  0x85   :  { %v530_v36 = vsel %vm458_vm2, %v524_v0, %v528_v15 }
  0x86   :  { %v3867_v26 = vpop.permute.xlu0 %798  ;;  %v3869_v19 = vpop.permute.xlu1 %402 }
  0x88   :  { %810 = vrot.lane.b32.xlu0 %v787_v54, %s3246_s19  ;;  %426 = vrot.lane.b32.xlu1 %v3862_v32, %s3247_s9 }
  0x8a   :  { %v878_v21 = vpop.permute.xlu0 %877  ;;  %v880_v60 = vpop.permute.xlu1 %879 }
  0x8b   :  { %v1213_v28 = vsel %vm1004_vm5, %v1134_v14, %v878_v21  ;;  %v1215_v23 = vsel %vm1004_vm5, %v1136_v8, %v880_v60  ;;  %v1008_v14 = vsel %vm1004_vm5, %v945_v10, %v401_v16  ;;  %v679_v8 = vshrl.u32 %v3436_v20, 16 }
  0x8c   :  { %v1343_v54 = vrot.slane %v1213_v28, 1  ;;  %v1344_v37 = vrot.slane %v1215_v23, 1  ;;  %428 = vrot.lane.b32.xlu0 %v3886_v45, %s3247_s9  ;;  %905 = vrot.lane.b32.xlu1 %v852_v7, %s3247_s9  ;;  %v3014_v16 = vcombine.low %v141_v47, %v142_v55 }
  0x8d   :  { %v681_v39 = vor.u32 %v679_v8, %v3521_v2  ;;  %v67_v2 = vld [vmem:[%s5969_s0 + $0xb8] sm:$0xf]  ;;  %v946_v8 = vsel %vm941_vm4, %v3382_v56, %v3182_v57  ;;  %v947_v56 = vsel %vm941_vm4, %v3436_v20, %v3183_v42  ;;  %v3988_v20 = vld [vmem:[%s5969_s0 + $0xcc] sm:$0xf] }
  0x8e   :  { %v604_v21 = vpop.permute.xlu0 %603  ;;  %v606_v60 = vpop.permute.xlu1 %605  ;;  %v1345_v7 = vsel %vm828_vm1, %v1343_v54, %v1344_v37  ;;  %v1139_v37 = vsel %vm941_vm4, %v3551_v11, %v3867_v26 }
  0x8f   :  { %v1069_v28 = vsel %vm1067_vm6, %v1006_v52, %v604_v21  ;;  %v1071_v23 = vsel %vm1067_vm6, %v1008_v14, %v606_v60  ;;  %3048 = vmatprep.mubr.msk.bf16.mxu0 %vm1067_vm6, %v1345_v7  ;;  %v1141_v11 = vsel %vm941_vm4, %v681_v39, %v3867_v26  ;;  %v853_v52 = vrot.slane %v3823_v53, 1 }
  0x90   :  { %v1340_v17 = vrot.slane %v1069_v28, 1  ;;  %v1341_v18 = vrot.slane %v1071_v23, 1  ;;  %907 = vrot.lane.b32.xlu0 %v851_v30, %s3247_s9  ;;  %631 = vrot.lane.b32.xlu1 %v527_v50, %s3248_s11  ;;  %v788_v30 = vrot.slane %v3823_v53, 7  ;;  %v245_v50 = vrot.slane %v3014_v16, 7 }
  0x91   :  { %v854_v14 = vrot.slane %v3826_v63, 1  ;;  %v531_v60 = vshrl.u32 %v3823_v53, 16  ;;  %v111_v7 = vmax.bf16 %v67_v2, %v3833_v6  ;;  %v1010_v26 = vsel %vm1004_vm5, %v946_v8, %v3869_v19 }
  0x92   :  { %v405_v27 = vpop.permute.xlu0 %404  ;;  %v882_v10 = vpop.permute.xlu1 %881  ;;  %v1342_v54 = vsel %vm828_vm1, %v1340_v17, %v1341_v18  ;;  %v68_v17 = vld [vmem:[%s5969_s0 + $0xbc] sm:$0xf]  ;;  %v3973_v6 = vsel %vm251_vm0, 0, %v245_v50  ;;  %v3976_v19 = vsel %vm251_vm0, %v245_v50, 0  ;;  %v537_v2 = vshll.u32 %v3826_v63, 16 }
  0x93   :  { %1701 = vmatmul.mubr.bf16.vlgmr.msra.gmra.mrb[0].mxu0 %v1342_v54  ;;  %v1217_v0 = vsel %vm1004_vm5, %v1139_v37, %v882_v10  ;;  %v112_v18 = vmax.bf16 %v68_v17, %v3838_v48  ;;  %v3983_v48 = vld [vmem:[%s5969_s0 + $0xc8] sm:$0xf]  ;;  %v533_v54 = vrot.slane %v531_v60, 7  ;;  %v534_v37 = vshll.u32 %v3823_v53, 16 }
  0x94   :  { %633 = vrot.lane.b32.xlu0 %v530_v36, %s3248_s11  ;;  %362 = vrot.lane.b32.xlu1 %v3712_v29, %s3246_s19  ;;  %v1349_v28 = vrot.slane %v1217_v0, 1  ;;  %v1012_v36 = vsel %vm1004_vm5, %v947_v56, %v405_v27  ;;  %v143_v0 = vmax.bf16 %v111_v7, %v3983_v48 }
  0x95   :  { %v144_v50 = vmax.bf16 %v112_v18, %v3988_v20  ;;  %v539_v8 = vsel %vm458_vm2, %v533_v54, %v537_v2 }
  0x96   :  { %v884_v47 = vpop.permute.xlu0 %883  ;;  %v608_v55 = vpop.permute.xlu1 %607 }
  0x97   :  { %v1219_v21 = vsel %vm1004_vm5, %v1141_v11, %v884_v47  ;;  %v1073_v57 = vsel %vm1067_vm6, %v1010_v26, %v608_v55  ;;  %v686_v47 = vshrl.u32 %v3373_v51, 16 }
  0x98   :  { %v1350_v23 = vrot.slane %v1219_v21, 1  ;;  %364 = vrot.lane.b32.xlu0 %v3715_v31, %s3246_s19  ;;  %812 = vrot.lane.b32.xlu1 %v788_v30, %s3246_s19  ;;  %v1346_v42 = vrot.slane %v1073_v57, 1  ;;  %v855_v30 = vsel %vm828_vm1, %v853_v52, %v854_v14  ;;  %v536_v52 = vor.u32 %v534_v37, %v533_v54 }
  0x99   :  { %v3015_v21 = vcombine.low %v143_v0, %v144_v50  ;;  %v688_v7 = vor.u32 %v686_v47, %v3584_v24  ;;  %v789_v24 = vrot.slane %v3862_v32, 7  ;;  %v857_v0 = vrot.slane %v3886_v45, 1  ;;  %v73_v50 = vld [vmem:[%s5969_s0 + $0xd0] sm:$0xf] }
  0x9a   :  { %v610_v16 = vpop.permute.xlu0 %609  ;;  %v1351_v39 = vsel %vm828_vm1, %v1349_v28, %v1350_v23  ;;  %v339_v10 = vpop.permute.xlu1 %338 }
  0x9b   :  { %v1075_v58 = vsel %vm1067_vm6, %v1012_v36, %v610_v16  ;;  %3049 = vmatprep.mubr.msk.bf16.mxu0 %vm1067_vm6, %v1351_v39  ;;  %v246_v23 = vrot.slane %v3015_v21, 7 }
  0x9c   :  { %v1347_v27 = vrot.slane %v1075_v58, 1  ;;  %430 = vrot.lane.b32.xlu0 %v3973_v6, %s3247_s9  ;;  %432 = vrot.lane.b32.xlu1 %v3976_v19, %s3247_s9 }
  0x9e   :  { %v341_v17 = vpop.permute.xlu0 %340  ;;  %v1348_v11 = vsel %vm828_vm1, %v1346_v42, %v1347_v27  ;;  %v801_v55 = vpop.permute.xlu1 %800  ;;  %v540_v42 = vshrl.u32 %v3862_v32, 16  ;;  %v949_v27 = vsel %vm941_vm4, %v3359_v44, %v339_v10 }
  0x9f   :  { %1711 = vmatmul.mubr.bf16.gmra.mrb[4].mxu0 %v1348_v11  ;;  %v1146_v18 = vsel %vm941_vm4, %v688_v7, %v801_v55  ;;  %v951_v54 = vsel %vm941_vm4, %v3373_v51, %v341_v17  ;;  %v74_v11 = vld [vmem:[%s5969_s0 + $0xd4] sm:$0xf] }
  0xa0   :  { %909 = vrot.lane.b32.xlu0 %v855_v30, %s3247_s9  ;;  %911 = vrot.lane.b32.xlu1 %v854_v14, %s3247_s9  ;;  %v1144_v14 = vsel %vm941_vm4, %v3605_v35, %v801_v55  ;;  %v856_v35 = vrot.slane %v3862_v32, 1  ;;  %v4032_v30 = vsel %vm251_vm0, 0, %v246_v23  ;;  %v542_v7 = vrot.slane %v540_v42, 7 }
  0xa2   :  { %v407_v26 = vpop.permute.xlu0 %406  ;;  %v409_v28 = vpop.permute.xlu1 %408 }
  0xa3   :  { %v1014_v47 = vsel %vm1004_vm5, %v949_v27, %v407_v26  ;;  %v1016_v44 = vsel %vm1004_vm5, %v951_v54, %v409_v28  ;;  %v543_v26 = vshll.u32 %v3862_v32, 16  ;;  %v113_v28 = vmax.bf16 %v73_v50, %v3897_v22  ;;  %v81_v50 = vld [vmem:[%s5969_s0 + $0xf0] sm:$0xf] }
  0xa4   :  { %635 = vrot.lane.b32.xlu0 %v536_v52, %s3248_s11  ;;  %637 = vrot.lane.b32.xlu1 %v539_v8, %s3248_s11 }
  0xa5   :  { %v545_v22 = vor.u32 %v543_v26, %v542_v7 }
  0xa6   :  { %v886_v56 = vpop.permute.xlu0 %885  ;;  %v888_v57 = vpop.permute.xlu1 %887 }
  0xa7   :  { %v1221_v36 = vsel %vm1004_vm5, %v1144_v14, %v886_v56  ;;  %v1223_v16 = vsel %vm1004_vm5, %v1146_v18, %v888_v57  ;;  %v114_v14 = vmax.bf16 %v74_v11, %v3902_v34  ;;  %v4056_v18 = vsel %vm251_vm0, %v246_v23, 0  ;;  %v77_v57 = vld [vmem:[%s5969_s0 + $0xe0] sm:$0xf]  ;;  %v82_v11 = vld [vmem:[%s5969_s0 + $0xf4] sm:$0xf] }
  0xa8   :  { %v1355_v39 = vrot.slane %v1221_v36, 1  ;;  %v1356_v58 = vrot.slane %v1223_v16, 1  ;;  %366 = vrot.lane.b32.xlu0 %v3764_v9, %s3246_s19  ;;  %368 = vrot.lane.b32.xlu1 %v3779_v33, %s3246_s19  ;;  %v858_v56 = vsel %vm828_vm1, %v856_v35, %v857_v0  ;;  %v78_v36 = vld [vmem:[%s5969_s0 + $0xe4] sm:$0xf]  ;;  %v145_v34 = vmax.bf16 %v113_v28, %v77_v57 }
  0xa9   :  { %v146_v23 = vmax.bf16 %v114_v14, %v78_v36  ;;  %v693_v35 = vshrl.u32 %v3470_v38, 16 }
  0xaa   :  { %v612_v10 = vpop.permute.xlu0 %611  ;;  %v614_v55 = vpop.permute.xlu1 %613  ;;  %v1357_v51 = vsel %vm828_vm1, %v1355_v39, %v1356_v58  ;;  %v546_v58 = vshll.u32 %v3886_v45, 16 }
  0xab   :  { %v1077_v17 = vsel %vm1067_vm6, %v1014_v47, %v612_v10  ;;  %v1079_v52 = vsel %vm1067_vm6, %v1016_v44, %v614_v55  ;;  %3050 = vmatprep.mubr.msk.bf16.mxu0 %vm1067_vm6, %v1357_v51  ;;  %v3016_v44 = vcombine.low %v145_v34, %v146_v23  ;;  %v117_v10 = vmax.bf16 %v81_v50, %v77_v57 }
  0xac   :  { %v1352_v8 = vrot.slane %v1077_v17, 1  ;;  %v1353_v21 = vrot.slane %v1079_v52, 1  ;;  %814 = vrot.lane.b32.xlu0 %v789_v24, %s3246_s19  ;;  %434 = vrot.lane.b32.xlu1 %v4032_v30, %s3247_s9  ;;  %v548_v47 = vsel %vm458_vm2, %v542_v7, %v546_v58  ;;  %v118_v55 = vmax.bf16 %v82_v11, %v78_v36 }
  0xad   :  { %v695_v51 = vor.u32 %v693_v35, %v3613_v41  ;;  %v247_v7 = vrot.slane %v3016_v44, 7  ;;  %v790_v35 = vrot.slane %v3973_v6, 7 }
  0xae   :  { %v343_v16 = vpop.permute.xlu0 %342  ;;  %v345_v24 = vpop.permute.xlu1 %344  ;;  %v1354_v39 = vsel %vm828_vm1, %v1352_v8, %v1353_v21  ;;  %v85_v8 = vld [vmem:[%s5969_s0 + $0x100] sm:$0xf] }
  0xaf   :  { %1721 = vmatmul.mubr.bf16.gmra.mrb[8].mxu0 %v1354_v39  ;;  %v149_v28 = vmax.bf16 %v117_v10, %v85_v8  ;;  %v953_v39 = vsel %vm941_vm4, %v3407_v1, %v343_v16  ;;  %v4111_v1 = vsel %vm251_vm0, 0, %v247_v7  ;;  %v700_v8 = vshrl.u32 %v3555_v12, 16 }
  0xb0   :  { %436 = vrot.lane.b32.xlu0 %v4056_v18, %s3247_s9  ;;  %913 = vrot.lane.b32.xlu1 %v858_v56, %s3247_s9 }
  0xb2   :  { %v803_v27 = vpop.permute.xlu0 %802  ;;  %v411_v54 = vpop.permute.xlu1 %410 }
  0xb3   :  { %v1149_v21 = vsel %vm941_vm4, %v3638_v61, %v803_v27  ;;  %v1151_v56 = vsel %vm941_vm4, %v695_v51, %v803_v27  ;;  %v1018_v61 = vsel %vm1004_vm5, %v953_v39, %v411_v54  ;;  %v955_v27 = vsel %vm941_vm4, %v3470_v38, %v345_v24 }
  0xb4   :  { %915 = vrot.lane.b32.xlu0 %v857_v0, %s3247_s9  ;;  %639 = vrot.lane.b32.xlu1 %v545_v22, %s3248_s11  ;;  %v86_v0 = vld [vmem:[%s5969_s0 + $0x104] sm:$0xf]  ;;  %v792_v38 = vrot.slane %v4111_v1, 7  ;;  %v549_v39 = vshrl.u32 %v3973_v6, 16 }
  0xb5   :  { %v150_v14 = vmax.bf16 %v118_v55, %v86_v0 }
  0xb6   :  { %v413_v17 = vpop.permute.xlu0 %412  ;;  %v890_v52 = vpop.permute.xlu1 %889 }
  0xb7   :  { %v1225_v41 = vsel %vm1004_vm5, %v1149_v21, %v890_v52  ;;  %v3018_v16 = vcombine.low %v149_v28, %v150_v14  ;;  %v1020_v54 = vsel %vm1004_vm5, %v955_v27, %v413_v17  ;;  %v4127_v21 = vsel %vm251_vm0, %v247_v7, 0 }
  0xb8   :  { %641 = vrot.lane.b32.xlu0 %v548_v47, %s3248_s11  ;;  %370 = vrot.lane.b32.xlu1 %v3823_v53, %s3246_s19  ;;  %v1361_v34 = vrot.slane %v1225_v41, 1  ;;  %v859_v28 = vrot.slane %v3973_v6, 1  ;;  %v860_v14 = vrot.slane %v3976_v19, 1 }
  0xb9   :  { %v249_v24 = vrot.slane %v3018_v16, 7 }
  0xba   :  { %v892_v57 = vpop.permute.xlu0 %891  ;;  %v616_v36 = vpop.permute.xlu1 %615 }
  0xbb   :  { %v1227_v22 = vsel %vm1004_vm5, %v1151_v56, %v892_v57  ;;  %v1081_v50 = vsel %vm1067_vm6, %v1018_v61, %v616_v36  ;;  %v4130_v41 = vsel %vm251_vm0, 0, %v249_v24  ;;  %v702_v56 = vor.u32 %v700_v8, %v3648_v3 }
  0xbc   :  { %v1362_v23 = vrot.slane %v1227_v22, 1  ;;  %372 = vrot.lane.b32.xlu0 %v3826_v63, %s3246_s19  ;;  %378 = vrot.lane.b32.xlu1 %v3973_v6, %s3246_s19  ;;  %v1358_v55 = vrot.slane %v1081_v50, 1  ;;  %v4141_v7 = vsel %vm251_vm0, %v249_v24, 0  ;;  %v861_v22 = vsel %vm828_vm1, %v859_v28, %v860_v14  ;;  %v75_v24 = vld [vmem:[%s5969_s0 + $0xd8] sm:$0xf] }
  0xbd   :  { %v865_v61 = vrot.slane %v4111_v1, 1 }
  0xbe   :  { %v618_v11 = vpop.permute.xlu0 %617  ;;  %v1363_v47 = vsel %vm828_vm1, %v1361_v34, %v1362_v23  ;;  %v347_v44 = vpop.permute.xlu1 %346  ;;  %v866_v34 = vrot.slane %v4127_v21, 1 }
  0xbf   :  { %v1083_v10 = vsel %vm1067_vm6, %v1020_v54, %v618_v11  ;;  %3051 = vmatprep.mubr.msk.bf16.mxu0 %vm1067_vm6, %v1363_v47  ;;  %v551_v54 = vrot.slane %v549_v39, 7  ;;  %v552_v11 = vshll.u32 %v3973_v6, 16 }
  0xc0   :  { %v1359_v51 = vrot.slane %v1083_v10, 1  ;;  %380 = vrot.lane.b32.xlu0 %v3976_v19, %s3246_s19  ;;  %816 = vrot.lane.b32.xlu1 %v790_v35, %s3246_s19 }
  0xc2   :  { %v349_v52 = vpop.permute.xlu0 %348  ;;  %v1360_v17 = vsel %vm828_vm1, %v1358_v55, %v1359_v51  ;;  %v805_v0 = vpop.permute.xlu1 %804  ;;  %v957_v55 = vsel %vm941_vm4, %v3481_v43, %v347_v44 }
  0xc3   :  { %1731 = vmatmul.mubr.bf16.gmra.mrb[12].mxu0 %v1360_v17  ;;  %v1154_v3 = vsel %vm941_vm4, %v3683_v59, %v805_v0  ;;  %v1156_v23 = vsel %vm941_vm4, %v702_v56, %v805_v0  ;;  %v567_v59 = vshrl.u32 %v4111_v1, 16  ;;  %v959_v51 = vsel %vm941_vm4, %v3555_v12, %v349_v52  ;;  %v76_v17 = vld [vmem:[%s5969_s0 + $0xdc] sm:$0xf] }
  0xc4   :  { %820 = vrot.lane.b32.xlu0 %v792_v38, %s3246_s19  ;;  %438 = vrot.lane.b32.xlu1 %v4111_v1, %s3247_s9  ;;  %v867_v38 = vsel %vm828_vm1, %v865_v61, %v866_v34  ;;  %v554_v52 = vor.u32 %v552_v11, %v551_v54 }
  0xc6   :  { %v415_v57 = vpop.permute.xlu0 %414  ;;  %v417_v36 = vpop.permute.xlu1 %416 }
  0xc7   :  { %v1022_v8 = vsel %vm1004_vm5, %v957_v55, %v415_v57  ;;  %v1024_v0 = vsel %vm1004_vm5, %v959_v51, %v417_v36  ;;  %v569_v57 = vrot.slane %v567_v59, 7  ;;  %v570_v36 = vshll.u32 %v4111_v1, 16 }
  0xc8   :  { %440 = vrot.lane.b32.xlu0 %v4127_v21, %s3247_s9  ;;  %446 = vrot.lane.b32.xlu1 %v4130_v41, %s3247_s9  ;;  %v573_v51 = vshll.u32 %v4127_v21, 16 }
  0xca   :  { %v894_v35 = vpop.permute.xlu0 %893  ;;  %v896_v27 = vpop.permute.xlu1 %895 }
  0xcb   :  { %v1229_v50 = vsel %vm1004_vm5, %v1154_v3, %v894_v35  ;;  %v1231_v16 = vsel %vm1004_vm5, %v1156_v23, %v896_v27  ;;  %v115_v3 = vmax.bf16 %v75_v24, %v3983_v48  ;;  %v116_v23 = vmax.bf16 %v76_v17, %v3988_v20  ;;  %v79_v27 = vld [vmem:[%s5969_s0 + $0xe8] sm:$0xf] }
  0xcc   :  { %v1367_v47 = vrot.slane %v1229_v50, 1  ;;  %v1368_v10 = vrot.slane %v1231_v16, 1  ;;  %448 = vrot.lane.b32.xlu0 %v4141_v7, %s3247_s9  ;;  %917 = vrot.lane.b32.xlu1 %v861_v22, %s3247_s9  ;;  %v555_v35 = vshll.u32 %v3976_v19, 16  ;;  %v572_v48 = vor.u32 %v570_v36, %v569_v57 }
  0xcd   :  { %v147_v20 = vmax.bf16 %v115_v3, %v79_v27 }
  0xce   :  { %v620_v28 = vpop.permute.xlu0 %619  ;;  %v622_v56 = vpop.permute.xlu1 %621  ;;  %v1369_v43 = vsel %vm828_vm1, %v1367_v47, %v1368_v10  ;;  %v557_v55 = vsel %vm458_vm2, %v551_v54, %v555_v35  ;;  %v575_v54 = vsel %vm458_vm2, %v569_v57, %v573_v51 }
  0xcf   :  { %v1085_v12 = vsel %vm1067_vm6, %v1022_v8, %v620_v28  ;;  %v1087_v44 = vsel %vm1067_vm6, %v1024_v0, %v622_v56  ;;  %3052 = vmatprep.mubr.msk.bf16.mxu0 %vm1067_vm6, %v1369_v43  ;;  %v84_v8 = vld [vmem:[%s5969_s0 + $0xfc] sm:$0xf] }
  0xd0   :  { %v1364_v22 = vrot.slane %v1085_v12, 1  ;;  %v1365_v61 = vrot.slane %v1087_v44, 1  ;;  %919 = vrot.lane.b32.xlu0 %v860_v14, %s3247_s9  ;;  %925 = vrot.lane.b32.xlu1 %v867_v38, %s3247_s9  ;;  %v80_v14 = vld [vmem:[%s5969_s0 + $0xec] sm:$0xf]  ;;  %v707_v38 = vshrl.u32 %v3659_v5, 16 }
  0xd1   :  { %v148_v10 = vmax.bf16 %v116_v23, %v80_v14  ;;  %v120_v56 = vmax.bf16 %v84_v8, %v80_v14 }
  0xd2   :  { %v351_v50 = vpop.permute.xlu0 %350  ;;  %v353_v16 = vpop.permute.xlu1 %352  ;;  %v1366_v47 = vsel %vm828_vm1, %v1364_v22, %v1365_v61  ;;  %v709_v43 = vor.u32 %v707_v38, %v3737_v46  ;;  %v88_v22 = vld [vmem:[%s5969_s0 + $0x10c] sm:$0xf]  ;;  %v791_v38 = vrot.slane %v4032_v30, 7 }
  0xd3   :  { %1741 = vmatmul.mubr.bf16.gmra.mrb[16].mxu0 %v1366_v47  ;;  %v3017_v0 = vcombine.low %v147_v20, %v148_v10  ;;  %v152_v23 = vmax.bf16 %v120_v56, %v88_v22 }
  0xd4   :  { %927 = vrot.lane.b32.xlu0 %v866_v34, %s3247_s9  ;;  %643 = vrot.lane.b32.xlu1 %v554_v52, %s3248_s11  ;;  %v83_v34 = vld [vmem:[%s5969_s0 + $0xf8] sm:$0xf]  ;;  %v87_v52 = vld [vmem:[%s5969_s0 + $0x108] sm:$0xf] }
  0xd5   :  { %v119_v28 = vmax.bf16 %v83_v34, %v79_v27  ;;  %v248_v57 = vrot.slane %v3017_v0, 7 }
  0xd6   :  { %v807_v24 = vpop.permute.xlu0 %806  ;;  %v419_v17 = vpop.permute.xlu1 %418 }
  0xd7   :  { %v1159_v61 = vsel %vm941_vm4, %v3744_v62, %v807_v24  ;;  %v151_v3 = vmax.bf16 %v119_v28, %v87_v52  ;;  %v1161_v27 = vsel %vm941_vm4, %v709_v43, %v807_v24  ;;  %v963_v24 = vsel %vm941_vm4, %v3659_v5, %v353_v16 }
  0xd8   :  { %645 = vrot.lane.b32.xlu0 %v557_v55, %s3248_s11  ;;  %651 = vrot.lane.b32.xlu1 %v572_v48, %s3248_s11  ;;  %v961_v48 = vsel %vm941_vm4, %v3628_v49, %v351_v50  ;;  %v4239_v49 = vsel %vm251_vm0, 0, %v248_v57  ;;  %v714_v52 = vshrl.u32 %v3715_v31, 16 }
  0xd9   :  { %v1026_v62 = vsel %vm1004_vm5, %v961_v48, %v419_v17  ;;  %v3019_v50 = vcombine.low %v151_v3, %v152_v23  ;;  %v793_v5 = vrot.slane %v4239_v49, 7  ;;  %v862_v3 = vrot.slane %v4032_v30, 1 }
  0xda   :  { %v421_v12 = vpop.permute.xlu0 %420  ;;  %v898_v44 = vpop.permute.xlu1 %897  ;;  %v863_v23 = vrot.slane %v4056_v18, 1  ;;  %v558_v48 = vshrl.u32 %v4032_v30, 16 }
  0xdb   :  { %v1233_v46 = vsel %vm1004_vm5, %v1159_v61, %v898_v44  ;;  %v1028_v17 = vsel %vm1004_vm5, %v963_v24, %v421_v12  ;;  %v250_v16 = vrot.slane %v3019_v50, 7  ;;  %v4255_v61 = vsel %vm251_vm0, %v248_v57, 0 }
  0xdc   :  { %653 = vrot.lane.b32.xlu0 %v575_v54, %s3248_s11  ;;  %374 = vrot.lane.b32.xlu1 %v3862_v32, %s3246_s19  ;;  %v1373_v10 = vrot.slane %v1233_v46, 1 }
  0xdd   :  { %v4258_v46 = vsel %vm251_vm0, 0, %v250_v16  ;;  %v4269_v57 = vsel %vm251_vm0, %v250_v16, 0 }
  0xde   :  { %v900_v14 = vpop.permute.xlu0 %899  ;;  %v624_v47 = vpop.permute.xlu1 %623 }
  0xdf   :  { %v1235_v20 = vsel %vm1004_vm5, %v1161_v27, %v900_v14  ;;  %v1089_v34 = vsel %vm1067_vm6, %v1026_v62, %v624_v47  ;;  %v716_v27 = vor.u32 %v714_v52, %v3783_v25  ;;  %v868_v62 = vrot.slane %v4239_v49, 1 }
  0xe0   :  { %v1374_v55 = vrot.slane %v1235_v20, 1  ;;  %376 = vrot.lane.b32.xlu0 %v3886_v45, %s3246_s19  ;;  %382 = vrot.lane.b32.xlu1 %v4032_v30, %s3246_s19  ;;  %v1370_v56 = vrot.slane %v1089_v34, 1  ;;  %v864_v20 = vsel %vm828_vm1, %v862_v3, %v863_v23 }
  0xe2   :  { %v626_v8 = vpop.permute.xlu0 %625  ;;  %v1375_v54 = vsel %vm828_vm1, %v1373_v10, %v1374_v55  ;;  %v355_v0 = vpop.permute.xlu1 %354  ;;  %v869_v10 = vrot.slane %v4255_v61, 1 }
  0xe3   :  { %v1091_v28 = vsel %vm1067_vm6, %v1028_v17, %v626_v8  ;;  %3053 = vmatprep.mubr.msk.bf16.mxu0 %vm1067_vm6, %v1375_v54  ;;  %v560_v17 = vrot.slane %v558_v48, 7  ;;  %v561_v8 = vshll.u32 %v4032_v30, 16 }
  0xe4   :  { %v1371_v43 = vrot.slane %v1091_v28, 1  ;;  %384 = vrot.lane.b32.xlu0 %v4056_v18, %s3246_s19  ;;  %818 = vrot.lane.b32.xlu1 %v791_v38, %s3246_s19 }
  0xe6   :  { %v357_v44 = vpop.permute.xlu0 %356  ;;  %v1372_v12 = vsel %vm828_vm1, %v1370_v56, %v1371_v43  ;;  %v809_v22 = vpop.permute.xlu1 %808  ;;  %v965_v56 = vsel %vm941_vm4, %v3712_v29, %v355_v0  ;;  %v563_v29 = vor.u32 %v561_v8, %v560_v17 }
  0xe7   :  { %1751 = vmatmul.mubr.bf16.gmra.mrb[20].mxu0 %v1372_v12  ;;  %v1164_v25 = vsel %vm941_vm4, %v3800_v40, %v809_v22  ;;  %v1166_v55 = vsel %vm941_vm4, %v716_v27, %v809_v22  ;;  %v576_v40 = vshrl.u32 %v4239_v49, 16  ;;  %v967_v43 = vsel %vm941_vm4, %v3715_v31, %v357_v44 }
  0xe8   :  { %822 = vrot.lane.b32.xlu0 %v793_v5, %s3246_s19  ;;  %442 = vrot.lane.b32.xlu1 %v4239_v49, %s3247_s9  ;;  %v870_v5 = vsel %vm828_vm1, %v868_v62, %v869_v10  ;;  %v564_v62 = vshll.u32 %v4056_v18, 16 }
  0xe9   :  { %v578_v44 = vrot.slane %v576_v40, 7 }
  0xea   :  { %v423_v14 = vpop.permute.xlu0 %422  ;;  %v425_v47 = vpop.permute.xlu1 %424 }
  0xeb   :  { %v1030_v16 = vsel %vm1004_vm5, %v965_v56, %v423_v14  ;;  %v1032_v12 = vsel %vm1004_vm5, %v967_v43, %v425_v47  ;;  %v579_v14 = vshll.u32 %v4239_v49, 16  ;;  %v717_v47 = vrot.slane %v525_v4, 1 }
  0xec   :  { %444 = vrot.lane.b32.xlu0 %v4255_v61, %s3247_s9  ;;  %450 = vrot.lane.b32.xlu1 %v4258_v46, %s3247_s9  ;;  %v719_v4 = vrot.slane %v528_v15, 1 }
  0xee   :  { %v902_v38 = vpop.permute.xlu0 %901  ;;  %v904_v24 = vpop.permute.xlu1 %903 }
  0xef   :  { %v1237_v34 = vsel %vm1004_vm5, %v1164_v25, %v902_v38  ;;  %v1239_v50 = vsel %vm1004_vm5, %v1166_v55, %v904_v24  ;;  %v6024_v24 = vshrl.u32 %v3764_v9, 16 }
  0xf0   :  { %v1379_v54 = vrot.slane %v1237_v34, 1  ;;  %v1380_v28 = vrot.slane %v1239_v50, 1  ;;  %452 = vrot.lane.b32.xlu0 %v4269_v57, %s3247_s9  ;;  %921 = vrot.lane.b32.xlu1 %v864_v20, %s3247_s9  ;;  %v566_v50 = vsel %vm458_vm2, %v560_v17, %v564_v62  ;;  %v585_v17 = vshrl.u32 %v4130_v41, 16 }
  0xf1   :  { %v718_v34 = vor.u32 %v717_v47, %v6024_v24 }
  0xf2   :  { %v628_v52 = vpop.permute.xlu0 %627  ;;  %v630_v22 = vpop.permute.xlu1 %629  ;;  %v1381_v3 = vsel %vm828_vm1, %v1379_v54, %v1380_v28  ;;  %v582_v54 = vshll.u32 %v4255_v61, 16  ;;  %v721_v28 = vshrl.u32 %v3779_v33, 16 }
  0xf3   :  { %v1093_v27 = vsel %vm1067_vm6, %v1030_v16, %v628_v52  ;;  %v1095_v20 = vsel %vm1067_vm6, %v1032_v12, %v630_v22  ;;  %3054 = vmatprep.mubr.msk.bf16.mxu0 %vm1067_vm6, %v1381_v3  ;;  %v720_v43 = vsel %vm667_vm3, %v718_v34, %v719_v4  ;;  %v794_v22 = vrot.slane %v4130_v41, 7 }
  0xf4   :  { %v1376_v31 = vrot.slane %v1093_v27, 1  ;;  %v1377_v0 = vrot.slane %v1095_v20, 1  ;;  %923 = vrot.lane.b32.xlu0 %v863_v23, %s3247_s9  ;;  %929 = vrot.lane.b32.xlu1 %v870_v5, %s3247_s9  ;;  %v581_v23 = vor.u32 %v579_v14, %v578_v44  ;;  %v584_v15 = vsel %vm458_vm2, %v578_v44, %v582_v54 }
  0xf5   :  { %v723_v5 = vor.u32 %v721_v28, %v719_v4  ;;  %v871_v27 = vrot.slane %v4130_v41, 1  ;;  %v872_v20 = vrot.slane %v4141_v7, 1  ;;  %v588_v4 = vshll.u32 %v4130_v41, 16 }
  0xf6   :  { %v359_v25 = vpop.permute.xlu0 %358  ;;  %v361_v55 = vpop.permute.xlu1 %360  ;;  %v1378_v38 = vsel %vm828_vm1, %v1376_v31, %v1377_v0 }
  0xf7   :  { %1761 = vmatmul.mubr.bf16.gmra.mrb[24].mxu0 %v1378_v38  ;;  %v969_v44 = vsel %vm941_vm4, %v3764_v9, %v359_v25  ;;  %v587_v38 = vrot.slane %v585_v17, 7  ;;  %v873_v25 = vsel %vm828_vm1, %v871_v27, %v872_v20 }
  0xf8   :  { %931 = vrot.lane.b32.xlu0 %v869_v10, %s3247_s9  ;;  %647 = vrot.lane.b32.xlu1 %v563_v29, %s3248_s11 }
  0xfa   :  { %v811_v10 = vpop.permute.xlu0 %810  ;;  %v427_v56 = vpop.permute.xlu1 %426 }
  0xfb   :  { %v1169_v52 = vsel %vm941_vm4, %v720_v43, %v811_v10  ;;  %v1171_v29 = vsel %vm941_vm4, %v723_v5, %v811_v10 }
  0xfc   :  { %649 = vrot.lane.b32.xlu0 %v566_v50, %s3248_s11  ;;  %655 = vrot.lane.b32.xlu1 %v581_v23, %s3248_s11  ;;  %v1034_v23 = vsel %vm1004_vm5, %v969_v44, %v427_v56  ;;  %v971_v50 = vsel %vm941_vm4, %v3779_v33, %v361_v55  ;;  %v590_v33 = vor.u32 %v588_v4, %v587_v38  ;;  %v591_v55 = vshll.u32 %v4141_v7, 16 }
  0xfe   :  { %v429_v16 = vpop.permute.xlu0 %428  ;;  %v906_v12 = vpop.permute.xlu1 %905 }
  0xff   :  { %v1241_v3 = vsel %vm1004_vm5, %v1169_v52, %v906_v12  ;;  %v1036_v28 = vsel %vm1004_vm5, %v971_v50, %v429_v16 }
 0x100   :  { %657 = vrot.lane.b32.xlu0 %v584_v15, %s3248_s11  ;;  %386 = vrot.lane.b32.xlu1 %v4111_v1, %s3246_s19  ;;  %v1385_v24 = vrot.slane %v1241_v3, 1  ;;  %v724_v15 = vrot.slane %v534_v37, 1  ;;  %v726_v37 = vrot.slane %v537_v2, 1  ;;  %v728_v3 = vshrl.u32 %v3826_v63, 16 }
 0x102   :  { %v908_v31 = vpop.permute.xlu0 %907  ;;  %v632_v0 = vpop.permute.xlu1 %631 }
 0x103   :  { %v1243_v47 = vsel %vm1004_vm5, %v1171_v29, %v908_v31  ;;  %v1097_v9 = vsel %vm1067_vm6, %v1034_v23, %v632_v0  ;;  %v593_v29 = vsel %vm458_vm2, %v587_v38, %v591_v55  ;;  %v730_v31 = vor.u32 %v728_v3, %v726_v37 }
 0x104   :  { %v1386_v34 = vrot.slane %v1243_v47, 1  ;;  %388 = vrot.lane.b32.xlu0 %v4127_v21, %s3246_s19  ;;  %824 = vrot.lane.b32.xlu1 %v794_v22, %s3246_s19  ;;  %v1382_v12 = vrot.slane %v1097_v9, 1  ;;  %v874_v47 = vrot.slane %v4258_v46, 1  ;;  %v875_v23 = vrot.slane %v4269_v57, 1 }
 0x106   :  { %v634_v10 = vpop.permute.xlu0 %633  ;;  %v1387_v56 = vsel %vm828_vm1, %v1385_v24, %v1386_v34  ;;  %v363_v43 = vpop.permute.xlu1 %362 }
 0x107   :  { %v1099_v5 = vsel %vm1067_vm6, %v1036_v28, %v634_v10  ;;  %3055 = vmatprep.mubr.msk.bf16.mxu0 %vm1067_vm6, %v1387_v56 }
 0x108   :  { %v1383_v52 = vrot.slane %v1099_v5, 1  ;;  %3185 = vrot.lane.b32.xlu0 %v3307_v13, %s3247_s9  ;;  %933 = vrot.lane.b32.xlu1 %v873_v25, %s3247_s9  ;;  %v725_v13 = vor.u32 %v724_v15, %v531_v60  ;;  %v795_v60 = vrot.slane %v4258_v46, 7  ;;  %v597_v15 = vshll.u32 %v4258_v46, 16 }
 0x109   :  { %v973_v5 = vsel %vm941_vm4, %v3823_v53, %v363_v43 }
 0x10a   :  { %v365_v16 = vpop.permute.xlu0 %364  ;;  %v1384_v22 = vsel %vm828_vm1, %v1382_v12, %v1383_v52  ;;  %v813_v27 = vpop.permute.xlu1 %812  ;;  %v727_v2 = vsel %vm667_vm3, %v725_v13, %v726_v37  ;;  %v876_v52 = vsel %vm828_vm1, %v874_v47, %v875_v23 }
 0x10b   :  { %1771 = vmatmul.mubr.bf16.gmra.mrb[28].mxu0 %v1384_v22  ;;  %v1174_v38 = vsel %vm941_vm4, %v727_v2, %v813_v27  ;;  %v1176_v24 = vsel %vm941_vm4, %v730_v31, %v813_v27  ;;  %v975_v12 = vsel %vm941_vm4, %v3826_v63, %v365_v16  ;;  %v731_v16 = vrot.slane %v543_v26, 1 }
 0x10c   :  { %935 = vrot.lane.b32.xlu0 %v872_v20, %s3247_s9  ;;  %659 = vrot.lane.b32.xlu1 %v590_v33, %s3248_s11  ;;  %v594_v20 = vshrl.u32 %v4258_v46, 16  ;;  %v600_v33 = vshll.u32 %v4269_v57, 16  ;;  %v735_v26 = vshrl.u32 %v3886_v45, 16 }
 0x10d   :  { %v732_v47 = vor.u32 %v731_v16, %v540_v42 }
 0x10e   :  { %v431_v0 = vpop.permute.xlu0 %430  ;;  %v433_v44 = vpop.permute.xlu1 %432  ;;  %v596_v56 = vrot.slane %v594_v20, 7 }
 0x10f   :  { %v1038_v22 = vsel %vm1004_vm5, %v973_v5, %v431_v0  ;;  %v1040_v37 = vsel %vm1004_vm5, %v975_v12, %v433_v44 }
 0x110   :  { %661 = vrot.lane.b32.xlu0 %v593_v29, %s3248_s11  ;;  %390 = vrot.lane.b32.xlu1 %v4239_v49, %s3246_s19  ;;  %v599_v43 = vor.u32 %v597_v15, %v596_v56  ;;  %v602_v0 = vsel %vm458_vm2, %v596_v56, %v600_v33 }
 0x112   :  { %v910_v34 = vpop.permute.xlu0 %909  ;;  %v912_v50 = vpop.permute.xlu1 %911 }
 0x113   :  { %v1245_v9 = vsel %vm1004_vm5, %v1174_v38, %v910_v34  ;;  %v1247_v25 = vsel %vm1004_vm5, %v1176_v24, %v912_v50 }
 0x114   :  { %v1391_v28 = vrot.slane %v1245_v9, 1  ;;  %v1392_v10 = vrot.slane %v1247_v25, 1  ;;  %392 = vrot.lane.b32.xlu0 %v4255_v61, %s3246_s19  ;;  %826 = vrot.lane.b32.xlu1 %v795_v60, %s3246_s19 }
 0x116   :  { %v636_v3 = vpop.permute.xlu0 %635  ;;  %v638_v27 = vpop.permute.xlu1 %637  ;;  %v1393_v13 = vsel %vm828_vm1, %v1391_v28, %v1392_v10 }
 0x117   :  { %v1101_v29 = vsel %vm1067_vm6, %v1038_v22, %v636_v3  ;;  %v1103_v31 = vsel %vm1067_vm6, %v1040_v37, %v638_v27  ;;  %3056 = vmatprep.mubr.msk.bf16.mxu0 %vm1067_vm6, %v1393_v13 }
 0x118   :  { %v1388_v53 = vrot.slane %v1101_v29, 1  ;;  %v1389_v63 = vrot.slane %v1103_v31, 1  ;;  %937 = vrot.lane.b32.xlu0 %v876_v52, %s3247_s9  ;;  %939 = vrot.lane.b32.xlu1 %v875_v23, %s3247_s9  ;;  %v733_v23 = vrot.slane %v546_v58, 1 }
 0x11a   :  { %v367_v44 = vpop.permute.xlu0 %366  ;;  %v369_v2 = vpop.permute.xlu1 %368  ;;  %v1390_v60 = vsel %vm828_vm1, %v1388_v53, %v1389_v63  ;;  %v734_v34 = vsel %vm667_vm3, %v732_v47, %v733_v23  ;;  %v737_v50 = vor.u32 %v735_v26, %v733_v23 }
 0x11b   :  { %1781 = vmatmul.mubr.bf16.gmra.mrb[32].mxu0 %v1390_v60  ;;  %v977_v58 = vsel %vm941_vm4, %v3862_v32, %v367_v44  ;;  %v979_v3 = vsel %vm941_vm4, %v3886_v45, %v369_v2  ;;  %v738_v60 = vrot.slane %v552_v11, 1 }
 0x11c   :  { %663 = vrot.lane.b32.xlu0 %v599_v43, %s3248_s11  ;;  %665 = vrot.lane.b32.xlu1 %v602_v0, %s3248_s11 }
 0x11d   :  { %v739_v26 = vor.u32 %v738_v60, %v549_v39  ;;  %v756_v39 = vshrl.u32 %v4127_v21, 16 }
 0x11e   :  { %v815_v38 = vpop.permute.xlu0 %814  ;;  %v435_v24 = vpop.permute.xlu1 %434 }
 0x11f   :  { %v1179_v28 = vsel %vm941_vm4, %v734_v34, %v815_v38  ;;  %v1181_v56 = vsel %vm941_vm4, %v737_v50, %v815_v38  ;;  %v1042_v52 = vsel %vm1004_vm5, %v977_v58, %v435_v24  ;;  %v740_v38 = vrot.slane %v555_v35, 1 }
 0x120   :  { %v752_v24 = vrot.slane %v570_v36, 1  ;;  %v742_v34 = vshrl.u32 %v3976_v19, 16 }
 0x122   :  { %v437_v9 = vpop.permute.xlu0 %436  ;;  %v914_v25 = vpop.permute.xlu1 %913  ;;  %v753_v11 = vor.u32 %v752_v24, %v567_v59 }
 0x123   :  { %v1249_v10 = vsel %vm1004_vm5, %v1179_v28, %v914_v25  ;;  %v1044_v13 = vsel %vm1004_vm5, %v979_v3, %v437_v9  ;;  %v741_v25 = vsel %vm667_vm3, %v739_v26, %v740_v38  ;;  %v754_v28 = vrot.slane %v573_v51, 1 }
 0x124   :  { %v1397_v22 = vrot.slane %v1249_v10, 1  ;;  %v744_v10 = vor.u32 %v742_v34, %v740_v38 }
 0x125   :  { %v755_v36 = vsel %vm667_vm3, %v753_v11, %v754_v28 }
 0x126   :  { %v916_v5 = vpop.permute.xlu0 %915  ;;  %v640_v42 = vpop.permute.xlu1 %639 }
 0x127   :  { %v1251_v12 = vsel %vm1004_vm5, %v1181_v56, %v916_v5  ;;  %v1105_v27 = vsel %vm1067_vm6, %v1042_v52, %v640_v42 }
 0x128   :  { %v1398_v37 = vrot.slane %v1251_v12, 1  ;;  %v1394_v32 = vrot.slane %v1105_v27, 1  ;;  %v758_v12 = vor.u32 %v756_v39, %v754_v28 }
 0x12a   :  { %v642_v29 = vpop.permute.xlu0 %641  ;;  %v1399_v31 = vsel %vm828_vm1, %v1397_v22, %v1398_v37  ;;  %v371_v53 = vpop.permute.xlu1 %370 }
 0x12b   :  { %v1107_v63 = vsel %vm1067_vm6, %v1044_v13, %v642_v29  ;;  %3057 = vmatprep.mubr.msk.bf16.mxu0 %vm1067_vm6, %v1399_v31 }
 0x12c   :  { %v1395_v43 = vrot.slane %v1107_v63, 1 }
 0x12e   :  { %v373_v16 = vpop.permute.xlu0 %372  ;;  %v1396_v0 = vsel %vm828_vm1, %v1394_v32, %v1395_v43  ;;  %v379_v44 = vpop.permute.xlu1 %378  ;;  %v981_v32 = vsel %vm941_vm4, %v3973_v6, %v371_v53 }
 0x12f   :  { %1791 = vmatmul.mubr.bf16.gmra.mrb[36].mxu0 %v1396_v0  ;;  %v983_v26 = vsel %vm941_vm4, %v3976_v19, %v373_v16  ;;  %v989_v6 = vsel %vm941_vm4, %v4111_v1, %v379_v44 }
 0x132   :  { %v381_v45 = vpop.permute.xlu0 %380  ;;  %v817_v2 = vpop.permute.xlu1 %816 }
 0x133   :  { %v1184_v5 = vsel %vm941_vm4, %v741_v25, %v817_v2  ;;  %v1186_v58 = vsel %vm941_vm4, %v744_v10, %v817_v2  ;;  %v991_v19 = vsel %vm941_vm4, %v4127_v21, %v381_v45  ;;  %v745_v45 = vrot.slane %v561_v8, 1 }
 0x136   :  { %v821_v47 = vpop.permute.xlu0 %820  ;;  %v439_v23 = vpop.permute.xlu1 %438 }
 0x137   :  { %v1194_v51 = vsel %vm941_vm4, %v755_v36, %v821_v47  ;;  %v1196_v13 = vsel %vm941_vm4, %v758_v12, %v821_v47  ;;  %v1046_v0 = vsel %vm1004_vm5, %v981_v32, %v439_v23 }
 0x13a   :  { %v441_v50 = vpop.permute.xlu0 %440  ;;  %v447_v9 = vpop.permute.xlu1 %446 }
 0x13b   :  { %v1048_v38 = vsel %vm1004_vm5, %v983_v26, %v441_v50  ;;  %v1054_v23 = vsel %vm1004_vm5, %v989_v6, %v447_v9 }
 0x13e   :  { %v449_v56 = vpop.permute.xlu0 %448  ;;  %v918_v35 = vpop.permute.xlu1 %917 }
 0x13f   :  { %v1253_v42 = vsel %vm1004_vm5, %v1184_v5, %v918_v35  ;;  %v1056_v50 = vsel %vm1004_vm5, %v991_v19, %v449_v56 }
 0x140   :  { %v1403_v37 = vrot.slane %v1253_v42, 1 }
 0x142   :  { %v920_v52 = vpop.permute.xlu0 %919  ;;  %v926_v22 = vpop.permute.xlu1 %925 }
 0x143   :  { %v1255_v59 = vsel %vm1004_vm5, %v1186_v58, %v920_v52  ;;  %v1261_v27 = vsel %vm1004_vm5, %v1194_v51, %v926_v22  ;;  %v746_v52 = vor.u32 %v745_v45, %v558_v48  ;;  %v747_v22 = vrot.slane %v564_v62, 1 }
 0x144   :  { %v1404_v3 = vrot.slane %v1255_v59, 1  ;;  %v1415_v2 = vrot.slane %v1261_v27, 1  ;;  %v759_v59 = vrot.slane %v579_v14, 1  ;;  %v749_v51 = vshrl.u32 %v4056_v18, 16 }
 0x145   :  { %v748_v27 = vsel %vm667_vm3, %v746_v52, %v747_v22  ;;  %v763_v48 = vshrl.u32 %v4255_v61, 16 }
 0x146   :  { %v928_v29 = vpop.permute.xlu0 %927  ;;  %v1405_v31 = vsel %vm828_vm1, %v1403_v37, %v1404_v3  ;;  %v644_v63 = vpop.permute.xlu1 %643  ;;  %v760_v8 = vor.u32 %v759_v59, %v576_v40 }
 0x147   :  { %v1263_v43 = vsel %vm1004_vm5, %v1196_v13, %v928_v29  ;;  %3058 = vmatprep.mubr.msk.bf16.mxu0 %vm1067_vm6, %v1405_v31  ;;  %v1109_v47 = vsel %vm1067_vm6, %v1046_v0, %v644_v63  ;;  %v761_v13 = vrot.slane %v582_v54, 1  ;;  %v751_v29 = vor.u32 %v749_v51, %v747_v22 }
 0x148   :  { %v1416_v60 = vrot.slane %v1263_v43, 1  ;;  %v1400_v11 = vrot.slane %v1109_v47, 1 }
 0x149   :  { %v762_v14 = vsel %vm667_vm3, %v760_v8, %v761_v13  ;;  %v765_v0 = vor.u32 %v763_v48, %v761_v13 }
 0x14a   :  { %v646_v24 = vpop.permute.xlu0 %645  ;;  %v1417_v34 = vsel %vm828_vm1, %v1415_v2, %v1416_v60  ;;  %v652_v25 = vpop.permute.xlu1 %651 }
 0x14b   :  { %v1111_v53 = vsel %vm1067_vm6, %v1048_v38, %v646_v24  ;;  %3060 = vmatprep.mubr.msk.bf16.mxu1 %vm1067_vm6, %v1417_v34  ;;  %v1117_v16 = vsel %vm1067_vm6, %v1054_v23, %v652_v25 }
 0x14c   :  { %v1401_v28 = vrot.slane %v1111_v53, 1  ;;  %v1412_v44 = vrot.slane %v1117_v16, 1 }
 0x14e   :  { %v654_v10 = vpop.permute.xlu0 %653  ;;  %v1402_v39 = vsel %vm828_vm1, %v1400_v11, %v1401_v28  ;;  %v375_v35 = vpop.permute.xlu1 %374 }
 0x14f   :  { %v1119_v1 = vsel %vm1067_vm6, %v1056_v50, %v654_v10  ;;  %1801 = vmatmul.mubr.bf16.gmra.mrb[40].mxu0 %v1402_v39  ;;  %v985_v19 = vsel %vm941_vm4, %v4032_v30, %v375_v35 }
 0x150   :  { %v1413_v5 = vrot.slane %v1119_v1, 1 }
 0x152   :  { %v377_v36 = vpop.permute.xlu0 %376  ;;  %v1414_v9 = vsel %vm828_vm1, %v1412_v44, %v1413_v5  ;;  %v383_v42 = vpop.permute.xlu1 %382 }
 0x153   :  { %1821 = vmatmul.mubr.bf16.vlgmr.msra.gmra.mrb[0].mxu1 %v1414_v9  ;;  %v993_v52 = vsel %vm941_vm4, %v4239_v49, %v383_v42 }
 0x156   :  { %v385_v58 = vpop.permute.xlu0 %384  ;;  %v819_v21 = vpop.permute.xlu1 %818 }
 0x157   :  { %v1189_v63 = vsel %vm941_vm4, %v748_v27, %v819_v21  ;;  %v1191_v43 = vsel %vm941_vm4, %v751_v29, %v819_v21  ;;  %v987_v21 = vsel %vm941_vm4, %v4056_v18, %v377_v36  ;;  %v995_v18 = vsel %vm941_vm4, %v4255_v61, %v385_v58 }
 0x15a   :  { %v823_v56 = vpop.permute.xlu0 %822  ;;  %v443_v12 = vpop.permute.xlu1 %442 }
 0x15b   :  { %v1199_v54 = vsel %vm941_vm4, %v762_v14, %v823_v56  ;;  %v1201_v6 = vsel %vm941_vm4, %v765_v0, %v823_v56  ;;  %v1050_v1 = vsel %vm1004_vm5, %v985_v19, %v443_v12  ;;  %v768_v0 = vrot.slane %v591_v55, 1 }
 0x15c   :  { %v773_v19 = vrot.slane %v597_v15, 1 }
 0x15e   :  { %v445_v37 = vpop.permute.xlu0 %444  ;;  %v451_v3 = vpop.permute.xlu1 %450  ;;  %v774_v15 = vor.u32 %v773_v19, %v594_v20  ;;  %v777_v20 = vshrl.u32 %v4269_v57, 16 }
 0x15f   :  { %v1052_v35 = vsel %vm1004_vm5, %v987_v21, %v445_v37  ;;  %v1058_v59 = vsel %vm1004_vm5, %v993_v52, %v451_v3  ;;  %v766_v37 = vrot.slane %v588_v4, 1 }
 0x162   :  { %v453_v31 = vpop.permute.xlu0 %452  ;;  %v922_v62 = vpop.permute.xlu1 %921 }
 0x163   :  { %v1257_v32 = vsel %vm1004_vm5, %v1189_v63, %v922_v62  ;;  %v1060_v8 = vsel %vm1004_vm5, %v995_v18, %v453_v31 }
 0x164   :  { %v1409_v47 = vrot.slane %v1257_v32, 1 }
 0x166   :  { %v924_v2 = vpop.permute.xlu0 %923  ;;  %v930_v60 = vpop.permute.xlu1 %929 }
 0x167   :  { %v1259_v40 = vsel %vm1004_vm5, %v1191_v43, %v924_v2  ;;  %v4503_v26 = vpop.f32.mrb[0].mxu0  ;;  %v1265_v34 = vsel %vm1004_vm5, %v1199_v54, %v930_v60  ;;  %v767_v43 = vor.u32 %v766_v37, %v585_v17  ;;  %v770_v54 = vshrl.u32 %v4141_v7, 16 }
 0x168   :  { %v1410_v38 = vrot.slane %v1259_v40, 1  ;;  %v4506_v24 = vpop.f32.mrb[1].mxu0  ;;  %v1421_v44 = vrot.slane %v1265_v34, 1 }
 0x169   :  { %v4509_v25 = vpop.f32.mrb[2].mxu0  ;;  %v1898_v16 = vsel %vm941_vm4, %v4506_v24, 0.0  ;;  %v769_v34 = vsel %vm667_vm3, %v767_v43, %v768_v0 }
 0x16a   :  { %v1861_v53 = vadd.f32 %v4509_v25, %v4503_v26  ;;  %v932_v23 = vpop.permute.xlu0 %931  ;;  %v4514_v11 = vpop.f32.mrb[3].mxu0  ;;  %v1411_v28 = vsel %vm828_vm1, %v1409_v47, %v1410_v38 }
 0x16b   :  { %v1267_v50 = vsel %vm1004_vm5, %v1201_v6, %v932_v23  ;;  %v1899_v10 = vsel %vm941_vm4, %v4514_v11, 0.0  ;;  %3059 = vmatprep.mubr.msk.bf16.mxu0 %vm1067_vm6, %v1411_v28  ;;  %v648_v39 = vpop.permute.xlu1 %647  ;;  %v772_v6 = vor.u32 %v770_v54, %v768_v0 }
 0x16c   :  { %v1422_v5 = vrot.slane %v1267_v50, 1  ;;  %v1900_v9 = vadd.f32 %v1899_v10, %v1898_v16  ;;  %v1113_v30 = vsel %vm1067_vm6, %v1050_v1, %v648_v39 }
 0x16d   :  { %v1406_v51 = vrot.slane %v1113_v30, 1 }
 0x16e   :  { %v650_v45 = vpop.permute.xlu0 %649  ;;  %v1423_v56 = vsel %vm828_vm1, %v1421_v44, %v1422_v5 }
 0x16f   :  { %v1115_v22 = vsel %vm1067_vm6, %v1052_v35, %v650_v45  ;;  %3061 = vmatprep.mubr.msk.bf16.mxu1 %vm1067_vm6, %v1423_v56  ;;  %v656_v12 = vpop.permute.xlu1 %655  ;;  %v775_v45 = vrot.slane %v600_v33, 1 }
 0x170   :  { %v1407_v27 = vrot.slane %v1115_v22, 1  ;;  %v1121_v36 = vsel %vm1067_vm6, %v1058_v59, %v656_v12 }
 0x171   :  { %v1418_v58 = vrot.slane %v1121_v36, 1 }
 0x172   :  { %v4542_v49 = vpop.f32.mrb[4].mxu0  ;;  %v658_v42 = vpop.permute.xlu0 %657  ;;  %v1408_v13 = vsel %vm828_vm1, %v1406_v51, %v1407_v27 }
 0x173   :  { %v1862_v29 = vadd.f32 %v1861_v53, %v4542_v49  ;;  %v1123_v3 = vsel %vm1067_vm6, %v1060_v8, %v658_v42  ;;  %v4547_v48 = vpop.f32.mrb[5].mxu0  ;;  %1811 = vmatmul.mubr.bf16.gmra.mrb[44].mxu0 %v1408_v13  ;;  %v387_v61 = vpop.permute.xlu1 %386  ;;  %v776_v13 = vsel %vm667_vm3, %v774_v15, %v775_v45 }
 0x174   :  { %v1419_v62 = vrot.slane %v1123_v3, 1  ;;  %v1901_v4 = vsel %vm941_vm4, %v4547_v48, 0.0  ;;  %v4551_v63 = vpop.f32.mrb[6].mxu0  ;;  %v997_v39 = vsel %vm941_vm4, %v4130_v41, %v387_v61 }
 0x175   :  { %v1902_v31 = vadd.f32 %v1901_v4, %v1900_v9  ;;  %v1863_v14 = vadd.f32 %v1862_v29, %v4551_v63  ;;  %v4554_v32 = vpop.f32.mrb[7].mxu0 }
 0x176   :  { %v1903_v2 = vsel %vm941_vm4, %v4554_v32, 0.0  ;;  %v389_v60 = vpop.permute.xlu0 %388  ;;  %v1420_v40 = vsel %vm828_vm1, %v1418_v58, %v1419_v62  ;;  %v779_v62 = vor.u32 %v777_v20, %v775_v45 }
 0x177   :  { %v1904_v47 = vadd.f32 %v1903_v2, %v1902_v31  ;;  %1831 = vmatmul.mubr.bf16.gmra.mrb[4].mxu1 %v1420_v40  ;;  %v825_v38 = vpop.permute.xlu1 %824  ;;  %v999_v30 = vsel %vm941_vm4, %v4141_v7, %v389_v60 }
 0x178   :  { %v1204_v17 = vsel %vm941_vm4, %v769_v34, %v825_v38  ;;  %v1206_v16 = vsel %vm941_vm4, %v772_v6, %v825_v38 }
 0x17a   :  { %v3186_v53 = vpop.permute.xlu0 %3185 }
 0x17b   :  { %v934_v23 = vpop.permute.xlu1 %933  ;;  %v3187_v28 = vunpack.i.l.bf16 %v3186_v53  ;;  %v3188_v50 = vunpack.i.h.bf16 %v3186_v53 }
 0x17c   :  { %v1269_v55 = vsel %vm1004_vm5, %v1204_v17, %v934_v23 }
 0x17d   :  { %v1427_v5 = vrot.slane %v1269_v55, 1  ;;  %v1062_v21 = vsel %vm1004_vm5, %v997_v39, %v3187_v28  ;;  %v1064_v41 = vsel %vm1004_vm5, %v999_v30, %v3188_v50 }
 0x17e   :  { %v936_v10 = vpop.permute.xlu0 %935 }
 0x17f   :  { %v1271_v1 = vsel %vm1004_vm5, %v1206_v16, %v936_v10  ;;  %v660_v44 = vpop.permute.xlu1 %659 }
 0x180   :  { %v1428_v9 = vrot.slane %v1271_v1, 1  ;;  %v1125_v35 = vsel %vm1067_vm6, %v1062_v21, %v660_v44 }
 0x181   :  { %v1424_v27 = vrot.slane %v1125_v35, 1 }
 0x182   :  { %v662_v56 = vpop.permute.xlu0 %661  ;;  %v1429_v52 = vsel %vm828_vm1, %v1427_v5, %v1428_v9  ;;  %v4583_v22 = vpop.f32.mrb[8].mxu0 }
 0x183   :  { %v1127_v12 = vsel %vm1067_vm6, %v1064_v41, %v662_v56  ;;  %3062 = vmatprep.mubr.msk.bf16.mxu1 %vm1067_vm6, %v1429_v52  ;;  %v391_v7 = vpop.permute.xlu1 %390  ;;  %v1864_v59 = vadd.f32 %v1863_v14, %v4583_v22  ;;  %v4588_v51 = vpop.f32.mrb[9].mxu0 }
 0x184   :  { %v1425_v33 = vrot.slane %v1127_v12, 1  ;;  %v1905_v18 = vsel %vm941_vm4, %v4588_v51, 0.0  ;;  %v4593_v36 = vpop.f32.mrb[10].mxu0  ;;  %v1001_v43 = vsel %vm941_vm4, %v4258_v46, %v391_v7 }
 0x185   :  { %v1906_v37 = vadd.f32 %v1905_v18, %v1904_v47  ;;  %v1865_v8 = vadd.f32 %v1864_v59, %v4593_v36  ;;  %v4596_v42 = vpop.f32.mrb[11].mxu0  ;;  %v1065_v6 = vsel %vm1004_vm5, %v1001_v43, %v3187_v28 }
 0x186   :  { %v393_v29 = vpop.permute.xlu0 %392  ;;  %v1907_v3 = vsel %vm941_vm4, %v4596_v42, 0.0  ;;  %v1426_v61 = vsel %vm828_vm1, %v1424_v27, %v1425_v33 }
 0x187   :  { %v1908_v58 = vadd.f32 %v1907_v3, %v1906_v37  ;;  %1841 = vmatmul.mubr.bf16.gmra.mrb[8].mxu1 %v1426_v61  ;;  %v827_v4 = vpop.permute.xlu1 %826  ;;  %v1003_v40 = vsel %vm941_vm4, %v4269_v57, %v393_v29 }
 0x188   :  { %v1209_v31 = vsel %vm941_vm4, %v776_v13, %v827_v4  ;;  %v1211_v0 = vsel %vm941_vm4, %v779_v62, %v827_v4  ;;  %v1066_v46 = vsel %vm1004_vm5, %v1003_v40, %v3188_v50 }
 0x18a   :  { %v938_v14 = vpop.permute.xlu0 %937 }
 0x18b   :  { %v1273_v2 = vsel %vm1004_vm5, %v1209_v31, %v938_v14  ;;  %v940_v60 = vpop.permute.xlu1 %939 }
 0x18c   :  { %v1275_v54 = vsel %vm1004_vm5, %v1211_v0, %v940_v60  ;;  %v1433_v47 = vrot.slane %v1273_v2, 1 }
 0x18d   :  { %v1434_v38 = vrot.slane %v1275_v54, 1 }
 0x18e   :  { %v664_v34 = vpop.permute.xlu0 %663 }
 0x18f   :  { %v1129_v53 = vsel %vm1067_vm6, %v1065_v6, %v664_v34  ;;  %v666_v23 = vpop.permute.xlu1 %665  ;;  %v1435_v17 = vsel %vm828_vm1, %v1433_v47, %v1434_v38 }
 0x190   :  { %v1131_v55 = vsel %vm1067_vm6, %v1066_v46, %v666_v23  ;;  %3063 = vmatprep.mubr.msk.bf16.mxu1 %vm1067_vm6, %v1435_v17  ;;  %v1430_v19 = vrot.slane %v1129_v53, 1 }
 0x191   :  { %v1431_v57 = vrot.slane %v1131_v55, 1 }
 0x193   :  { %v1432_v16 = vsel %vm828_vm1, %v1430_v19, %v1431_v57 }
 0x194   :  { %1851 = vmatmul.mubr.bf16.gmra.mrb[12].mxu1 %v1432_v16 }
 0x196   :  { %v4617_v10 = vpop.f32.mrb[12].mxu0 }
 0x197   :  { %v1866_v28 = vadd.f32 %v1865_v8, %v4617_v10  ;;  %v4620_v39 = vpop.f32.mrb[13].mxu0 }
 0x198   :  { %v1909_v50 = vsel %vm941_vm4, %v4620_v39, 0.0  ;;  %v4624_v1 = vpop.f32.mrb[14].mxu0 }
 0x199   :  { %v1910_v44 = vadd.f32 %v1909_v50, %v1908_v58  ;;  %v1867_v5 = vadd.f32 %v1866_v28, %v4624_v1  ;;  %v4627_v9 = vpop.f32.mrb[15].mxu0 }
 0x19a   :  { %v1911_v21 = vsel %vm941_vm4, %v4627_v9, 0.0 }
 0x19b   :  { %v1912_v30 = vadd.f32 %v1911_v21, %v1910_v44 }
 0x1a6   :  { %v4631_v35 = vpop.f32.mrb[16].mxu0 }
 0x1a7   :  { %v1868_v15 = vadd.f32 %v1867_v5, %v4631_v35  ;;  %v4634_v45 = vpop.f32.mrb[17].mxu0 }
 0x1a8   :  { %v1913_v56 = vsel %vm941_vm4, %v4634_v45, 0.0  ;;  %v4638_v41 = vpop.f32.mrb[18].mxu0 }
 0x1a9   :  { %v1914_v52 = vadd.f32 %v1913_v56, %v1912_v30  ;;  %v1869_v12 = vadd.f32 %v1868_v15, %v4638_v41  ;;  %v4641_v7 = vpop.f32.mrb[19].mxu0 }
 0x1aa   :  { %v1915_v59 = vsel %vm941_vm4, %v4641_v7, 0.0 }
 0x1ab   :  { %v1916_v20 = vadd.f32 %v1915_v59, %v1914_v52 }
 0x1ba   :  { %v4645_v27 = vpop.f32.mrb[20].mxu0 }
 0x1bb   :  { %v1870_v33 = vadd.f32 %v1869_v12, %v4645_v27  ;;  %v4648_v18 = vpop.f32.mrb[21].mxu0 }
 0x1bc   :  { %v1917_v37 = vsel %vm941_vm4, %v4648_v18, 0.0  ;;  %v4652_v8 = vpop.f32.mrb[22].mxu0 }
 0x1bd   :  { %v1918_v13 = vadd.f32 %v1917_v37, %v1916_v20  ;;  %v1871_v29 = vadd.f32 %v1870_v33, %v4652_v8  ;;  %v4655_v3 = vpop.f32.mrb[23].mxu0 }
 0x1be   :  { %v1919_v61 = vsel %vm941_vm4, %v4655_v3, 0.0 }
 0x1bf   :  { %v1920_v58 = vadd.f32 %v1919_v61, %v1918_v13 }
 0x1ca   :  { %v4659_v62 = vpop.f32.mrb[24].mxu0 }
 0x1cb   :  { %v1872_v4 = vadd.f32 %v1871_v29, %v4659_v62  ;;  %v4662_v31 = vpop.f32.mrb[25].mxu0 }
 0x1cc   :  { %v1921_v14 = vsel %vm941_vm4, %v4662_v31, 0.0  ;;  %v4666_v43 = vpop.f32.mrb[26].mxu0 }
 0x1cd   :  { %v1922_v0 = vadd.f32 %v1921_v14, %v1920_v58  ;;  %v1873_v2 = vadd.f32 %v1872_v4, %v4666_v43  ;;  %v4669_v60 = vpop.f32.mrb[27].mxu0 }
 0x1ce   :  { %v1923_v40 = vsel %vm941_vm4, %v4669_v60, 0.0 }
 0x1cf   :  { %v1924_v54 = vadd.f32 %v1923_v40, %v1922_v0 }
 0x1de   :  { %v4673_v47 = vpop.f32.mrb[28].mxu0 }
 0x1df   :  { %v1874_v38 = vadd.f32 %v1873_v2, %v4673_v47  ;;  %v4676_v34 = vpop.f32.mrb[29].mxu0 }
 0x1e0   :  { %6025 = vst [vmem:[#allocation2_spill] sm:$0xff] %v4676_v34  ;;  %v1925_v6 = vsel %vm941_vm4, %v4676_v34, 0.0  ;;  %v4680_v53 = vpop.f32.mrb[30].mxu0 }
 0x1e1   :  { %v1926_v23 = vadd.f32 %v1925_v6, %v1924_v54  ;;  %v1875_v46 = vadd.f32 %v1874_v38, %v4680_v53  ;;  %v4683_v17 = vpop.f32.mrb[31].mxu0 }
 0x1e2   :  { %6026 = vst [vmem:[#allocation3_spill] sm:$0xff] %v4683_v17  ;;  %v1927_v55 = vsel %vm941_vm4, %v4683_v17, 0.0 }
 0x1e3   :  { %v1928_v19 = vadd.f32 %v1927_v55, %v1926_v23 }
 0x1ee   :  { %v4687_v57 = vpop.f32.mrb[32].mxu0 }
 0x1ef   :  { %v1876_v16 = vadd.f32 %v1875_v46, %v4687_v57  ;;  %v4690_v28 = vpop.f32.mrb[33].mxu0 }
 0x1f0   :  { %6027 = vst [vmem:[#allocation4_spill] sm:$0xff] %v4690_v28  ;;  %v1929_v50 = vsel %vm941_vm4, %v4690_v28, 0.0  ;;  %v4694_v44 = vpop.f32.mrb[34].mxu0 }
 0x1f1   :  { %v1930_v5 = vadd.f32 %v1929_v50, %v1928_v19  ;;  %v1877_v21 = vadd.f32 %v1876_v16, %v4694_v44  ;;  %v4697_v30 = vpop.f32.mrb[35].mxu0 }
 0x1f2   :  { %6028 = vst [vmem:[#allocation5_spill] sm:$0xff] %v4697_v30  ;;  %v1931_v15 = vsel %vm941_vm4, %v4697_v30, 0.0 }
 0x1f3   :  { %v1932_v56 = vadd.f32 %v1931_v15, %v1930_v5 }
 0x202   :  { %v4701_v52 = vpop.f32.mrb[36].mxu0 }
 0x203   :  { %v1878_v12 = vadd.f32 %v1877_v21, %v4701_v52  ;;  %v4704_v59 = vpop.f32.mrb[37].mxu0 }
 0x204   :  { %6029 = vst [vmem:[#allocation6_spill] sm:$0xff] %v4704_v59  ;;  %v1933_v20 = vsel %vm941_vm4, %v4704_v59, 0.0  ;;  %v4708_v33 = vpop.f32.mrb[38].mxu0 }
 0x205   :  { %v1934_v37 = vadd.f32 %v1933_v20, %v1932_v56  ;;  %v1879_v13 = vadd.f32 %v1878_v12, %v4708_v33  ;;  %v4711_v29 = vpop.f32.mrb[39].mxu0 }
 0x206   :  { %6030 = vst [vmem:[#allocation7_spill] sm:$0xff] %v4711_v29  ;;  %v1935_v61 = vsel %vm941_vm4, %v4711_v29, 0.0 }
 0x207   :  { %v1936_v58 = vadd.f32 %v1935_v61, %v1934_v37 }
 0x222   :  { %v4715_v4 = vpop.f32.mrb[40].mxu0 }
 0x223   :  { %v1880_v14 = vadd.f32 %v1879_v13, %v4715_v4  ;;  %v4718_v0 = vpop.f32.mrb[41].mxu0 }
 0x224   :  { %6031 = vst [vmem:[#allocation8_spill] sm:$0xff] %v4718_v0  ;;  %v1937_v2 = vsel %vm941_vm4, %v4718_v0, 0.0  ;;  %v4722_v40 = vpop.f32.mrb[42].mxu0 }
 0x225   :  { %v1938_v54 = vadd.f32 %v1937_v2, %v1936_v58  ;;  %v1881_v38 = vadd.f32 %v1880_v14, %v4722_v40  ;;  %v4725_v6 = vpop.f32.mrb[43].mxu0 }
 0x226   :  { %6032 = vst [vmem:[#allocation9_spill] sm:$0xff] %v4725_v6  ;;  %v1939_v23 = vsel %vm941_vm4, %v4725_v6, 0.0  ;;  %v4729_v46 = vpop.f32.mrb[0].mxu1 }
 0x227   :  { %v1940_v55 = vadd.f32 %v1939_v23, %v1938_v54  ;;  %v4731_v19 = vpop.f32.mrb[1].mxu1 }
 0x228   :  { %6033 = vst [vmem:[#allocation10_spill] sm:$0xff] %v4731_v19  ;;  %v4733_v16 = vpop.f32.mrb[2].mxu1 }
 0x229   :  { %v4735_v50 = vpop.f32.mrb[3].mxu1 }
 0x22a   :  { %6034 = vst [vmem:[#allocation11_spill] sm:$0xff] %v4735_v50 }
 0x246   :  { %v4737_v5 = vpop.f32.mrb[44].mxu0 }
 0x247   :  { %v1882_v21 = vadd.f32 %v1881_v38, %v4737_v5  ;;  %v4740_v15 = vpop.f32.mrb[45].mxu0  ;;  %v1945_v38 = vsel %vm941_vm4, %v4731_v19, 0.0 }
 0x248   :  { %6035 = vst [vmem:[#allocation12_spill] sm:$0xff] %v4740_v15  ;;  %v1941_v56 = vsel %vm941_vm4, %v4740_v15, 0.0  ;;  %v4744_v12 = vpop.f32.mrb[46].mxu0 }
 0x249   :  { %v1942_v20 = vadd.f32 %v1941_v56, %v1940_v55  ;;  %v1883_v37 = vadd.f32 %v1882_v21, %v4744_v12  ;;  %v4747_v13 = vpop.f32.mrb[47].mxu0 }
 0x24a   :  { %6036 = vst [vmem:[#allocation13_spill] sm:$0xff] %v4747_v13  ;;  %v1943_v61 = vsel %vm941_vm4, %v4747_v13, 0.0  ;;  %v4751_v58 = vpop.f32.mrb[4].mxu1  ;;  %v1947_v13 = vsel %vm941_vm4, %v4735_v50, 0.0 }
 0x24b   :  { %v1884_v14 = vadd.f32 %v1883_v37, %v4729_v46  ;;  %v1944_v2 = vadd.f32 %v1943_v61, %v1942_v20  ;;  %v4754_v54 = vpop.f32.mrb[5].mxu1 }
 0x24c   :  { %6037 = vst [vmem:[#allocation14_spill] sm:$0xff] %v4754_v54  ;;  %v4758_v23 = vpop.f32.mrb[6].mxu1  ;;  %v1949_v20 = vsel %vm941_vm4, %v4754_v54, 0.0 }
 0x24d   :  { %v1946_v55 = vadd.f32 %v1945_v38, %v1944_v2  ;;  %v1885_v21 = vadd.f32 %v1884_v14, %v4733_v16  ;;  %v4761_v56 = vpop.f32.mrb[7].mxu1 }
 0x24e   :  { %6038 = vst [vmem:[#allocation15_spill] sm:$0xff] %v4761_v56  ;;  %v1951_v19 = vsel %vm941_vm4, %v4761_v56, 0.0 }
 0x24f   :  { %v1886_v15 = vadd.f32 %v1885_v21, %v4751_v58  ;;  %v1948_v6 = vadd.f32 %v1947_v13, %v1946_v55 }
 0x251   :  { %v1950_v37 = vadd.f32 %v1949_v20, %v1948_v6  ;;  %v1887_v61 = vadd.f32 %v1886_v15, %v4758_v23 }
 0x253   :  { %v1952_v2 = vadd.f32 %v1951_v19, %v1950_v37 }
 0x25a   :  { %v4771_v38 = vpop.f32.mrb[8].mxu1 }
 0x25b   :  { %v1888_v14 = vadd.f32 %v1887_v61, %v4771_v38  ;;  %v4774_v0 = vpop.f32.mrb[9].mxu1 }
 0x25c   :  { %6039 = vst [vmem:[#allocation16_spill] sm:$0xff] %v4774_v0  ;;  %v1953_v21 = vsel %vm941_vm4, %v4774_v0, 0.0  ;;  %v4778_v13 = vpop.f32.mrb[10].mxu1 }
 0x25d   :  { %v1954_v55 = vadd.f32 %v1953_v21, %v1952_v2  ;;  %v1889_v6 = vadd.f32 %v1888_v14, %v4778_v13  ;;  %v4781_v20 = vpop.f32.mrb[11].mxu1 }
 0x25e   :  { %6040 = vst [vmem:[#allocation17_spill] sm:$0xff] %v4781_v20  ;;  %v1955_v15 = vsel %vm941_vm4, %v4781_v20, 0.0 }
 0x25f   :  { %v1956_v19 = vadd.f32 %v1955_v15, %v1954_v55 }
 0x267   :  { %v1852_v37 = vpop.f32.mrb[12].mxu1 }
 0x268   :  { %v1890_v56 = vadd.f32 %v1889_v6, %v1852_v37  ;;  %v4785_v54 = vpop.f32.mrb[13].mxu1 }
 0x269   :  { %6041 = vst [vmem:[#allocation18_spill] sm:$0xff] %v4785_v54  ;;  %v1957_v61 = vsel %vm941_vm4, %v4785_v54, 0.0  ;;  %v1856_v50 = vpop.f32.mrb[14].mxu1 }
 0x26a   :  { %v1958_v0 = vadd.f32 %v1957_v61, %v1956_v19  ;;  %v1891_v29 = vadd.f32 %v1890_v56, %v1856_v50  ;;  %v4789_v59 = vpop.f32.mrb[15].mxu1  ;;  %v3231_v19 = vld [vmem:[%s5971_s2] sm:$0xff]  }
 0x26b   :  { %v1959_v2 = vsel %vm941_vm4, %v4789_v59, 0.0  ;;  %3098 = vmatprep.subr.bf16.mxu1 %v3231_v19 }
 0x26c   :  { %v1892_v14 = vrot.slane %v1891_v29, 4  ;;  %v1960_v21 = vadd.f32 %v1959_v2, %v1958_v0  ;;  %3099 = vmatpush3.bf16.msra.mxu1 %v3231_v19 }
 0x26e   :  { %v1893_v30 = vadd.f32 %v1892_v14, %v1891_v29  ;;  %v1961_v20 = vrot.slane %v1960_v21, 4 }
 0x270   :  { %v1894_v55 = vrot.slane %v1893_v30, 2  ;;  %v1962_v15 = vadd.f32 %v1961_v20, %v1960_v21 }
 0x272   :  { %v1895_v6 = vadd.f32 %v1894_v55, %v1893_v30  ;;  %v1963_v17 = vrot.slane %v1962_v15, 2 }
 0x274   :  { %v1896_v28 = vrot.slane %v1895_v6, 1  ;;  %v1964_v61 = vadd.f32 %v1963_v17, %v1962_v15 }
 0x276   :  { %v1897_v34 = vadd.f32 %v1896_v28, %v1895_v6 }
 0x278   :  { %v1968_v56 = vmul.f32 0.00390625, %v1897_v34 }
 0x27a   :  { %v4797_v54 = vsub.f32 %v4503_v26, %v1968_v56  ;;  %v4800_v0 = vsub.f32 %v4509_v25, %v1968_v56  ;;  %v4803_v29 = vsub.f32 %v4542_v49, %v1968_v56  ;;  %v4806_v30 = vsub.f32 %v4551_v63, %v1968_v56  ;;  %v3232_v25 = vld [vmem:[%s5971_s2 + $0x8] sm:$0xff]  }
 0x27b   :  { %v4809_v28 = vsub.f32 %v4583_v22, %v1968_v56  ;;  %v4812_v34 = vsub.f32 %v4593_v36, %v1968_v56  ;;  %v4815_v17 = vsub.f32 %v4617_v10, %v1968_v56  ;;  %v4818_v26 = vsub.f32 %v4624_v1, %v1968_v56  ;;  %3100 = vmatprep.subr.bf16.mxu1 %v3232_v25 }
 0x27c   :  { %6042 = vst [vmem:[#allocation19_spill] sm:$0xff] %v4797_v54  ;;  %6043 = vst [vmem:[#allocation20_spill] sm:$0xff] %v4800_v0  ;;  %v4824_v49 = vsub.f32 %v4631_v35, %v1968_v56  ;;  %v4827_v63 = vsub.f32 %v4638_v41, %v1968_v56  ;;  %v4830_v22 = vsub.f32 %v4645_v27, %v1968_v56  ;;  %3101 = vmatpush3.bf16.msra.mxu1 %v3232_v25 }
 0x27d   :  { %6044 = vst [vmem:[#allocation21_spill] sm:$0xff] %v4803_v29  ;;  %6045 = vst [vmem:[#allocation22_spill] sm:$0xff] %v4806_v30  ;;  %v4833_v36 = vsub.f32 %v4652_v8, %v1968_v56  ;;  %v4836_v10 = vsub.f32 %v4659_v62, %v1968_v56  ;;  %v4839_v1 = vsub.f32 %v4666_v43, %v1968_v56 }
 0x27e   :  { %6046 = vst [vmem:[#allocation23_spill] sm:$0xff] %v4809_v28  ;;  %6047 = vst [vmem:[#allocation24_spill] sm:$0xff] %v4812_v34  ;;  %v4842_v20 = vsub.f32 %v4673_v47, %v1968_v56  ;;  %v4845_v35 = vsub.f32 %v4680_v53, %v1968_v56  ;;  %v4848_v41 = vsub.f32 %v4687_v57, %v1968_v56 }
 0x27f   :  { %6048 = vst [vmem:[#allocation25_spill] sm:$0xff] %v4815_v17  ;;  %6049 = vst [vmem:[#allocation26_spill] sm:$0xff] %v4818_v26  ;;  %v4851_v27 = vsub.f32 %v4694_v44, %v1968_v56  ;;  %v4854_v8 = vsub.f32 %v4701_v52, %v1968_v56  ;;  %v4857_v62 = vsub.f32 %v4708_v33, %v1968_v56  ;;  %v3233_v44 = vld [vmem:[%s5971_s2 + $0x10] sm:$0xff]  }
 0x280   :  { %6050 = vst [vmem:[#allocation27_spill] sm:$0xff] %v4824_v49  ;;  %v4860_v43 = vsub.f32 %v4715_v4, %v1968_v56  ;;  %v4863_v47 = vsub.f32 %v4722_v40, %v1968_v56  ;;  %v4866_v53 = vsub.f32 %v4737_v5, %v1968_v56  ;;  %v4869_v57 = vsub.f32 %v4744_v12, %v1968_v56 }
 0x281   :  { %v4875_v52 = vsub.f32 %v4729_v46, %v1968_v56  ;;  %v4878_v33 = vsub.f32 %v4733_v16, %v1968_v56  ;;  %v4881_v4 = vsub.f32 %v4751_v58, %v1968_v56  ;;  %v4884_v40 = vsub.f32 %v4758_v23, %v1968_v56  ;;  %3102 = vmatprep.subr.bf16.mxu1 %v3233_v44  ;;  %v3234_v16 = vld [vmem:[%s5971_s2 + $0x18] sm:$0xff]  }
 0x282   :  { %6051 = vst [vmem:[#allocation28_spill] sm:$0xff] %v4866_v53  ;;  %6052 = vst [vmem:[#allocation29_spill] sm:$0xff] %v4869_v57  ;;  %v4887_v5 = vsub.f32 %v4771_v38, %v1968_v56  ;;  %v4890_v12 = vsub.f32 %v4778_v13, %v1968_v56  ;;  %v4892_v2 = vsub.f32 %v1852_v37, %v1968_v56  ;;  %v1965_v46 = vrot.slane %v1964_v61, 1 }
 0x283   :  { %6053 = vst [vmem:[#allocation30_spill] sm:$0xff] %v4875_v52  ;;  %6054 = vst [vmem:[#allocation31_spill] sm:$0xff] %v4878_v33  ;;  %v4894_v14 = vsub.f32 %v1856_v50, %v1968_v56  ;;  %3103 = vmatpush3.bf16.msra.mxu1 %v3233_v44  ;;  %v2034_v58 = vmul.f32 %v4797_v54, %v4797_v54  ;;  %v2036_v23 = vmul.f32 %v4800_v0, %v4800_v0  ;;  %v3235_v50 = vld [vmem:[%s5971_s2 + $0x20] sm:$0xff]   ;;  %v6075_v0 = vld [vmem:[#allocation12_spill] sm:$0xff] }
 0x284   :  { %6055 = vst [vmem:[#allocation32_spill] sm:$0xff] %v4881_v4  ;;  %6056 = vst [vmem:[#allocation33_spill] sm:$0xff] %v4884_v40  ;;  %3104 = vmatprep.subr.bf16.mxu1 %v3234_v16  ;;  %v1966_v38 = vadd.f32 %v1965_v46, %v1964_v61  ;;  %v2038_v13 = vmul.f32 %v4803_v29, %v4803_v29  ;;  %v2040_v37 = vmul.f32 %v4806_v30, %v4806_v30  ;;  %v3236_v61 = vld [vmem:[%s5971_s2 + $0x28] sm:$0xff]   ;;  %v6076_v54 = vld [vmem:[#allocation13_spill] sm:$0xff] }
 0x285   :  { %6057 = vst [vmem:[#allocation34_spill] sm:$0xff] %v4887_v5  ;;  %6058 = vst [vmem:[#allocation35_spill] sm:$0xff] %v4890_v12  ;;  %v2098_v21 = vadd.f32 %v2036_v23, %v2034_v58  ;;  %v2042_v15 = vmul.f32 %v4809_v28, %v4809_v28  ;;  %v2044_v6 = vmul.f32 %v4812_v34, %v4812_v34  ;;  %v6073_v28 = vld [vmem:[#allocation8_spill] sm:$0xff] }
 0x286   :  { %6059 = vst [vmem:[#allocation36_spill] sm:$0xff] %v4892_v2  ;;  %6060 = vst [vmem:[#allocation37_spill] sm:$0xff] %v4894_v14  ;;  %v1969_v55 = vmul.f32 0.00390625, %v1966_v38  ;;  %v2046_v19 = vmul.f32 %v4815_v17, %v4815_v17  ;;  %v2048_v56 = vmul.f32 %v4818_v26, %v4818_v26  ;;  %v6071_v26 = vld [vmem:[#allocation6_spill] sm:$0xff]  ;;  %v6072_v17 = vld [vmem:[#allocation7_spill] sm:$0xff] }
 0x287   :  { %3105 = vmatpush3.bf16.msra.mxu1 %v3234_v16  ;;  %v2099_v25 = vadd.f32 %v2098_v21, %v2038_v13  ;;  %v6068_v21 = vld [vmem:[#allocation3_spill] sm:$0xff] }
 0x288   :  { %3106 = vmatprep.subr.bf16.mxu1 %v3235_v50  ;;  %v4922_v44 = vsub.f32 %v4506_v24, %v1969_v55  ;;  %v4925_v46 = vsub.f32 %v4514_v11, %v1969_v55  ;;  %v4928_v16 = vsub.f32 %v4547_v48, %v1969_v55  ;;  %v4931_v58 = vsub.f32 %v4554_v32, %v1969_v55 }
 0x289   :  { %v4934_v23 = vsub.f32 %v4588_v51, %v1969_v55  ;;  %v4937_v38 = vsub.f32 %v4596_v42, %v1969_v55  ;;  %v2100_v24 = vadd.f32 %v2099_v25, %v2040_v37  ;;  %v4943_v11 = vsub.f32 %v4627_v9, %v1969_v55  ;;  %v3237_v9 = vld [vmem:[%s5971_s2 + $0x30] sm:$0xff]   ;;  %v6070_v25 = vld [vmem:[#allocation5_spill] sm:$0xff] }
 0x28a   :  { %6061 = vst [vmem:[#allocation38_spill] sm:$0xff] %v4922_v44  ;;  %6062 = vst [vmem:[#allocation39_spill] sm:$0xff] %v4925_v46  ;;  %v4946_v48 = vsub.f32 %v4634_v45, %v1969_v55  ;;  %v4949_v32 = vsub.f32 %v4641_v7, %v1969_v55  ;;  %v4952_v51 = vsub.f32 %v4648_v18, %v1969_v55  ;;  %v6067_v7 = vld [vmem:[#allocation2_spill] sm:$0xff] }
 0x28b   :  { %3107 = vmatpush3.bf16.msra.mxu1 %v3235_v50  ;;  %6063 = vst [vmem:[#allocation40_spill] sm:$0xff] %v4928_v16  ;;  %6064 = vst [vmem:[#allocation41_spill] sm:$0xff] %v4934_v23  ;;  %v4940_v50 = vsub.f32 %v4620_v39, %v1969_v55  ;;  %v4955_v42 = vsub.f32 %v4655_v3, %v1969_v55  ;;  %v4958_v39 = vsub.f32 %v4662_v31, %v1969_v55 }
 0x28c   :  { %3108 = vmatprep.subr.bf16.mxu1 %v3236_v61  ;;  %6065 = vst [vmem:[#allocation42_spill] sm:$0xff] %v4946_v48  ;;  %6066 = vst [vmem:[#allocation43_spill] sm:$0xff] %v4949_v32  ;;  %v4961_v13 = vsub.f32 %v4669_v60, %v1969_v55  ;;  %v2101_v45 = vadd.f32 %v2100_v24, %v2042_v15  ;;  %v4967_v37 = vsub.f32 %v6067_v7, %v1969_v55  ;;  %v6074_v7 = vld [vmem:[#allocation9_spill] sm:$0xff] }
 0x28d   :  { %v4970_v18 = vsub.f32 %v6068_v21, %v1969_v55  ;;  %v4976_v31 = vsub.f32 %v6070_v25, %v1969_v55  ;;  %v4979_v60 = vsub.f32 %v6071_v26, %v1969_v55  ;;  %v4982_v34 = vsub.f32 %v6072_v17, %v1969_v55  ;;  %v6078_v26 = vld [vmem:[#allocation10_spill] sm:$0xff]  ;;  %v6080_v17 = vld [vmem:[#allocation11_spill] sm:$0xff] }
 0x28e   :  { %v4985_v15 = vsub.f32 %v6073_v28, %v1969_v55  ;;  %v2102_v24 = vadd.f32 %v2101_v45, %v2044_v6  ;;  %v4988_v21 = vsub.f32 %v6074_v7, %v1969_v55  ;;  %v4994_v25 = vsub.f32 %v6076_v54, %v1969_v55  ;;  %v6081_v28 = vld [vmem:[#allocation14_spill] sm:$0xff]  ;;  %v6082_v6 = vld [vmem:[#allocation15_spill] sm:$0xff]  ;;  %v6084_v54 = vld [vmem:[#allocation16_spill] sm:$0xff] }
 0x28f   :  { %3109 = vmatpush3.bf16.msra.mxu1 %v3236_v61  ;;  %v6069_v61 = vld [vmem:[#allocation4_spill] sm:$0xff]  ;;  %v4997_v30 = vsub.f32 %v6078_v26, %v1969_v55  ;;  %v5000_v29 = vsub.f32 %v6080_v17, %v1969_v55  ;;  %v5003_v14 = vsub.f32 %v6081_v28, %v1969_v55  ;;  %v5006_v45 = vsub.f32 %v6082_v6, %v1969_v55 }
 0x290   :  { %v4973_v3 = vsub.f32 %v6069_v61, %v1969_v55  ;;  %3110 = vmatprep.subr.bf16.mxu1 %v3237_v9  ;;  %v4991_v61 = vsub.f32 %v6075_v0, %v1969_v55  ;;  %6077 = vst [vmem:[#allocation2_spill] sm:$0xff] %v4994_v25  ;;  %v3238_v0 = vld [vmem:[%s5971_s2 + $0x38] sm:$0xff]   ;;  %v2103_v7 = vadd.f32 %v2102_v24, %v2046_v19 }
 0x291   :  { %6079 = vst [vmem:[#allocation3_spill] sm:$0xff] %v4997_v30  ;;  %6083 = vst [vmem:[#allocation4_spill] sm:$0xff] %v5006_v45  ;;  %v5012_v25 = vsub.f32 %v6084_v54, %v1969_v55  ;;  %v6087_v30 = vld [vmem:[#allocation18_spill] sm:$0xff]  ;;  %v5021_v28 = vsub.f32 %v4789_v59, %v1969_v55  ;;  %v2050_v6 = vmul.f32 %v4824_v49, %v4824_v49 }
 0x292   :  { %v5018_v17 = vsub.f32 %v6087_v30, %v1969_v55  ;;  %v2104_v45 = vadd.f32 %v2103_v7, %v2048_v56  ;;  %v2052_v19 = vmul.f32 %v4827_v63, %v4827_v63  ;;  %v2054_v54 = vmul.f32 %v4830_v22, %v4830_v22 }
 0x293   :  { %3111 = vmatpush3.bf16.msra.mxu1 %v3237_v9  ;;  %v6085_v9 = vld [vmem:[#allocation17_spill] sm:$0xff]  ;;  %v2035_v30 = vmul.f32 %v4922_v44, %v4922_v44  ;;  %v2037_v59 = vmul.f32 %v4925_v46, %v4925_v46  ;;  %v2039_v56 = vmul.f32 %v4928_v16, %v4928_v16  ;;  %v2041_v7 = vmul.f32 %v4931_v58, %v4931_v58 }
 0x294   :  { %v5015_v26 = vsub.f32 %v6085_v9, %v1969_v55  ;;  %6088 = vst [vmem:[#allocation6_spill] sm:$0xff] %v5018_v17  ;;  %3112 = vmatprep.subr.bf16.mxu1 %v3238_v0  ;;  %v2105_v24 = vadd.f32 %v2104_v45, %v2050_v6  ;;  %v2056_v55 = vmul.f32 %v4833_v36, %v4833_v36 }
 0x295   :  { %v2058_v45 = vmul.f32 %v4836_v10, %v4836_v10  ;;  %v2135_v6 = vsel %vm941_vm4, %v2035_v30, 0.0  ;;  %v2060_v46 = vmul.f32 %v4839_v1, %v4839_v1  ;;  %v2045_v30 = vmul.f32 %v4937_v38, %v4937_v38 }
 0x296   :  { %6086 = vst [vmem:[#allocation5_spill] sm:$0xff] %v5015_v26  ;;  %v2106_v9 = vadd.f32 %v2105_v24, %v2052_v19  ;;  %v2136_v19 = vsel %vm941_vm4, %v2037_v59, 0.0  ;;  %v2140_v59 = vsel %vm941_vm4, %v2041_v7, 0.0 }
 0x297   :  { %3113 = vmatpush3.bf16.msra.mxu1 %v3238_v0  ;;  %v2137_v24 = vadd.f32 %v2136_v19, %v2135_v6  ;;  %v2217_v19 = vlaneseq }
 0x298   :  { %v2107_v49 = vadd.f32 %v2106_v9, %v2054_v54  ;;  %v2043_v54 = vmul.f32 %v4934_v23, %v4934_v23  ;;  %v2138_v9 = vsel %vm941_vm4, %v2039_v56, 0.0  ;;  %v2047_v23 = vmul.f32 %v4940_v50, %v4940_v50 }
 0x299   :  { %v2139_v16 = vadd.f32 %v2138_v9, %v2137_v24  ;;  %v2049_v9 = vmul.f32 %v4943_v11, %v4943_v11 }
 0x29a   :  { %v2108_v0 = vadd.f32 %v2107_v49, %v2056_v55  ;;  %v2062_v49 = vmul.f32 %v4842_v20, %v4842_v20  ;;  %v2142_v56 = vsel %vm941_vm4, %v2043_v54, 0.0  ;;  %v2051_v54 = vmul.f32 %v4946_v48, %v4946_v48 }
 0x29b   :  { %v2141_v6 = vadd.f32 %v2140_v59, %v2139_v16  ;;  %v2144_v16 = vsel %vm941_vm4, %v2045_v30, 0.0  ;;  %v5063_v59 = vshrl.u32 %v2217_v19, 7  ;;  %v2070_v19 = vmul.f32 %v4854_v8, %v4854_v8 }
 0x29c   :  { %v2109_v44 = vadd.f32 %v2108_v0, %v2058_v45  ;;  %v2064_v45 = vmul.f32 %v4845_v35, %v4845_v35  ;;  %v2076_v48 = vmul.f32 %v4863_v47, %v4863_v47 }
 0x29d   :  { %v2143_v24 = vadd.f32 %v2142_v56, %v2141_v6  ;;  %v2146_v6 = vsel %vm941_vm4, %v2047_v23, 0.0  ;;  %v6011_v30 = vsub.s32 1, %v5063_v59 }
 0x29e   :  { %v2110_v55 = vadd.f32 %v2109_v44, %v2060_v46  ;;  %v2066_v44 = vmul.f32 %v4848_v41, %v4848_v41 }
 0x29f   :  { %v2145_v7 = vadd.f32 %v2144_v16, %v2143_v24  ;;  %v2053_v24 = vmul.f32 %v4949_v32, %v4949_v32  ;;  %v2072_v16 = vmul.f32 %v4857_v62, %v4857_v62  ;;  %v2074_v32 = vmul.f32 %v4860_v43, %v4860_v43 }
 0x2a0   :  { %v2111_v0 = vadd.f32 %v2110_v55, %v2062_v49  ;;  %v2068_v49 = vmul.f32 %v4851_v27, %v4851_v27 }
 0x2a2   :  { %v2112_v46 = vadd.f32 %v2111_v0, %v2064_v45  ;;  %v5073_v45 = vld [vmem:[%s5972_s3 + $0x1] ss:$2 sm:$0x3]  ;;  %v2147_v0 = vadd.f32 %v2146_v6, %v2145_v7  ;;  %v2055_v6 = vmul.f32 %v4952_v51, %v4952_v51 }
 0x2a3   :  { %v5084_v23 = vrot.slane %v5073_v45, %v6011_v30 }
 0x2a4   :  { %v2113_v55 = vadd.f32 %v2112_v46, %v2066_v44  ;;  %v2148_v44 = vsel %vm941_vm4, %v2049_v9, 0.0 }
 0x2a5   :  { %v2149_v46 = vadd.f32 %v2148_v44, %v2147_v0  ;;  %v2057_v0 = vmul.f32 %v4955_v42, %v4955_v42  ;;  %v2152_v44 = vsel %vm941_vm4, %v2053_v24, 0.0 }
 0x2a6   :  { %v2114_v56 = vadd.f32 %v2113_v55, %v2068_v49  ;;  %v2150_v49 = vsel %vm941_vm4, %v2051_v54, 0.0  ;;  %v2154_v54 = vsel %vm941_vm4, %v2055_v6, 0.0 }
 0x2a7   :  { %v2151_v55 = vadd.f32 %v2150_v49, %v2149_v46  ;;  %v2078_v49 = vmul.f32 %v4866_v53, %v4866_v53  ;;  %v2156_v24 = vsel %vm941_vm4, %v2057_v0, 0.0 }
 0x2a8   :  { %v2115_v7 = vadd.f32 %v2114_v56, %v2070_v19  ;;  %v2059_v56 = vmul.f32 %v4958_v39, %v4958_v39 }
 0x2a9   :  { %v2153_v30 = vadd.f32 %v2152_v44, %v2151_v55  ;;  %v2080_v44 = vmul.f32 %v4869_v57, %v4869_v57 }
 0x2aa   :  { %v2116_v9 = vadd.f32 %v2115_v7, %v2072_v16  ;;  %v2061_v7 = vmul.f32 %v4961_v13, %v4961_v13  ;;  %v2158_v6 = vsel %vm941_vm4, %v2059_v56, 0.0 }
 0x2ab   :  { %v2155_v46 = vadd.f32 %v2154_v54, %v2153_v30  ;;  %v2082_v54 = vmul.f32 %v4875_v52, %v4875_v52 }
 0x2ac   :  { %v2117_v19 = vadd.f32 %v2116_v9, %v2074_v32  ;;  %v2063_v9 = vmul.f32 %v4967_v37, %v4967_v37  ;;  %v2160_v0 = vsel %vm941_vm4, %v2061_v7, 0.0 }
 0x2ad   :  { %v2157_v55 = vadd.f32 %v2156_v24, %v2155_v46  ;;  %v2084_v24 = vmul.f32 %v4878_v33, %v4878_v33 }
 0x2ae   :  { %v2118_v16 = vadd.f32 %v2117_v19, %v2076_v48  ;;  %v2065_v19 = vmul.f32 %v4970_v18, %v4970_v18  ;;  %v2162_v56 = vsel %vm941_vm4, %v2063_v9, 0.0 }
 0x2af   :  { %v2159_v30 = vadd.f32 %v2158_v6, %v2157_v55  ;;  %v2086_v6 = vmul.f32 %v4881_v4, %v4881_v4 }
 0x2b0   :  { %v2119_v32 = vadd.f32 %v2118_v16, %v2078_v49  ;;  %v2067_v16 = vmul.f32 %v4973_v3, %v4973_v3  ;;  %v2164_v7 = vsel %vm941_vm4, %v2065_v19, 0.0 }
 0x2b1   :  { %v2161_v46 = vadd.f32 %v2160_v0, %v2159_v30  ;;  %v2088_v0 = vmul.f32 %v4884_v40, %v4884_v40  ;;  %v6091_v40 = vld [vmem:[#allocation3_spill] sm:$0xff] }
 0x2b2   :  { %v2120_v48 = vadd.f32 %v2119_v32, %v2080_v44  ;;  %v2069_v32 = vmul.f32 %v4976_v31, %v4976_v31  ;;  %v2166_v9 = vsel %vm941_vm4, %v2067_v16, 0.0 }
 0x2b3   :  { %v2163_v55 = vadd.f32 %v2162_v56, %v2161_v46  ;;  %v2090_v56 = vmul.f32 %v4887_v5, %v4887_v5  ;;  %v6089_v5 = vld [vmem:[#allocation37_spill] sm:$0xff] }
 0x2b4   :  { %v2121_v49 = vadd.f32 %v2120_v48, %v2082_v54  ;;  %v2071_v48 = vmul.f32 %v4979_v60, %v4979_v60  ;;  %v2168_v19 = vsel %vm941_vm4, %v2069_v32, 0.0 }
 0x2b5   :  { %v2165_v30 = vadd.f32 %v2164_v7, %v2163_v55  ;;  %v2092_v7 = vmul.f32 %v4890_v12, %v4890_v12 }
 0x2b6   :  { %v2122_v44 = vadd.f32 %v2121_v49, %v2084_v24  ;;  %v2073_v49 = vmul.f32 %v4982_v34, %v4982_v34  ;;  %v2170_v16 = vsel %vm941_vm4, %v2071_v48, 0.0  ;;  %v2096_v48 = vmul.f32 %v6089_v5, %v6089_v5 }
 0x2b7   :  { %v2167_v46 = vadd.f32 %v2166_v9, %v2165_v30  ;;  %v2094_v9 = vmul.f32 %v4892_v2, %v4892_v2 }
 0x2b8   :  { %v2123_v54 = vadd.f32 %v2122_v44, %v2086_v6  ;;  %v2075_v44 = vmul.f32 %v4985_v15, %v4985_v15  ;;  %v2172_v32 = vsel %vm941_vm4, %v2073_v49, 0.0  ;;  %v2083_v49 = vmul.f32 %v6091_v40, %v6091_v40 }
 0x2b9   :  { %v2169_v55 = vadd.f32 %v2168_v19, %v2167_v46 }
 0x2ba   :  { %v2124_v24 = vadd.f32 %v2123_v54, %v2088_v0  ;;  %v2077_v54 = vmul.f32 %v4988_v21, %v4988_v21 }
 0x2bb   :  { %v2171_v30 = vadd.f32 %v2170_v16, %v2169_v55  ;;  %v6090_v55 = vld [vmem:[#allocation2_spill] sm:$0xff] }
 0x2bc   :  { %v2125_v6 = vadd.f32 %v2124_v24, %v2090_v56  ;;  %v2079_v56 = vmul.f32 %v4991_v61, %v4991_v61  ;;  %v2174_v24 = vsel %vm941_vm4, %v2075_v44, 0.0  ;;  %v2081_v16 = vmul.f32 %v6090_v55, %v6090_v55 }
 0x2bd   :  { %v2173_v46 = vadd.f32 %v2172_v32, %v2171_v30  ;;  %v2085_v44 = vmul.f32 %v5000_v29, %v5000_v29 }
 0x2be   :  { %v2126_v0 = vadd.f32 %v2125_v6, %v2092_v7  ;;  %v2176_v7 = vsel %vm941_vm4, %v2077_v54, 0.0  ;;  %v2178_v30 = vsel %vm941_vm4, %v2079_v56, 0.0  ;;  %v2182_v54 = vsel %vm941_vm4, %v2083_v49, 0.0 }
 0x2bf   :  { %v2175_v12 = vadd.f32 %v2174_v24, %v2173_v46  ;;  %v2087_v24 = vmul.f32 %v5003_v14, %v5003_v14 }
 0x2c0   :  { %v2127_v19 = vadd.f32 %v2126_v0, %v2094_v9  ;;  %v2180_v0 = vsel %vm941_vm4, %v2081_v16, 0.0 }
 0x2c1   :  { %v2177_v6 = vadd.f32 %v2176_v7, %v2175_v12  ;;  %v2184_v7 = vsel %vm941_vm4, %v2085_v44, 0.0  ;;  %v2186_v16 = vsel %vm941_vm4, %v2087_v24, 0.0 }
 0x2c2   :  { %v2128_v2 = vadd.f32 %v2127_v19, %v2096_v48  ;;  %v6092_v19 = vld [vmem:[#allocation4_spill] sm:$0xff] }
 0x2c3   :  { %v2179_v9 = vadd.f32 %v2178_v30, %v2177_v6  ;;  %v2089_v48 = vmul.f32 %v6092_v19, %v6092_v19  ;;  %v2091_v30 = vmul.f32 %v5012_v25, %v5012_v25 }
 0x2c4   :  { %v2129_v46 = vrot.slane %v2128_v2, 4 }
 0x2c5   :  { %v2181_v32 = vadd.f32 %v2180_v0, %v2179_v9  ;;  %v2093_v0 = vmul.f32 %v5015_v26, %v5015_v26  ;;  %v2188_v5 = vsel %vm941_vm4, %v2089_v48, 0.0  ;;  %v2190_v44 = vsel %vm941_vm4, %v2091_v30, 0.0 }
 0x2c6   :  { %v2130_v6 = vadd.f32 %v2129_v46, %v2128_v2  ;;  %v2097_v2 = vmul.f32 %v5021_v28, %v5021_v28 }
 0x2c7   :  { %v2183_v12 = vadd.f32 %v2182_v54, %v2181_v32  ;;  %v2095_v54 = vmul.f32 %v5018_v17, %v5018_v17  ;;  %v2192_v46 = vsel %vm941_vm4, %v2093_v0, 0.0 }
 0x2c8   :  { %v2131_v32 = vrot.slane %v2130_v6, 2  ;;  %v2196_v48 = vsel %vm941_vm4, %v2097_v2, 0.0 }
 0x2c9   :  { %v2185_v56 = vadd.f32 %v2184_v7, %v2183_v12 }
 0x2ca   :  { %v2132_v7 = vadd.f32 %v2131_v32, %v2130_v6  ;;  %v3249_v6 = vmov 1966171168  }
 0x2cb   :  { %v2187_v9 = vadd.f32 %v2186_v16, %v2185_v56  ;;  %v2194_v56 = vsel %vm941_vm4, %v2095_v54, 0.0  ;;  %v2215_v32 = vunpack.c.l.s4 %v3249_v6  ;;  %v6099_v6 = vld [vmem:[#allocation23_spill] sm:$0xff] }
 0x2cd   :  { %v2189_v49 = vadd.f32 %v2188_v5, %v2187_v9  ;;  %v2133_v9 = vrot.slane %v2132_v7, 1  ;;  %v2216_v54 = vunpack.c.0.s8 %v2215_v32 }
 0x2cf   :  { %v2191_v12 = vadd.f32 %v2190_v44, %v2189_v49  ;;  %v2134_v52 = vadd.f32 %v2133_v9, %v2132_v7  ;;  %v2219_v2 = vsub.s32 %v2216_v54, %v5063_v59  ;;  %v6100_v54 = vld [vmem:[#allocation24_spill] sm:$0xff] }
 0x2d1   :  { %v2193_v24 = vadd.f32 %v2192_v46, %v2191_v12  ;;  %v2204_v49 = vmul.f32 0.00390625, %v2134_v52 }
 0x2d3   :  { %v2195_v16 = vadd.f32 %v2194_v56, %v2193_v24  ;;  %v2207_v17 = vadd.f32 1e-05, %v2204_v49  ;;  %v6097_v49 = vld [vmem:[#allocation19_spill] sm:$0xff] }
 0x2d5   :  { %v2197_v5 = vadd.f32 %v2196_v48, %v2195_v16  ;;  %3239 = vrsqrt.f32 %v2207_v17  ;;  %v5189_v17 = vsub.s32 0, %v5063_v59 }
 0x2d7   :  { %v2198_v4 = vrot.slane %v2197_v5, 4  ;;  %v5201_v48 = vrot.slane %v5073_v45, %v5189_v17  ;;  %v6101_v45 = vld [vmem:[#allocation25_spill] sm:$0xff] }
 0x2d9   :  { %v2199_v33 = vadd.f32 %v2198_v4, %v2197_v5  ;;  %v6095_v5 = vld [vmem:[#allocation21_spill] sm:$0xff] }
 0x2db   :  { %v2200_v57 = vrot.slane %v2199_v33, 2 }
 0x2dd   :  { %v2201_v30 = vadd.f32 %v2200_v57, %v2199_v33  ;;  %v2206_v57 = vld [vmem:[%s5972_s3] ss:$2 sm:$0x3] }
 0x2df   :  { %v2202_v44 = vrot.slane %v2201_v30, 1  ;;  %v3240_v12 = vpop.eup %3239 }
 0x2e1   :  { %v2203_v53 = vadd.f32 %v2202_v44, %v2201_v30  ;;  %v6096_v30 = vld [vmem:[#allocation22_spill] sm:$0xff] }
 0x2e3   :  { %v2205_v26 = vmul.f32 0.00390625, %v2203_v53  ;;  %v6093_v53 = vsub.s32 1, %v5063_v59 }
 0x2e5   :  { %v2208_v0 = vadd.f32 1e-05, %v2205_v26 }
 0x2e7   :  { %3241 = vrsqrt.f32 %v2208_v0 }
 0x2f1   :  { %v3242_v46 = vpop.eup %3241 }
 0x2f2   :  { %v2213_v24 = vcombine.low %v3240_v12, %v3242_v46 }
 0x2f4   :  { %v2220_v4 = vrot.slane %v2213_v24, %v2219_v2 }
 0x2f6   :  { %v2227_v52 = vrot.slane %v2220_v4, %v2219_v2 }
 0x2f8   :  { %v2229_v33 = vmul.f32 %v2227_v52, %v2206_v57 }
 0x2fa   :  { %v5186_v26 = vrot.slane %v2229_v33, %v6093_v53  ;;  %v5197_v16 = vrot.slane %v2229_v33, %v5189_v17  ;;  %v6102_v53 = vld [vmem:[#allocation26_spill] sm:$0xff] }
 0x2fc   :  { %v2304_v7 = vmul.f32 %v5186_v26, %v5021_v28  ;;  %v2245_v9 = vmul.f32 %v5197_v16, %v6095_v5  ;;  %v2247_v59 = vmul.f32 %v5197_v16, %v6096_v30  ;;  %v2241_v44 = vmul.f32 %v5197_v16, %v6097_v49  ;;  %v6098_v28 = vld [vmem:[#allocation20_spill] sm:$0xff]  ;;  %v6103_v5 = vld [vmem:[#allocation27_spill] sm:$0xff] }
 0x2fd   :  { %v2243_v0 = vmul.f32 %v5197_v16, %v6098_v28  ;;  %v2249_v32 = vmul.f32 %v5197_v16, %v6099_v6  ;;  %v2251_v12 = vmul.f32 %v5197_v16, %v6100_v54  ;;  %v2253_v2 = vmul.f32 %v5197_v16, %v6101_v45 }
 0x2fe   :  { %v5194_v56 = vadd.f32 %v5084_v23, %v2304_v7  ;;  %v2322_v46 = vadd.f32 %v5201_v48, %v2245_v9  ;;  %v2324_v24 = vadd.f32 %v5201_v48, %v2247_v59  ;;  %v2318_v4 = vadd.f32 %v5201_v48, %v2241_v44 }
 0x2ff   :  { %v2320_v57 = vadd.f32 %v5201_v48, %v2243_v0  ;;  %v2326_v52 = vadd.f32 %v5201_v48, %v2249_v32  ;;  %v2328_v33 = vadd.f32 %v5201_v48, %v2251_v12  ;;  %v2255_v7 = vmul.f32 %v5197_v16, %v6102_v53 }
 0x300   :  { %6094 = vst [vmem:[#allocation7_spill] sm:$0xff] %v5194_v56  ;;  %v2257_v30 = vmul.f32 %v5197_v16, %v6103_v5  ;;  %v2259_v49 = vmul.f32 %v5197_v16, %v4827_v63  ;;  %v2261_v9 = vmul.f32 %v5197_v16, %v4830_v22  ;;  %v2263_v59 = vmul.f32 %v5197_v16, %v4833_v36 }
 0x301   :  { %v2265_v44 = vmul.f32 %v5197_v16, %v4836_v10  ;;  %v2267_v28 = vmul.f32 %v5197_v16, %v4839_v1  ;;  %v2269_v0 = vmul.f32 %v5197_v16, %v4842_v20  ;;  %v2271_v6 = vmul.f32 %v5197_v16, %v4845_v35 }
 0x302   :  { %v2330_v63 = vadd.f32 %v5201_v48, %v2253_v2  ;;  %v2384_v32 = vmax.f32 %v2322_v46, 0.0  ;;  %v2385_v54 = vmax.f32 %v2324_v24, 0.0  ;;  %v2382_v22 = vmax.f32 %v2318_v4, 0.0 }
 0x303   :  { %v2383_v12 = vmax.f32 %v2320_v57, 0.0  ;;  %v2386_v45 = vmax.f32 %v2326_v52, 0.0  ;;  %v2387_v36 = vmax.f32 %v2328_v33, 0.0  ;;  %v2332_v53 = vadd.f32 %v5201_v48, %v2255_v7 }
 0x304   :  { %v2334_v10 = vadd.f32 %v5201_v48, %v2257_v30  ;;  %v2336_v1 = vadd.f32 %v5201_v48, %v2259_v49  ;;  %v2415_v5 = vpack.c.bf16 %v2385_v54, %v2384_v32  ;;  %v2273_v20 = vmul.f32 %v5197_v16, %v4848_v41 }
 0x305   :  { %v2338_v35 = vadd.f32 %v5201_v48, %v2261_v9  ;;  %v2340_v2 = vadd.f32 %v5201_v48, %v2263_v59  ;;  %v2414_v46 = vpack.c.bf16 %v2383_v12, %v2382_v22  ;;  %v2275_v24 = vmul.f32 %v5197_v16, %v4851_v27 }
 0x306   :  { %v2342_v4 = vadd.f32 %v5201_v48, %v2265_v44  ;;  %v2344_v57 = vadd.f32 %v5201_v48, %v2267_v28  ;;  %v5254_v52 = vadd.f32 %v5201_v48, %v2269_v0  ;;  %v2416_v33 = vpack.c.bf16 %v2387_v36, %v2386_v45 }
 0x307   :  { %3114 = vmatprep.mubr.bf16.mxu1 %v2414_v46  ;;  %v2388_v7 = vmax.f32 %v2330_v63, 0.0  ;;  %v2389_v41 = vmax.f32 %v2332_v53, 0.0  ;;  %v2390_v30 = vmax.f32 %v2334_v10, 0.0  ;;  %v2391_v49 = vmax.f32 %v2336_v1, 0.0 }
 0x308   :  { %3115 = vmatmul.mubr.bf16.vlgmr.msra.gmra.mrb[16].mxu1 %v2415_v5  ;;  %v5257_v9 = vadd.f32 %v5201_v48, %v2271_v6  ;;  %v5260_v59 = vadd.f32 %v5201_v48, %v2273_v20  ;;  %v2392_v27 = vmax.f32 %v2338_v35, 0.0  ;;  %v2393_v44 = vmax.f32 %v2340_v2, 0.0  ;;  %v6104_v5 = vld [vmem:[#allocation38_spill] sm:$0xff]  ;;  %v6105_v20 = vld [vmem:[#allocation39_spill] sm:$0xff] }
 0x309   :  { %3118 = vmatprep.mubr.bf16.mxu1 %v2416_v33  ;;  %v5263_v28 = vadd.f32 %v5201_v48, %v2275_v24  ;;  %v2394_v0 = vmax.f32 %v2342_v4, 0.0  ;;  %v2395_v32 = vmax.f32 %v2344_v57, 0.0  ;;  %v5267_v63 = vmul.f32 %v5197_v16, %v4854_v8  ;;  %v6107_v24 = vld [vmem:[#allocation41_spill] sm:$0xff] }
 0x30a   :  { %v5271_v54 = vmul.f32 %v5197_v16, %v4857_v62  ;;  %v5275_v6 = vmul.f32 %v5197_v16, %v4860_v43  ;;  %v5279_v22 = vmul.f32 %v5197_v16, %v4863_v47  ;;  %v2417_v12 = vpack.c.bf16 %v2389_v41, %v2388_v7  ;;  %v6106_v47 = vld [vmem:[#allocation40_spill] sm:$0xff]  ;;  %v6108_v41 = vld [vmem:[#allocation42_spill] sm:$0xff] }
 0x30b   :  { %v2418_v45 = vpack.c.bf16 %v2391_v49, %v2390_v30  ;;  %v2419_v36 = vpack.c.bf16 %v2393_v44, %v2392_v27  ;;  %v2396_v53 = vmax.f32 %v5254_v52, 0.0  ;;  %v2397_v8 = vmax.f32 %v5257_v9, 0.0  ;;  %v6109_v49 = vld [vmem:[#allocation43_spill] sm:$0xff]  ;;  %v6134_v52 = vld [vmem:[#allocation29_spill] sm:$0xff] }
 0x30c   :  { %v2398_v10 = vmax.f32 %v5260_v59, 0.0  ;;  %v2420_v1 = vpack.c.bf16 %v2395_v32, %v2394_v0  ;;  %v2399_v62 = vmax.f32 %v5263_v28, 0.0  ;;  %v2242_v43 = vmul.f32 %v5186_v26, %v6104_v5 }
 0x30d   :  { %v2244_v35 = vmul.f32 %v5186_v26, %v6105_v20  ;;  %v2246_v2 = vmul.f32 %v5186_v26, %v6106_v47  ;;  %v2248_v46 = vmul.f32 %v5186_v26, %v4931_v58  ;;  %v2250_v4 = vmul.f32 %v5186_v26, %v6107_v24 }
 0x30e   :  { %v2252_v57 = vmul.f32 %v5186_v26, %v4937_v38  ;;  %v2254_v33 = vmul.f32 %v5186_v26, %v4940_v50  ;;  %v2256_v7 = vmul.f32 %v5186_v26, %v4943_v11  ;;  %v2258_v30 = vmul.f32 %v5186_v26, %v6108_v41 }
 0x30f   :  { %v2260_v27 = vmul.f32 %v5186_v26, %v6109_v49  ;;  %v2262_v58 = vmul.f32 %v5186_v26, %v4952_v51  ;;  %v2264_v38 = vmul.f32 %v5186_v26, %v4955_v42  ;;  %v2266_v44 = vmul.f32 %v5186_v26, %v4958_v39 }
 0x310   :  { %3119 = vmatmul.mubr.bf16.gmra.mrb[20].mxu1 %v2417_v12  ;;  %v2268_v50 = vmul.f32 %v5186_v26, %v4961_v13  ;;  %v2270_v11 = vmul.f32 %v5186_v26, %v4967_v37  ;;  %v2272_v0 = vmul.f32 %v5186_v26, %v4970_v18  ;;  %v2274_v32 = vmul.f32 %v5186_v26, %v4973_v3  ;;  %v6110_v12 = vld [vmem:[#allocation5_spill] sm:$0xff] }
 0x311   :  { %3122 = vmatprep.mubr.bf16.mxu1 %v2418_v45  ;;  %v2276_v51 = vmul.f32 %v5186_v26, %v4976_v31  ;;  %v2278_v42 = vmul.f32 %v5186_v26, %v4979_v60  ;;  %v2280_v39 = vmul.f32 %v5186_v26, %v4982_v34  ;;  %v2282_v13 = vmul.f32 %v5186_v26, %v4985_v15  ;;  %v6111_v45 = vld [vmem:[#allocation6_spill] sm:$0xff] }
 0x312   :  { %v2284_v37 = vmul.f32 %v5186_v26, %v4988_v21  ;;  %v2286_v18 = vmul.f32 %v5186_v26, %v4991_v61  ;;  %v2288_v3 = vmul.f32 %v5186_v26, %v6090_v55  ;;  %v2290_v31 = vmul.f32 %v5186_v26, %v6091_v40 }
 0x313   :  { %v2292_v60 = vmul.f32 %v5186_v26, %v5000_v29  ;;  %v2294_v34 = vmul.f32 %v5186_v26, %v5003_v14  ;;  %v2296_v15 = vmul.f32 %v5186_v26, %v6092_v19  ;;  %v2298_v21 = vmul.f32 %v5186_v26, %v5012_v25 }
 0x314   :  { %v2300_v61 = vmul.f32 %v5186_v26, %v6110_v12  ;;  %v2302_v55 = vmul.f32 %v5186_v26, %v6111_v45  ;;  %v5348_v40 = vadd.f32 %v5084_v23, %v2242_v43  ;;  %v5351_v29 = vadd.f32 %v5084_v23, %v2244_v35 }
 0x315   :  { %v5354_v14 = vadd.f32 %v5084_v23, %v2246_v2  ;;  %v5357_v19 = vadd.f32 %v5084_v23, %v2248_v46  ;;  %v5360_v25 = vadd.f32 %v5084_v23, %v2250_v4  ;;  %v5363_v5 = vadd.f32 %v5084_v23, %v2252_v57 }
 0x316   :  { %v5366_v26 = vadd.f32 %v5084_v23, %v2254_v33  ;;  %v5369_v43 = vadd.f32 %v5084_v23, %v2256_v7  ;;  %v5372_v20 = vadd.f32 %v5084_v23, %v2258_v30  ;;  %v5375_v35 = vadd.f32 %v5084_v23, %v2260_v27 }
 0x317   :  { %v5378_v47 = vadd.f32 %v5084_v23, %v2262_v58  ;;  %v5381_v2 = vadd.f32 %v5084_v23, %v2264_v38  ;;  %v5384_v46 = vadd.f32 %v5084_v23, %v2266_v44  ;;  %v5390_v24 = vadd.f32 %v5084_v23, %v2270_v11 }
 0x318   :  { %3123 = vmatmul.mubr.bf16.gmra.mrb[24].mxu1 %v2419_v36  ;;  %v5387_v36 = vadd.f32 %v5084_v23, %v2268_v50  ;;  %v5393_v4 = vadd.f32 %v5084_v23, %v2272_v0  ;;  %v5396_v57 = vadd.f32 %v5084_v23, %v2274_v32  ;;  %v5402_v33 = vadd.f32 %v5084_v23, %v2278_v42 }
 0x319   :  { %6112 = vst [vmem:[#allocation8_spill] sm:$0xff] %v5378_v47  ;;  %3126 = vmatprep.mubr.bf16.mxu1 %v2420_v1  ;;  %6113 = vst [vmem:[#allocation9_spill] sm:$0xff] %v5381_v2  ;;  %v5399_v1 = vadd.f32 %v5084_v23, %v2276_v51  ;;  %v5405_v7 = vadd.f32 %v5084_v23, %v2280_v39  ;;  %v5408_v41 = vadd.f32 %v5084_v23, %v2282_v13 }
 0x31a   :  { %6114 = vst [vmem:[#allocation12_spill] sm:$0xff] %v5384_v46  ;;  %6115 = vst [vmem:[#allocation13_spill] sm:$0xff] %v5387_v36  ;;  %v5411_v30 = vadd.f32 %v5084_v23, %v2284_v37  ;;  %v5414_v49 = vadd.f32 %v5084_v23, %v2286_v18  ;;  %v5417_v27 = vadd.f32 %v5084_v23, %v2288_v3  ;;  %v6135_v18 = vld [vmem:[#allocation30_spill] sm:$0xff]  ;;  %v6136_v3 = vld [vmem:[#allocation31_spill] sm:$0xff] }
 0x31b   :  { %6116 = vst [vmem:[#allocation10_spill] sm:$0xff] %v5390_v24  ;;  %6117 = vst [vmem:[#allocation11_spill] sm:$0xff] %v5393_v4  ;;  %v5420_v58 = vadd.f32 %v5084_v23, %v2290_v31  ;;  %v5423_v38 = vadd.f32 %v5084_v23, %v2292_v60  ;;  %v5426_v44 = vadd.f32 %v5084_v23, %v2294_v34 }
 0x31c   :  { %6118 = vst [vmem:[#allocation14_spill] sm:$0xff] %v5396_v57  ;;  %6119 = vst [vmem:[#allocation15_spill] sm:$0xff] %v5399_v1  ;;  %v5429_v50 = vadd.f32 %v5084_v23, %v2296_v15  ;;  %v5432_v11 = vadd.f32 %v5084_v23, %v2298_v21  ;;  %v5435_v0 = vadd.f32 %v5084_v23, %v2300_v61  ;;  %v6137_v21 = vld [vmem:[#allocation32_spill] sm:$0xff]  ;;  %v6138_v61 = vld [vmem:[#allocation33_spill] sm:$0xff] }
 0x31d   :  { %6120 = vst [vmem:[#allocation16_spill] sm:$0xff] %v5402_v33  ;;  %6121 = vst [vmem:[#allocation17_spill] sm:$0xff] %v5405_v7  ;;  %v5438_v32 = vadd.f32 %v5084_v23, %v2302_v55  ;;  %v2354_v51 = vadd.f32 %v5201_v48, %v5267_v63  ;;  %v2356_v42 = vadd.f32 %v5201_v48, %v5271_v54  ;;  %v6133_v63 = vld [vmem:[#allocation28_spill] sm:$0xff] }
 0x31e   :  { %6122 = vst [vmem:[#allocation18_spill] sm:$0xff] %v5408_v41  ;;  %6123 = vst [vmem:[#allocation2_spill] sm:$0xff] %v5411_v30  ;;  %v2421_v39 = vpack.c.bf16 %v2397_v8, %v2396_v53  ;;  %v2358_v13 = vadd.f32 %v5201_v48, %v5275_v6  ;;  %v2360_v37 = vadd.f32 %v5201_v48, %v5279_v22 }
 0x31f   :  { %6124 = vst [vmem:[#allocation3_spill] sm:$0xff] %v5414_v49  ;;  %6125 = vst [vmem:[#allocation4_spill] sm:$0xff] %v5417_v27  ;;  %v2422_v23 = vpack.c.bf16 %v2399_v62, %v2398_v10  ;;  %v2285_v54 = vmul.f32 %v5197_v16, %v6133_v63  ;;  %v2287_v9 = vmul.f32 %v5197_v16, %v6134_v52  ;;  %v2400_v53 = vmax.f32 %v2354_v51, 0.0 }
 0x320   :  { %6126 = vst [vmem:[#allocation21_spill] sm:$0xff] %v5420_v58  ;;  %6127 = vst [vmem:[#allocation22_spill] sm:$0xff] %v5423_v38  ;;  %3127 = vmatmul.mubr.bf16.gmra.mrb[28].mxu1 %v2421_v39  ;;  %v2401_v8 = vmax.f32 %v2356_v42, 0.0  ;;  %v2289_v6 = vmul.f32 %v5197_v16, %v6135_v18  ;;  %v2291_v22 = vmul.f32 %v5197_v16, %v6136_v3  ;;  %v2402_v59 = vmax.f32 %v2358_v13, 0.0  ;;  %v6139_v42 = vld [vmem:[#allocation34_spill] sm:$0xff]  ;;  %v6140_v13 = vld [vmem:[#allocation35_spill] sm:$0xff] }
 0x321   :  { %6128 = vst [vmem:[#allocation19_spill] sm:$0xff] %v5426_v44  ;;  %6129 = vst [vmem:[#allocation20_spill] sm:$0xff] %v5429_v50  ;;  %3130 = vmatprep.mubr.bf16.mxu1 %v2422_v23  ;;  %v2403_v31 = vmax.f32 %v2360_v37, 0.0  ;;  %v2362_v28 = vadd.f32 %v5201_v48, %v2285_v54  ;;  %v2364_v10 = vadd.f32 %v5201_v48, %v2287_v9 }
 0x322   :  { %6130 = vst [vmem:[#allocation23_spill] sm:$0xff] %v5432_v11  ;;  %6131 = vst [vmem:[#allocation24_spill] sm:$0xff] %v5435_v0  ;;  %v2423_v62 = vpack.c.bf16 %v2401_v8, %v2400_v53  ;;  %v2366_v60 = vadd.f32 %v5201_v48, %v2289_v6  ;;  %v2368_v34 = vadd.f32 %v5201_v48, %v2291_v22  ;;  %v6141_v6 = vld [vmem:[#allocation36_spill] sm:$0xff]  ;;  %v6142_v22 = vld [vmem:[#allocation37_spill] sm:$0xff] }
 0x323   :  { %6132 = vst [vmem:[#allocation25_spill] sm:$0xff] %v5438_v32  ;;  %v2424_v15 = vpack.c.bf16 %v2403_v31, %v2402_v59  ;;  %v2293_v12 = vmul.f32 %v5197_v16, %v6137_v21  ;;  %v2295_v45 = vmul.f32 %v5197_v16, %v6138_v61  ;;  %v2404_v55 = vmax.f32 %v2362_v28, 0.0 }
 0x324   :  { %v2405_v51 = vmax.f32 %v2364_v10, 0.0  ;;  %v2297_v39 = vmul.f32 %v5197_v16, %v6139_v42  ;;  %v2299_v37 = vmul.f32 %v5197_v16, %v6140_v13  ;;  %v2406_v23 = vmax.f32 %v2366_v60, 0.0 }
 0x325   :  { %v2407_v63 = vmax.f32 %v2368_v34, 0.0  ;;  %v2370_v54 = vadd.f32 %v5201_v48, %v2293_v12  ;;  %v2372_v52 = vadd.f32 %v5201_v48, %v2295_v45  ;;  %v2301_v3 = vmul.f32 %v5197_v16, %v6141_v6 }
 0x326   :  { %v2425_v9 = vpack.c.bf16 %v2405_v51, %v2404_v55  ;;  %v2374_v53 = vadd.f32 %v5201_v48, %v2297_v39  ;;  %v2376_v8 = vadd.f32 %v5201_v48, %v2299_v37  ;;  %v2303_v59 = vmul.f32 %v5197_v16, %v6142_v22 }
 0x327   :  { %v2426_v18 = vpack.c.bf16 %v2407_v63, %v2406_v23  ;;  %v2408_v31 = vmax.f32 %v2370_v54, 0.0  ;;  %v2409_v28 = vmax.f32 %v2372_v52, 0.0  ;;  %v2378_v60 = vadd.f32 %v5201_v48, %v2301_v3 }
 0x328   :  { %3131 = vmatmul.mubr.bf16.gmra.mrb[32].mxu1 %v2423_v62  ;;  %v2410_v10 = vmax.f32 %v2374_v53, 0.0  ;;  %v2411_v62 = vmax.f32 %v2376_v8, 0.0  ;;  %v2380_v34 = vadd.f32 %v5201_v48, %v2303_v59 }
 0x329   :  { %3134 = vmatprep.mubr.bf16.mxu1 %v2424_v15  ;;  %v2427_v15 = vpack.c.bf16 %v2409_v28, %v2408_v31  ;;  %v2412_v12 = vmax.f32 %v2378_v60, 0.0 }
 0x32a   :  { %v2428_v21 = vpack.c.bf16 %v2411_v62, %v2410_v10  ;;  %v2413_v61 = vmax.f32 %v2380_v34, 0.0 }
 0x32c   :  { %v2429_v45 = vpack.c.bf16 %v2413_v61, %v2412_v12 }
 0x330   :  { %3135 = vmatmul.mubr.bf16.gmra.mrb[36].mxu1 %v2425_v9 }
 0x331   :  { %3138 = vmatprep.mubr.bf16.mxu1 %v2426_v18 }
 0x338   :  { %3139 = vmatmul.mubr.bf16.gmra.mrb[40].mxu1 %v2427_v15 }
 0x339   :  { %3142 = vmatprep.mubr.bf16.mxu1 %v2428_v21 }
 0x340   :  { %3143 = vmatmul.mubr.bf16.gmra.mrb[44].mxu1 %v2429_v45 }
 0x3db   :  { %v5486_v55 = vpop.f32.mrb[16].mxu1 }
 0x3dc   :  { %v5488_v51 = vpop.f32.mrb[17].mxu1  ;;  %v2658_v37 = vsel %vm941_vm4, %v5486_v55, 0.0 }
 0x3dd   :  { %v5490_v16 = vpop.f32.mrb[18].mxu1  ;;  %v2655_v39 = vsel %vm941_vm4, %v5488_v51, 0.0 }
 0x3de   :  { %v5492_v42 = vpop.f32.mrb[19].mxu1  ;;  %v2660_v63 = vsel %vm941_vm4, %v5490_v16, 0.0 }
 0x3df   :  { %v2656_v48 = vsel %vm941_vm4, %v5492_v42, 0.0 }
 0x3e0   :  { %v2657_v13 = vadd.f32 %v2656_v48, %v2655_v39 }
 0x3e2   :  { %v2659_v23 = vadd.f32 %v2658_v37, %v2657_v13 }
 0x3e3   :  { %v5502_v54 = vpop.f32.mrb[20].mxu1 }
 0x3e4   :  { %v5504_v52 = vpop.f32.mrb[21].mxu1  ;;  %v2661_v9 = vadd.f32 %v2660_v63, %v2659_v23  ;;  %v2666_v59 = vsel %vm941_vm4, %v5502_v54, 0.0 }
 0x3e5   :  { %v2662_v53 = vsel %vm941_vm4, %v5504_v52, 0.0  ;;  %v5508_v8 = vpop.f32.mrb[22].mxu1 }
 0x3e6   :  { %v2663_v18 = vadd.f32 %v2662_v53, %v2661_v9  ;;  %v5510_v6 = vpop.f32.mrb[23].mxu1  ;;  %v2668_v28 = vsel %vm941_vm4, %v5508_v8, 0.0 }
 0x3e7   :  { %v2664_v3 = vsel %vm941_vm4, %v5510_v6, 0.0 }
 0x3e8   :  { %v2665_v22 = vadd.f32 %v2664_v3, %v2663_v18 }
 0x3ea   :  { %v2667_v31 = vadd.f32 %v2666_v59, %v2665_v22 }
 0x3eb   :  { %v5518_v10 = vpop.f32.mrb[24].mxu1 }
 0x3ec   :  { %v5520_v62 = vpop.f32.mrb[25].mxu1  ;;  %v2669_v60 = vadd.f32 %v2668_v28, %v2667_v31  ;;  %v2674_v39 = vsel %vm941_vm4, %v5518_v10, 0.0 }
 0x3ed   :  { %v2670_v34 = vsel %vm941_vm4, %v5520_v62, 0.0  ;;  %v5524_v15 = vpop.f32.mrb[26].mxu1 }
 0x3ee   :  { %v2671_v21 = vadd.f32 %v2670_v34, %v2669_v60  ;;  %v5526_v12 = vpop.f32.mrb[27].mxu1  ;;  %v2676_v13 = vsel %vm941_vm4, %v5524_v15, 0.0 }
 0x3ef   :  { %v2672_v61 = vsel %vm941_vm4, %v5526_v12, 0.0 }
 0x3f0   :  { %v2673_v45 = vadd.f32 %v2672_v61, %v2671_v21 }
 0x3f2   :  { %v2675_v48 = vadd.f32 %v2674_v39, %v2673_v45 }
 0x3f3   :  { %v5534_v37 = vpop.f32.mrb[28].mxu1 }
 0x3f4   :  { %v5536_v23 = vpop.f32.mrb[29].mxu1  ;;  %v2677_v63 = vadd.f32 %v2676_v13, %v2675_v48  ;;  %v2682_v31 = vsel %vm941_vm4, %v5534_v37, 0.0 }
 0x3f5   :  { %v2678_v9 = vsel %vm941_vm4, %v5536_v23, 0.0  ;;  %v5540_v53 = vpop.f32.mrb[30].mxu1 }
 0x3f6   :  { %v2679_v18 = vadd.f32 %v2678_v9, %v2677_v63  ;;  %v5542_v3 = vpop.f32.mrb[31].mxu1  ;;  %v2684_v60 = vsel %vm941_vm4, %v5540_v53, 0.0 }
 0x3f7   :  { %v2680_v22 = vsel %vm941_vm4, %v5542_v3, 0.0 }
 0x3f8   :  { %v2681_v59 = vadd.f32 %v2680_v22, %v2679_v18 }
 0x3fa   :  { %v2683_v28 = vadd.f32 %v2682_v31, %v2681_v59 }
 0x3fb   :  { %v5550_v34 = vpop.f32.mrb[32].mxu1 }
 0x3fc   :  { %v5552_v21 = vpop.f32.mrb[33].mxu1  ;;  %v2685_v61 = vadd.f32 %v2684_v60, %v2683_v28  ;;  %v2690_v18 = vsel %vm941_vm4, %v5550_v34, 0.0 }
 0x3fd   :  { %v2686_v45 = vsel %vm941_vm4, %v5552_v21, 0.0  ;;  %v5556_v39 = vpop.f32.mrb[34].mxu1 }
 0x3fe   :  { %v2687_v48 = vadd.f32 %v2686_v45, %v2685_v61  ;;  %v5558_v13 = vpop.f32.mrb[35].mxu1  ;;  %v2692_v59 = vsel %vm941_vm4, %v5556_v39, 0.0 }
 0x3ff   :  { %v2688_v63 = vsel %vm941_vm4, %v5558_v13, 0.0 }
 0x400   :  { %v2689_v9 = vadd.f32 %v2688_v63, %v2687_v48 }
 0x402   :  { %v2691_v22 = vadd.f32 %v2690_v18, %v2689_v9 }
 0x403   :  { %v5566_v31 = vpop.f32.mrb[36].mxu1 }
 0x404   :  { %v5568_v28 = vpop.f32.mrb[37].mxu1  ;;  %v2693_v60 = vadd.f32 %v2692_v59, %v2691_v22  ;;  %v2698_v9 = vsel %vm941_vm4, %v5566_v31, 0.0 }
 0x405   :  { %v2694_v61 = vsel %vm941_vm4, %v5568_v28, 0.0  ;;  %v5572_v45 = vpop.f32.mrb[38].mxu1 }
 0x406   :  { %v2695_v56 = vadd.f32 %v2694_v61, %v2693_v60  ;;  %v2611_v32 = vpop.f32.mrb[39].mxu1  ;;  %v2700_v0 = vsel %vm941_vm4, %v5572_v45, 0.0 }
 0x407   :  { %v2696_v48 = vsel %vm941_vm4, %v2611_v32, 0.0 }
 0x408   :  { %v2697_v63 = vadd.f32 %v2696_v48, %v2695_v56 }
 0x40a   :  { %v2699_v18 = vadd.f32 %v2698_v9, %v2697_v63 }
 0x40b   :  { %v3140_v11 = vpop.f32.mrb[40].mxu1 }
 0x40c   :  { %v2624_v50 = vpop.f32.mrb[41].mxu1  ;;  %v2701_v22 = vadd.f32 %v2700_v0, %v2699_v18  ;;  %v2706_v56 = vsel %vm941_vm4, %v3140_v11, 0.0 }
 0x40d   :  { %v2702_v59 = vsel %vm941_vm4, %v2624_v50, 0.0  ;;  %v3141_v44 = vpop.f32.mrb[42].mxu1 }
 0x40e   :  { %v2703_v38 = vadd.f32 %v2702_v59, %v2701_v22  ;;  %v2627_v58 = vpop.f32.mrb[43].mxu1  ;;  %v2708_v27 = vsel %vm941_vm4, %v3141_v44, 0.0 }
 0x40f   :  { %v2704_v60 = vsel %vm941_vm4, %v2627_v58, 0.0 }
 0x410   :  { %v2705_v61 = vadd.f32 %v2704_v60, %v2703_v38 }
 0x412   :  { %v2707_v48 = vadd.f32 %v2706_v56, %v2705_v61 }
 0x413   :  { %v3144_v63 = vpop.f32.mrb[44].mxu1 }
 0x414   :  { %v2640_v9 = vpop.f32.mrb[45].mxu1  ;;  %v2709_v49 = vadd.f32 %v2708_v27, %v2707_v48  ;;  %v2714_v59 = vsel %vm941_vm4, %v3144_v63, 0.0 }
 0x415   :  { %v2710_v30 = vsel %vm941_vm4, %v2640_v9, 0.0  ;;  %v3145_v41 = vpop.f32.mrb[46].mxu1 }
 0x416   :  { %v2711_v0 = vadd.f32 %v2710_v30, %v2709_v49  ;;  %v2643_v18 = vpop.f32.mrb[47].mxu1  ;;  %v2716_v38 = vsel %vm941_vm4, %v3145_v41, 0.0 }
 0x417   :  { %v2712_v7 = vsel %vm941_vm4, %v2643_v18, 0.0 }
 0x418   :  { %v2713_v22 = vadd.f32 %v2712_v7, %v2711_v0 }
 0x41a   :  { %v2715_v33 = vadd.f32 %v2714_v59, %v2713_v22 }
 0x41c   :  { %v2717_v60 = vadd.f32 %v2716_v38, %v2715_v33 }
 0x41e   :  { %v2718_v61 = vrot.slane %v2717_v60, 4 }
 0x420   :  { %v2719_v56 = vadd.f32 %v2718_v61, %v2717_v60 }
 0x422   :  { %v2720_v1 = vrot.slane %v2719_v56, 2 }
 0x424   :  { %v2721_v57 = vadd.f32 %v2720_v1, %v2719_v56 }
 0x426   :  { %v2722_v4 = vrot.slane %v2721_v57, 1 }
 0x428   :  { %v2723_v27 = vadd.f32 %v2722_v4, %v2721_v57 }
 0x42a   :  { %v2724_v48 = vmul.f32 0.00390625, %v2723_v27 }
 0x42c   :  { %v5588_v24 = vsub.f32 %v5488_v51, %v2724_v48  ;;  %v5591_v30 = vsub.f32 %v5492_v42, %v2724_v48  ;;  %v5594_v7 = vsub.f32 %v5486_v55, %v2724_v48  ;;  %v5597_v49 = vsub.f32 %v5490_v16, %v2724_v48 }
 0x42d   :  { %v5600_v33 = vsub.f32 %v5504_v52, %v2724_v48  ;;  %v5603_v1 = vsub.f32 %v5510_v6, %v2724_v48  ;;  %v5606_v4 = vsub.f32 %v5502_v54, %v2724_v48  ;;  %v5609_v57 = vsub.f32 %v5508_v8, %v2724_v48 }
 0x42e   :  { %v5612_v51 = vsub.f32 %v5520_v62, %v2724_v48  ;;  %v5615_v55 = vsub.f32 %v5526_v12, %v2724_v48  ;;  %v5618_v16 = vsub.f32 %v5518_v10, %v2724_v48  ;;  %v5621_v42 = vsub.f32 %v5524_v15, %v2724_v48 }
 0x42f   :  { %v5624_v52 = vsub.f32 %v5536_v23, %v2724_v48  ;;  %v5627_v54 = vsub.f32 %v5542_v3, %v2724_v48  ;;  %v5630_v8 = vsub.f32 %v5534_v37, %v2724_v48  ;;  %v5633_v6 = vsub.f32 %v5540_v53, %v2724_v48 }
 0x430   :  { %v5636_v62 = vsub.f32 %v5552_v21, %v2724_v48  ;;  %v5639_v10 = vsub.f32 %v5558_v13, %v2724_v48  ;;  %v5642_v15 = vsub.f32 %v5550_v34, %v2724_v48  ;;  %v5645_v12 = vsub.f32 %v5556_v39, %v2724_v48 }
 0x431   :  { %v5648_v23 = vsub.f32 %v5568_v28, %v2724_v48  ;;  %v5650_v37 = vsub.f32 %v2611_v32, %v2724_v48  ;;  %v5653_v53 = vsub.f32 %v5566_v31, %v2724_v48  ;;  %v5656_v3 = vsub.f32 %v5572_v45, %v2724_v48 }
 0x432   :  { %v5658_v21 = vsub.f32 %v2624_v50, %v2724_v48  ;;  %v5660_v13 = vsub.f32 %v2627_v58, %v2724_v48  ;;  %v5662_v34 = vsub.f32 %v3140_v11, %v2724_v48  ;;  %v5664_v0 = vsub.f32 %v3141_v44, %v2724_v48 }
 0x433   :  { %v5666_v39 = vsub.f32 %v2640_v9, %v2724_v48  ;;  %v5668_v28 = vsub.f32 %v2643_v18, %v2724_v48  ;;  %v5670_v32 = vsub.f32 %v3144_v63, %v2724_v48  ;;  %v5672_v22 = vsub.f32 %v3145_v41, %v2724_v48 }
 0x434   :  { %v2757_v31 = vmul.f32 %v5588_v24, %v5588_v24  ;;  %v2758_v50 = vmul.f32 %v5591_v30, %v5591_v30  ;;  %v2759_v58 = vmul.f32 %v5594_v7, %v5594_v7  ;;  %v2760_v44 = vmul.f32 %v5597_v49, %v5597_v49 }
 0x435   :  { %v2761_v41 = vmul.f32 %v5600_v33, %v5600_v33  ;;  %v2762_v59 = vmul.f32 %v5603_v1, %v5603_v1  ;;  %v2763_v61 = vmul.f32 %v5606_v4, %v5606_v4  ;;  %v2764_v48 = vmul.f32 %v5609_v57, %v5609_v57 }
 0x436   :  { %v2789_v11 = vsel %vm941_vm4, %v2757_v31, 0.0  ;;  %v2790_v45 = vsel %vm941_vm4, %v2758_v50, 0.0  ;;  %v2792_v9 = vsel %vm941_vm4, %v2759_v58, 0.0  ;;  %v2794_v38 = vsel %vm941_vm4, %v2760_v44, 0.0 }
 0x437   :  { %v2791_v63 = vadd.f32 %v2790_v45, %v2789_v11  ;;  %v2796_v56 = vsel %vm941_vm4, %v2761_v41, 0.0  ;;  %v2798_v31 = vsel %vm941_vm4, %v2762_v59, 0.0  ;;  %v2765_v58 = vmul.f32 %v5612_v51, %v5612_v51 }
 0x438   :  { %v2800_v11 = vsel %vm941_vm4, %v2763_v61, 0.0  ;;  %v2766_v44 = vmul.f32 %v5615_v55, %v5615_v55  ;;  %v2767_v41 = vmul.f32 %v5618_v16, %v5618_v16  ;;  %v2768_v59 = vmul.f32 %v5621_v42, %v5621_v42 }
 0x439   :  { %v2793_v18 = vadd.f32 %v2792_v9, %v2791_v63  ;;  %v2802_v63 = vsel %vm941_vm4, %v2764_v48, 0.0  ;;  %v2769_v61 = vmul.f32 %v5624_v52, %v5624_v52  ;;  %v2770_v48 = vmul.f32 %v5627_v54, %v5627_v54 }
 0x43b   :  { %v2795_v60 = vadd.f32 %v2794_v38, %v2793_v18  ;;  %v2804_v18 = vsel %vm941_vm4, %v2765_v58, 0.0  ;;  %v2771_v58 = vmul.f32 %v5630_v8, %v5630_v8 }
 0x43d   :  { %v2797_v27 = vadd.f32 %v2796_v56, %v2795_v60  ;;  %v2806_v60 = vsel %vm941_vm4, %v2766_v44, 0.0  ;;  %v2772_v44 = vmul.f32 %v5633_v6, %v5633_v6 }
 0x43f   :  { %v2799_v50 = vadd.f32 %v2798_v31, %v2797_v27  ;;  %v2808_v27 = vsel %vm941_vm4, %v2767_v41, 0.0  ;;  %v2773_v41 = vmul.f32 %v5636_v62, %v5636_v62 }
 0x441   :  { %v2801_v45 = vadd.f32 %v2800_v11, %v2799_v50  ;;  %v2810_v50 = vsel %vm941_vm4, %v2768_v59, 0.0  ;;  %v2774_v59 = vmul.f32 %v5639_v10, %v5639_v10 }
 0x443   :  { %v2803_v9 = vadd.f32 %v2802_v63, %v2801_v45  ;;  %v2812_v45 = vsel %vm941_vm4, %v2769_v61, 0.0  ;;  %v2775_v61 = vmul.f32 %v5642_v15, %v5642_v15 }
 0x445   :  { %v2805_v38 = vadd.f32 %v2804_v18, %v2803_v9  ;;  %v2814_v9 = vsel %vm941_vm4, %v2770_v48, 0.0  ;;  %v2776_v48 = vmul.f32 %v5645_v12, %v5645_v12 }
 0x447   :  { %v2807_v56 = vadd.f32 %v2806_v60, %v2805_v38  ;;  %v2816_v38 = vsel %vm941_vm4, %v2771_v58, 0.0  ;;  %v2777_v58 = vmul.f32 %v5648_v23, %v5648_v23 }
 0x449   :  { %v2809_v31 = vadd.f32 %v2808_v27, %v2807_v56  ;;  %v2818_v56 = vsel %vm941_vm4, %v2772_v44, 0.0  ;;  %v2778_v44 = vmul.f32 %v5650_v37, %v5650_v37 }
 0x44b   :  { %v2811_v11 = vadd.f32 %v2810_v50, %v2809_v31  ;;  %v2820_v31 = vsel %vm941_vm4, %v2773_v41, 0.0  ;;  %v2779_v41 = vmul.f32 %v5653_v53, %v5653_v53 }
 0x44d   :  { %v2813_v63 = vadd.f32 %v2812_v45, %v2811_v11  ;;  %v2822_v11 = vsel %vm941_vm4, %v2774_v59, 0.0  ;;  %v2780_v59 = vmul.f32 %v5656_v3, %v5656_v3 }
 0x44f   :  { %v2815_v18 = vadd.f32 %v2814_v9, %v2813_v63  ;;  %v2824_v63 = vsel %vm941_vm4, %v2775_v61, 0.0  ;;  %v2781_v61 = vmul.f32 %v5658_v21, %v5658_v21 }
 0x451   :  { %v2817_v60 = vadd.f32 %v2816_v38, %v2815_v18  ;;  %v2826_v18 = vsel %vm941_vm4, %v2776_v48, 0.0  ;;  %v2782_v48 = vmul.f32 %v5660_v13, %v5660_v13 }
 0x453   :  { %v2819_v27 = vadd.f32 %v2818_v56, %v2817_v60  ;;  %v2828_v60 = vsel %vm941_vm4, %v2777_v58, 0.0  ;;  %v2783_v58 = vmul.f32 %v5662_v34, %v5662_v34 }
 0x455   :  { %v2821_v50 = vadd.f32 %v2820_v31, %v2819_v27  ;;  %v2830_v27 = vsel %vm941_vm4, %v2778_v44, 0.0  ;;  %v2784_v44 = vmul.f32 %v5664_v0, %v5664_v0 }
 0x457   :  { %v2823_v45 = vadd.f32 %v2822_v11, %v2821_v50  ;;  %v2832_v50 = vsel %vm941_vm4, %v2779_v41, 0.0  ;;  %v2785_v41 = vmul.f32 %v5666_v39, %v5666_v39 }
 0x459   :  { %v2825_v9 = vadd.f32 %v2824_v63, %v2823_v45  ;;  %v2834_v45 = vsel %vm941_vm4, %v2780_v59, 0.0  ;;  %v2786_v59 = vmul.f32 %v5668_v28, %v5668_v28 }
 0x45b   :  { %v2827_v38 = vadd.f32 %v2826_v18, %v2825_v9  ;;  %v2836_v9 = vsel %vm941_vm4, %v2781_v61, 0.0  ;;  %v2787_v61 = vmul.f32 %v5670_v32, %v5670_v32 }
 0x45d   :  { %v2829_v56 = vadd.f32 %v2828_v60, %v2827_v38  ;;  %v2838_v38 = vsel %vm941_vm4, %v2782_v48, 0.0  ;;  %v2788_v48 = vmul.f32 %v5672_v22, %v5672_v22 }
 0x45f   :  { %v2831_v31 = vadd.f32 %v2830_v27, %v2829_v56  ;;  %v2840_v56 = vsel %vm941_vm4, %v2783_v58, 0.0  ;;  %v2848_v58 = vsel %vm941_vm4, %v2787_v61, 0.0 }
 0x461   :  { %v2833_v11 = vadd.f32 %v2832_v50, %v2831_v31  ;;  %v2842_v31 = vsel %vm941_vm4, %v2784_v44, 0.0 }
 0x463   :  { %v2835_v63 = vadd.f32 %v2834_v45, %v2833_v11  ;;  %v2844_v11 = vsel %vm941_vm4, %v2785_v41, 0.0 }
 0x465   :  { %v2837_v18 = vadd.f32 %v2836_v9, %v2835_v63  ;;  %v2846_v63 = vsel %vm941_vm4, %v2786_v59, 0.0  ;;  %v2859_v59 = vld [vmem:[%s5973_s4] sm:$0x1] }
 0x467   :  { %v2839_v60 = vadd.f32 %v2838_v38, %v2837_v18  ;;  %v2850_v38 = vsel %vm941_vm4, %v2788_v48, 0.0 }
 0x469   :  { %v2841_v27 = vadd.f32 %v2840_v56, %v2839_v60 }
 0x46b   :  { %v2843_v50 = vadd.f32 %v2842_v31, %v2841_v27 }
 0x46d   :  { %v2845_v45 = vadd.f32 %v2844_v11, %v2843_v50 }
 0x46f   :  { %v2847_v9 = vadd.f32 %v2846_v63, %v2845_v45 }
 0x471   :  { %v2849_v18 = vadd.f32 %v2848_v58, %v2847_v9 }
 0x473   :  { %v2851_v60 = vadd.f32 %v2850_v38, %v2849_v18 }
 0x475   :  { %v2852_v44 = vrot.slane %v2851_v60, 4 }
 0x477   :  { %v2853_v56 = vadd.f32 %v2852_v44, %v2851_v60 }
 0x479   :  { %v2854_v27 = vrot.slane %v2853_v56, 2 }
 0x47b   :  { %v2855_v31 = vadd.f32 %v2854_v27, %v2853_v56 }
 0x47d   :  { %v2856_v36 = vrot.slane %v2855_v31, 1 }
 0x47f   :  { %v2857_v46 = vadd.f32 %v2856_v36, %v2855_v31 }
 0x481   :  { %v2858_v41 = vmul.f32 0.00390625, %v2857_v46 }
 0x483   :  { %v2860_v50 = vadd.f32 1e-05, %v2858_v41 }
 0x485   :  { %3243 = vrsqrt.f32 %v2860_v50 }
 0x48f   :  { %v3244_v11 = vpop.eup %3243 }
 0x490   :  { %v2862_v45 = vmul.f32 %v3244_v11, %v2859_v59 }
 0x492   :  { %v2866_v61 = vrot.slane %v2862_v45, %v5189_v17 }
 0x494   :  { %v2867_v48 = vmul.f32 %v2866_v61, %v5588_v24  ;;  %v2868_v63 = vmul.f32 %v2866_v61, %v5591_v30  ;;  %v2869_v9 = vmul.f32 %v2866_v61, %v5594_v7  ;;  %v2870_v58 = vmul.f32 %v2866_v61, %v5597_v49 }
 0x495   :  { %v2871_v46 = vmul.f32 %v2866_v61, %v5600_v33  ;;  %v2872_v36 = vmul.f32 %v2866_v61, %v5603_v1  ;;  %v2873_v18 = vmul.f32 %v2866_v61, %v5606_v4  ;;  %v2874_v38 = vmul.f32 %v2866_v61, %v5609_v57 }
 0x496   :  { %v2875_v60 = vmul.f32 %v2866_v61, %v5612_v51  ;;  %v2876_v17 = vmul.f32 %v2866_v61, %v5615_v55  ;;  %v2877_v24 = vmul.f32 %v2866_v61, %v5618_v16  ;;  %v2878_v30 = vmul.f32 %v2866_v61, %v5621_v42 }
 0x497   :  { %v2879_v7 = vmul.f32 %v2866_v61, %v5624_v52  ;;  %v2880_v49 = vmul.f32 %v2866_v61, %v5627_v54  ;;  %v2881_v33 = vmul.f32 %v2866_v61, %v5630_v8  ;;  %v2882_v1 = vmul.f32 %v2866_v61, %v5633_v6  ;;  %v3073_v8 = vld [vmem:[%s5973_s4 + $0x1] ss:$0 sm:$0xff] }
 0x498   :  { %v2883_v4 = vmul.f32 %v2866_v61, %v5636_v62  ;;  %v2884_v57 = vmul.f32 %v2866_v61, %v5639_v10  ;;  %v2885_v51 = vmul.f32 %v2866_v61, %v5642_v15  ;;  %v2886_v55 = vmul.f32 %v2866_v61, %v5645_v12 }
 0x499   :  { %v2887_v16 = vmul.f32 %v2866_v61, %v5648_v23  ;;  %v2888_v42 = vmul.f32 %v2866_v61, %v5650_v37  ;;  %v2889_v52 = vmul.f32 %v2866_v61, %v5653_v53  ;;  %v2890_v54 = vmul.f32 %v2866_v61, %v5656_v3 }
 0x49a   :  { %v2891_v6 = vmul.f32 %v2866_v61, %v5658_v21  ;;  %v2892_v62 = vmul.f32 %v2866_v61, %v5660_v13  ;;  %v2893_v10 = vmul.f32 %v2866_v61, %v5662_v34  ;;  %v2894_v15 = vmul.f32 %v2866_v61, %v5664_v0 }
 0x49b   :  { %v2895_v12 = vmul.f32 %v2866_v61, %v5666_v39  ;;  %v2896_v23 = vmul.f32 %v2866_v61, %v5668_v28  ;;  %v2897_v37 = vmul.f32 %v2866_v61, %v5670_v32  ;;  %v2898_v53 = vmul.f32 %v2866_v61, %v5672_v22 }
 0x49c   :  { %v2904_v3 = vadd.f32 %v3073_v8, %v2867_v48  ;;  %v2905_v44 = vadd.f32 %v3073_v8, %v2868_v63  ;;  %v2906_v56 = vadd.f32 %v3073_v8, %v2869_v9  ;;  %v2907_v27 = vadd.f32 %v3073_v8, %v2870_v58 }
 0x49d   :  { %v2908_v31 = vadd.f32 %v3073_v8, %v2871_v46  ;;  %v2909_v21 = vadd.f32 %v3073_v8, %v2872_v36  ;;  %v2910_v41 = vadd.f32 %v3073_v8, %v2873_v18  ;;  %v2911_v13 = vadd.f32 %v3073_v8, %v2874_v38 }
 0x49e   :  { %v2912_v50 = vadd.f32 %v3073_v8, %v2875_v60  ;;  %v2913_v34 = vadd.f32 %v3073_v8, %v2876_v17  ;;  %v2914_v59 = vadd.f32 %v3073_v8, %v2877_v24  ;;  %v2915_v0 = vadd.f32 %v3073_v8, %v2878_v30 }
 0x49f   :  { %v2916_v11 = vadd.f32 %v3073_v8, %v2879_v7  ;;  %v2917_v39 = vadd.f32 %v3073_v8, %v2880_v49  ;;  %v2918_v45 = vadd.f32 %v3073_v8, %v2881_v33  ;;  %v2919_v28 = vadd.f32 %v3073_v8, %v2882_v1 }
 0x4a0   :  { %v2920_v2 = vadd.f32 %v3073_v8, %v2883_v4  ;;  %v2921_v32 = vadd.f32 %v3073_v8, %v2884_v57  ;;  %v2922_v47 = vadd.f32 %v3073_v8, %v2885_v51  ;;  %v2923_v22 = vadd.f32 %v3073_v8, %v2886_v55 }
 0x4a1   :  { %v2924_v61 = vadd.f32 %v3073_v8, %v2887_v16  ;;  %v2925_v48 = vadd.f32 %v3073_v8, %v2888_v42  ;;  %v2926_v63 = vadd.f32 %v3073_v8, %v2889_v52  ;;  %v2927_v9 = vadd.f32 %v3073_v8, %v2890_v54  ;;  %v6143_v42 = vld [vmem:[#allocation8_spill] sm:$0xff]  ;;  %v6144_v52 = vld [vmem:[#allocation9_spill] sm:$0xff]  ;;  %v6149_v54 = vld [vmem:[#allocation14_spill] sm:$0xff] }
 0x4a2   :  { %v2928_v58 = vadd.f32 %v3073_v8, %v2891_v6  ;;  %v2929_v46 = vadd.f32 %v3073_v8, %v2892_v62  ;;  %v2930_v36 = vadd.f32 %v3073_v8, %v2893_v10  ;;  %v2931_v18 = vadd.f32 %v3073_v8, %v2894_v15  ;;  %v6150_v6 = vld [vmem:[#allocation15_spill] sm:$0xff]  ;;  %v6151_v10 = vld [vmem:[#allocation16_spill] sm:$0xff] }
 0x4a3   :  { %v2932_v38 = vadd.f32 %v3073_v8, %v2895_v12  ;;  %v2933_v60 = vadd.f32 %v3073_v8, %v2896_v23  ;;  %v2934_v17 = vadd.f32 %v3073_v8, %v2897_v37  ;;  %v2935_v24 = vadd.f32 %v3073_v8, %v2898_v53  ;;  %v6152_v12 = vld [vmem:[#allocation17_spill] sm:$0xff]  ;;  %v6154_v37 = vld [vmem:[#allocation2_spill] sm:$0xff] }
 0x4a4   :  { %v2936_v30 = vadd.f32 %v2904_v3, %v5348_v40  ;;  %v2937_v7 = vadd.f32 %v2905_v44, %v5351_v29  ;;  %v2938_v49 = vadd.f32 %v2906_v56, %v5354_v14  ;;  %v2939_v33 = vadd.f32 %v2907_v27, %v5357_v19  ;;  %v6145_v14 = vld [vmem:[#allocation12_spill] sm:$0xff]  ;;  %v6155_v3 = vld [vmem:[#allocation3_spill] sm:$0xff] }
 0x4a5   :  { %v2940_v1 = vadd.f32 %v2908_v31, %v5360_v25  ;;  %v2941_v4 = vadd.f32 %v2909_v21, %v5363_v5  ;;  %v2942_v57 = vadd.f32 %v2910_v41, %v5366_v26  ;;  %v2943_v51 = vadd.f32 %v2911_v13, %v5369_v43  ;;  %v6146_v25 = vld [vmem:[#allocation13_spill] sm:$0xff]  ;;  %v6147_v26 = vld [vmem:[#allocation10_spill] sm:$0xff]  ;;  %v6156_v56 = vld [vmem:[#allocation4_spill] sm:$0xff] }
 0x4a6   :  { %v2944_v55 = vadd.f32 %v2912_v50, %v5372_v20  ;;  %v2945_v16 = vadd.f32 %v2913_v34, %v5375_v35  ;;  %v2946_v40 = vadd.f32 %v2914_v59, %v6143_v42  ;;  %v2947_v29 = vadd.f32 %v2915_v0, %v6144_v52  ;;  %2968 = vst.msk [vmem:[%s5974_s5] sm:$0xff] %vm941_vm4, %v2936_v30  ;;  %v6148_v20 = vld [vmem:[#allocation11_spill] sm:$0xff]  ;;  %v6157_v31 = vld [vmem:[#allocation21_spill] sm:$0xff]  ;;  %v6158_v41 = vld [vmem:[#allocation22_spill] sm:$0xff] }
 0x4a7   :  { %2969 = vst.msk [vmem:[%s5974_s5 + $0x8] sm:$0xff] %vm941_vm4, %v2937_v7  ;;  %2970 = vst.msk [vmem:[%s5974_s5 + $0x10] sm:$0xff] %vm941_vm4, %v2938_v49  ;;  %v2948_v19 = vadd.f32 %v2916_v11, %v6145_v14  ;;  %v2949_v5 = vadd.f32 %v2917_v39, %v6146_v25  ;;  %v2950_v43 = vadd.f32 %v2918_v45, %v6147_v26  ;;  %v6159_v50 = vld [vmem:[#allocation19_spill] sm:$0xff]  ;;  %v6160_v59 = vld [vmem:[#allocation20_spill] sm:$0xff] }
 0x4a8   :  { %2971 = vst.msk [vmem:[%s5974_s5 + $0x18] sm:$0xff] %vm941_vm4, %v2939_v33  ;;  %v2951_v35 = vadd.f32 %v2919_v28, %v6148_v20  ;;  %2972 = vst.msk [vmem:[%s5974_s5 + $0x20] sm:$0xff] %vm941_vm4, %v2940_v1  ;;  %v2952_v8 = vadd.f32 %v2920_v2, %v6149_v54  ;;  %v2953_v62 = vadd.f32 %v2921_v32, %v6150_v6  ;;  %v6161_v11 = vld [vmem:[#allocation23_spill] sm:$0xff]  ;;  %v6162_v45 = vld [vmem:[#allocation24_spill] sm:$0xff] }
 0x4a9   :  { %2973 = vst.msk [vmem:[%s5974_s5 + $0x28] sm:$0xff] %vm941_vm4, %v2941_v4  ;;  %2974 = vst.msk [vmem:[%s5974_s5 + $0x30] sm:$0xff] %vm941_vm4, %v2942_v57  ;;  %v2954_v15 = vadd.f32 %v2922_v47, %v6151_v10  ;;  %v2955_v23 = vadd.f32 %v2923_v22, %v6152_v12  ;;  %v6153_v47 = vld [vmem:[#allocation18_spill] sm:$0xff]  ;;  %v2957_v53 = vadd.f32 %v2925_v48, %v6154_v37  ;;  %v6163_v32 = vld [vmem:[#allocation25_spill] sm:$0xff] }
 0x4aa   :  { %2975 = vst.msk [vmem:[%s5974_s5 + $0x38] sm:$0xff] %vm941_vm4, %v2943_v51  ;;  %2976 = vst.msk [vmem:[%s5974_s5 + $0x40] sm:$0xff] %vm941_vm4, %v2944_v55  ;;  %v2956_v2 = vadd.f32 %v2924_v61, %v6153_v47  ;;  %v2958_v44 = vadd.f32 %v2926_v63, %v6155_v3  ;;  %v2959_v27 = vadd.f32 %v2927_v9, %v6156_v56  ;;  %v6164_v61 = vld [vmem:[#allocation7_spill] sm:$0xff] }
 0x4ab   :  { %2977 = vst.msk [vmem:[%s5974_s5 + $0x48] sm:$0xff] %vm941_vm4, %v2945_v16  ;;  %2978 = vst.msk [vmem:[%s5974_s5 + $0x50] sm:$0xff] %vm941_vm4, %v2946_v40  ;;  %v2960_v21 = vadd.f32 %v2928_v58, %v6157_v31  ;;  %v2961_v13 = vadd.f32 %v2929_v46, %v6158_v41  ;;  %v2962_v34 = vadd.f32 %v2930_v36, %v6159_v50 }
 0x4ac   :  { %2979 = vst.msk [vmem:[%s5974_s5 + $0x58] sm:$0xff] %vm941_vm4, %v2947_v29  ;;  %2980 = vst.msk [vmem:[%s5974_s5 + $0x60] sm:$0xff] %vm941_vm4, %v2948_v19  ;;  %v2963_v0 = vadd.f32 %v2931_v18, %v6160_v59  ;;  %v2964_v39 = vadd.f32 %v2932_v38, %v6161_v11  ;;  %v2965_v28 = vadd.f32 %v2933_v60, %v6162_v45 }
 0x4ad   :  { %2981 = vst.msk [vmem:[%s5974_s5 + $0x68] sm:$0xff] %vm941_vm4, %v2949_v5  ;;  %2982 = vst.msk [vmem:[%s5974_s5 + $0x70] sm:$0xff] %vm941_vm4, %v2950_v43  ;;  %v2966_v22 = vadd.f32 %v2934_v17, %v6163_v32  ;;  %v2967_v48 = vadd.f32 %v2935_v24, %v6164_v61 }
 0x4ae   :  { %2983 = vst.msk [vmem:[%s5974_s5 + $0x78] sm:$0xff] %vm941_vm4, %v2951_v35  ;;  %2984 = vst.msk [vmem:[%s5974_s5 + $0x80] sm:$0xff] %vm941_vm4, %v2952_v8 }
 0x4af   :  { %2985 = vst.msk [vmem:[%s5974_s5 + $0x88] sm:$0xff] %vm941_vm4, %v2953_v62  ;;  %2986 = vst.msk [vmem:[%s5974_s5 + $0x90] sm:$0xff] %vm941_vm4, %v2954_v15 }
 0x4b0   :  { %2987 = vst.msk [vmem:[%s5974_s5 + $0x98] sm:$0xff] %vm941_vm4, %v2955_v23  ;;  %2988 = vst.msk [vmem:[%s5974_s5 + $0xa0] sm:$0xff] %vm941_vm4, %v2956_v2 }
 0x4b1   :  { %2989 = vst.msk [vmem:[%s5974_s5 + $0xa8] sm:$0xff] %vm941_vm4, %v2957_v53  ;;  %2990 = vst.msk [vmem:[%s5974_s5 + $0xb0] sm:$0xff] %vm941_vm4, %v2958_v44 }
 0x4b2   :  { %2991 = vst.msk [vmem:[%s5974_s5 + $0xb8] sm:$0xff] %vm941_vm4, %v2959_v27  ;;  %2992 = vst.msk [vmem:[%s5974_s5 + $0xc0] sm:$0xff] %vm941_vm4, %v2960_v21 }
 0x4b3   :  { %2993 = vst.msk [vmem:[%s5974_s5 + $0xc8] sm:$0xff] %vm941_vm4, %v2961_v13  ;;  %2994 = vst.msk [vmem:[%s5974_s5 + $0xd0] sm:$0xff] %vm941_vm4, %v2962_v34 }
 0x4b4   :  { %2995 = vst.msk [vmem:[%s5974_s5 + $0xd8] sm:$0xff] %vm941_vm4, %v2963_v0  ;;  %2996 = vst.msk [vmem:[%s5974_s5 + $0xe0] sm:$0xff] %vm941_vm4, %v2964_v39 }
 0x4b5   :  { %2997 = vst.msk [vmem:[%s5974_s5 + $0xe8] sm:$0xff] %vm941_vm4, %v2965_v28  ;;  %2998 = vst.msk [vmem:[%s5974_s5 + $0xf0] sm:$0xff] %vm941_vm4, %v2966_v22 }
 0x4b6   :  { %2999 = vst.msk [vmem:[%s5974_s5 + $0xf8] sm:$0xff] %vm941_vm4, %v2967_v48 }

</bundles_post_ra>
